<compile_context>
chip_gen: v6e
topology: v6e:2x2x1
jax: 0.10.0
libtpu: 0.0.40
codegen_flags: <defaults>
</compile_context>

<pallas_src>
import functools

import jax
import jax.numpy as jnp
from jax import lax
from jax.experimental import pallas as pl
from jax.experimental.pallas import tpu as pltpu

EPS = 1e-5
LANE = 128


# ---------------------------------------------------------------------------
# small helpers
# ---------------------------------------------------------------------------
def _round_up(n, m):
    return ((n + m - 1) // m) * m


def _pad_axis(x, axis, target):
    pad = target - x.shape[axis]
    if pad == 0:
        return x
    cfg = [(0, 0)] * x.ndim
    cfg[axis] = (0, pad)
    return jnp.pad(x, cfg)


def _pick_row_tile(m, target):
    """Largest divisor of m that is <= target and a multiple of 16 (or m itself)."""
    t = min(m, target)
    while t > 1:
        if m % t == 0 and (t % 16 == 0 or t == m):
            return t
        t -= 1
    return m


def _cparams(semantics):
    # Tiles are sized well under v7x's 64 MiB physical VMEM; a 32 MiB scoped
    # limit is safe on v5e / v6e / v7x.
    return pltpu.CompilerParams(
        dimension_semantics=semantics,
        vmem_limit_bytes=32 * 1024 * 1024,
    )


def _bn_affine(s, q, gamma, beta, m):
    """Fold BN (training-mode batch stats) into per-channel scale/shift.

    scale = gamma * rsqrt(var + eps); shift = beta - mean * scale.
    Tiny (1, C) math -> plain JAX between kernels.
    """
    mean = s / m
    var = jnp.maximum(q / m - mean * mean, 0.0)
    scale = gamma * lax.rsqrt(var + EPS)
    shift = beta - mean * scale
    return scale, shift


# ---------------------------------------------------------------------------
# Kernel 1: 1x1 conv (matmul) + BN-stat accumulation           [M-tiled grid]
# ---------------------------------------------------------------------------
def _conv1x1_stats_kernel(x_ref, w_ref, y_ref, sum_ref, sq_ref):
    @pl.when(pl.program_id(0) == 0)
    def _init():
        sum_ref[...] = jnp.zeros_like(sum_ref)
        sq_ref[...] = jnp.zeros_like(sq_ref)

    y = jnp.dot(x_ref[...], w_ref[...], preferred_element_type=jnp.float32)
    y_ref[...] = y.astype(y_ref.dtype)
    sum_ref[...] += jnp.sum(y, axis=0, keepdims=True)
    sq_ref[...] += jnp.sum(y * y, axis=0, keepdims=True)


def conv1x1_stats(x, w, *, row_tile):
    m, kin = x.shape
    cout = w.shape[1]
    tm = _pick_row_tile(m, row_tile)
    flops = 2 * m * kin * cout
    bytes_acc = int((m * kin + kin * cout + m * cout) * 2 + 2 * cout * 4)
    return pl.pallas_call(
        _conv1x1_stats_kernel,
        grid=(m // tm,),
        in_specs=[
            pl.BlockSpec((tm, kin), lambda i: (i, 0)),
            pl.BlockSpec((kin, cout), lambda i: (0, 0)),
        ],
        out_specs=[
            pl.BlockSpec((tm, cout), lambda i: (i, 0)),
            pl.BlockSpec((1, cout), lambda i: (0, 0)),
            pl.BlockSpec((1, cout), lambda i: (0, 0)),
        ],
        out_shape=[
            jax.ShapeDtypeStruct((m, cout), jnp.bfloat16),
            jax.ShapeDtypeStruct((1, cout), jnp.float32),
            jax.ShapeDtypeStruct((1, cout), jnp.float32),
        ],
        # stats outputs revisit their block across M tiles -> reduction axis.
        compiler_params=_cparams(("arbitrary",)),
        cost_estimate=pl.CostEstimate(
            flops=flops, transcendentals=0, bytes_accessed=bytes_acc),
    )(x, w)


# ---------------------------------------------------------------------------
# Kernel 2: apply BN1+ReLU (folded scale/shift), 3x3 conv via on-chip implicit
#           im2col (9 strided taps of a zero-padded VMEM tile, 9 accumulating
#           MXU matmuls), accumulate BN2 stats.                [grid over batch]
# ---------------------------------------------------------------------------
def _conv3x3_stats_kernel(y1_ref, w_ref, sc_ref, sh_ref,
                          y2_ref, sum_ref, sq_ref, pad_ref, *, stride, ho, wo):
    h, w, cin = y1_ref.shape[1], y1_ref.shape[2], y1_ref.shape[3]
    cout = w_ref.shape[2]

    @pl.when(pl.program_id(0) == 0)
    def _init():
        sum_ref[...] = jnp.zeros_like(sum_ref)
        sq_ref[...] = jnp.zeros_like(sq_ref)
        pad_ref[...] = jnp.zeros_like(pad_ref)   # zero the halo once

    # previous stage's BN folded to scale/shift, + ReLU, in f32.
    a = jnp.maximum(y1_ref[0].astype(jnp.float32) * sc_ref[...] + sh_ref[...], 0.0)
    pad_ref[1:h + 1, 1:w + 1, :] = a              # interior overwritten each image

    # implicit im2col: the (M, 9*C) tensor never hits HBM.
    acc = jnp.zeros((ho * wo, cout), jnp.float32)
    for t in range(9):
        ki, kj = t // 3, t % 3
        if stride == 1:
            tap = pad_ref[pl.ds(ki, ho), pl.ds(kj, wo), :]
        else:
            tap = pad_ref[pl.ds(ki, ho, stride=stride), pl.ds(kj, wo, stride=stride), :]
        tap = tap.reshape(ho * wo, cin).astype(jnp.bfloat16)
        acc += jnp.dot(tap, w_ref[t], preferred_element_type=jnp.float32)

    y2_ref[0] = acc.astype(y2_ref.dtype)
    sum_ref[...] += jnp.sum(acc, axis=0, keepdims=True)
    sq_ref[...] += jnp.sum(acc * acc, axis=0, keepdims=True)


def conv3x3_stats(y1_img, w2, scale1, shift1, *, stride):
    n, h, w, cin = y1_img.shape
    cout = w2.shape[2]
    ho = (h - 1) // stride + 1
    wo = (w - 1) // stride + 1
    kernel = functools.partial(_conv3x3_stats_kernel, stride=stride, ho=ho, wo=wo)
    flops = 2 * n * ho * wo * 9 * cin * cout
    bytes_acc = int((y1_img.size + w2.size + n * ho * wo * cout) * 2
                    + (scale1.size + shift1.size + 2 * cout) * 4)
    y2, s2, q2 = pl.pallas_call(
        kernel,
        grid=(n,),
        in_specs=[
            pl.BlockSpec((1, h, w, cin), lambda i: (i, 0, 0, 0)),
            pl.BlockSpec((9, cin, cout), lambda i: (0, 0, 0)),
            pl.BlockSpec((1, cin), lambda i: (0, 0)),
            pl.BlockSpec((1, cin), lambda i: (0, 0)),
        ],
        out_specs=[
            pl.BlockSpec((1, ho * wo, cout), lambda i: (i, 0, 0)),
            pl.BlockSpec((1, cout), lambda i: (0, 0)),
            pl.BlockSpec((1, cout), lambda i: (0, 0)),
        ],
        out_shape=[
            jax.ShapeDtypeStruct((n, ho * wo, cout), jnp.bfloat16),
            jax.ShapeDtypeStruct((1, cout), jnp.float32),
            jax.ShapeDtypeStruct((1, cout), jnp.float32),
        ],
        scratch_shapes=[pltpu.VMEM((h + 2, w + 2, cin), jnp.float32)],
        compiler_params=_cparams(("arbitrary",)),   # stats accumulate across images
        cost_estimate=pl.CostEstimate(
            flops=flops, transcendentals=0, bytes_accessed=bytes_acc),
    )(y1_img, w2, scale1, shift1)
    return y2.reshape(n * ho * wo, cout), s2, q2, ho, wo


# ---------------------------------------------------------------------------
# Kernel 3: apply BN2+ReLU, stage-3 1x1 conv fused with the shortcut 1x1 conv,
#           accumulate BN3 and shortcut-BN stats.              [M-tiled grid]
# ---------------------------------------------------------------------------
def _stage3_shortcut_kernel(y2_ref, xs_ref, w3_ref, ws_ref, sc2_ref, sh2_ref,
                            y3_ref, sr_ref, s3_ref, q3_ref, ss_ref, qs_ref):
    @pl.when(pl.program_id(0) == 0)
    def _init():
        s3_ref[...] = jnp.zeros_like(s3_ref)
        q3_ref[...] = jnp.zeros_like(q3_ref)
        ss_ref[...] = jnp.zeros_like(ss_ref)
        qs_ref[...] = jnp.zeros_like(qs_ref)

    a = jnp.maximum(y2_ref[...].astype(jnp.float32) * sc2_ref[...] + sh2_ref[...], 0.0)
    y3 = jnp.dot(a.astype(jnp.bfloat16), w3_ref[...], preferred_element_type=jnp.float32)
    sr = jnp.dot(xs_ref[...], ws_ref[...], preferred_element_type=jnp.float32)

    y3_ref[...] = y3.astype(y3_ref.dtype)
    sr_ref[...] = sr.astype(sr_ref.dtype)
    s3_ref[...] += jnp.sum(y3, axis=0, keepdims=True)
    q3_ref[...] += jnp.sum(y3 * y3, axis=0, keepdims=True)
    ss_ref[...] += jnp.sum(sr, axis=0, keepdims=True)
    qs_ref[...] += jnp.sum(sr * sr, axis=0, keepdims=True)


def stage3_shortcut(y2, x_s, w3, ws, scale2, shift2, *, row_tile):
    m, c2 = y2.shape
    cin = x_s.shape[1]
    c3 = w3.shape[1]
    tm = _pick_row_tile(m, row_tile)
    flops = 2 * m * (c2 + cin) * c3
    bytes_acc = int((y2.size + x_s.size + w3.size + ws.size + 2 * m * c3) * 2
                    + (2 * c2 + 4 * c3) * 4)
    return pl.pallas_call(
        _stage3_shortcut_kernel,
        grid=(m // tm,),
        in_specs=[
            pl.BlockSpec((tm, c2), lambda i: (i, 0)),
            pl.BlockSpec((tm, cin), lambda i: (i, 0)),
            pl.BlockSpec((c2, c3), lambda i: (0, 0)),
            pl.BlockSpec((cin, c3), lambda i: (0, 0)),
            pl.BlockSpec((1, c2), lambda i: (0, 0)),
            pl.BlockSpec((1, c2), lambda i: (0, 0)),
        ],
        out_specs=[
            pl.BlockSpec((tm, c3), lambda i: (i, 0)),
            pl.BlockSpec((tm, c3), lambda i: (i, 0)),
            pl.BlockSpec((1, c3), lambda i: (0, 0)),
            pl.BlockSpec((1, c3), lambda i: (0, 0)),
            pl.BlockSpec((1, c3), lambda i: (0, 0)),
            pl.BlockSpec((1, c3), lambda i: (0, 0)),
        ],
        out_shape=[
            jax.ShapeDtypeStruct((m, c3), jnp.bfloat16),
            jax.ShapeDtypeStruct((m, c3), jnp.bfloat16),
            jax.ShapeDtypeStruct((1, c3), jnp.float32),
            jax.ShapeDtypeStruct((1, c3), jnp.float32),
            jax.ShapeDtypeStruct((1, c3), jnp.float32),
            jax.ShapeDtypeStruct((1, c3), jnp.float32),
        ],
        compiler_params=_cparams(("arbitrary",)),
        cost_estimate=pl.CostEstimate(
            flops=flops, transcendentals=0, bytes_accessed=bytes_acc),
    )(y2, x_s, w3, ws, scale2, shift2)


def _stage3_kernel(y2_ref, w3_ref, sc2_ref, sh2_ref, y3_ref, s3_ref, q3_ref):
    """Stage-3 conv only (identity-shortcut variant)."""
    @pl.when(pl.program_id(0) == 0)
    def _init():
        s3_ref[...] = jnp.zeros_like(s3_ref)
        q3_ref[...] = jnp.zeros_like(q3_ref)

    a = jnp.maximum(y2_ref[...].astype(jnp.float32) * sc2_ref[...] + sh2_ref[...], 0.0)
    y3 = jnp.dot(a.astype(jnp.bfloat16), w3_ref[...], preferred_element_type=jnp.float32)
    y3_ref[...] = y3.astype(y3_ref.dtype)
    s3_ref[...] += jnp.sum(y3, axis=0, keepdims=True)
    q3_ref[...] += jnp.sum(y3 * y3, axis=0, keepdims=True)


def stage3(y2, w3, scale2, shift2, *, row_tile):
    m, c2 = y2.shape
    c3 = w3.shape[1]
    tm = _pick_row_tile(m, row_tile)
    flops = 2 * m * c2 * c3
    bytes_acc = int((y2.size + w3.size + m * c3) * 2 + (2 * c2 + 2 * c3) * 4)
    return pl.pallas_call(
        _stage3_kernel,
        grid=(m // tm,),
        in_specs=[
            pl.BlockSpec((tm, c2), lambda i: (i, 0)),
            pl.BlockSpec((c2, c3), lambda i: (0, 0)),
            pl.BlockSpec((1, c2), lambda i: (0, 0)),
            pl.BlockSpec((1, c2), lambda i: (0, 0)),
        ],
        out_specs=[
            pl.BlockSpec((tm, c3), lambda i: (i, 0)),
            pl.BlockSpec((1, c3), lambda i: (0, 0)),
            pl.BlockSpec((1, c3), lambda i: (0, 0)),
        ],
        out_shape=[
            jax.ShapeDtypeStruct((m, c3), jnp.bfloat16),
            jax.ShapeDtypeStruct((1, c3), jnp.float32),
            jax.ShapeDtypeStruct((1, c3), jnp.float32),
        ],
        compiler_params=_cparams(("arbitrary",)),
        cost_estimate=pl.CostEstimate(
            flops=flops, transcendentals=0, bytes_accessed=bytes_acc),
    )(y2, w3, scale2, shift2)


# ---------------------------------------------------------------------------
# Kernel 4: BN3 affine + shortcut-BN affine + residual add + ReLU.
#           Fully parallel over row tiles (megacore-shardable).
# ---------------------------------------------------------------------------
def _finalize_kernel(y3_ref, sr_ref, sc3_ref, sh3_ref, scs_ref, shs_ref, o_ref):
    y = y3_ref[...].astype(jnp.float32) * sc3_ref[...] + sh3_ref[...]
    s = sr_ref[...].astype(jnp.float32) * scs_ref[...] + shs_ref[...]
    o_ref[...] = jnp.maximum(y + s, 0.0)


def finalize(y3, sr, scale3, shift3, scales, shifts, *, row_tile):
    m, c3 = y3.shape
    tm = _pick_row_tile(m, row_tile)
    bytes_acc = int((y3.size + sr.size) * 2 + (m * c3 + 4 * c3) * 4)
    return pl.pallas_call(
        _finalize_kernel,
        grid=(m // tm,),
        in_specs=[
            pl.BlockSpec((tm, c3), lambda i: (i, 0)),
            pl.BlockSpec((tm, c3), lambda i: (i, 0)),
            pl.BlockSpec((1, c3), lambda i: (0, 0)),
            pl.BlockSpec((1, c3), lambda i: (0, 0)),
            pl.BlockSpec((1, c3), lambda i: (0, 0)),
            pl.BlockSpec((1, c3), lambda i: (0, 0)),
        ],
        out_specs=pl.BlockSpec((tm, c3), lambda i: (i, 0)),
        out_shape=jax.ShapeDtypeStruct((m, c3), jnp.float32),
        compiler_params=_cparams(("parallel",)),
        cost_estimate=pl.CostEstimate(
            flops=6 * m * c3, transcendentals=0, bytes_accessed=bytes_acc),
    )(y3, sr, scale3, shift3, scales, shifts)


# ---------------------------------------------------------------------------
# Parameters (padded to the lane width, matmul layout, bf16 weights)
# ---------------------------------------------------------------------------
def make_params(key, in_planes, planes, stride, expansion=4):
    ks = jax.random.split(key, 6)
    cin, c1, c3 = in_planes, planes, expansion * planes
    cin_p, c1_p, c3_p = _round_up(cin, LANE), _round_up(c1, LANE), _round_up(c3, LANE)

    def pad2(mat, rows, cols):
        return _pad_axis(_pad_axis(mat, 0, rows), 1, cols)

    # conv weights in PyTorch layout (out, in, kh, kw) -> matmul layout (in, out)
    w1 = jax.random.normal(ks[0], (c1, cin, 1, 1), jnp.float32) * 0.1
    w2 = jax.random.normal(ks[1], (c1, c1, 3, 3), jnp.float32) * 0.1
    w3 = jax.random.normal(ks[2], (c3, c1, 1, 1), jnp.float32) * 0.1

    p = {
        "w1": pad2(w1[:, :, 0, 0].T, cin_p, c1_p).astype(jnp.bfloat16),
        # (kh, kw, in, out) -> (9, in, out); tap index t = ki*3 + kj
        "w2": _pad_axis(_pad_axis(
            jnp.transpose(w2, (2, 3, 1, 0)).reshape(9, c1, c1), 1, c1_p), 2, c1_p
        ).astype(jnp.bfloat16),
        "w3": pad2(w3[:, :, 0, 0].T, c1_p, c3_p).astype(jnp.bfloat16),
        "g1": _pad_axis(jnp.ones((1, c1), jnp.float32), 1, c1_p),
        "b1": _pad_axis(jnp.zeros((1, c1), jnp.float32), 1, c1_p),
        "g2": _pad_axis(jnp.ones((1, c1), jnp.float32), 1, c1_p),
        "b2": _pad_axis(jnp.zeros((1, c1), jnp.float32), 1, c1_p),
        "g3": _pad_axis(1.0 + 0.1 * jax.random.normal(ks[4], (1, c3), jnp.float32), 1, c3_p),
        "b3": _pad_axis(0.1 * jax.random.normal(ks[5], (1, c3), jnp.float32), 1, c3_p),
    }
    if (stride != 1) or (in_planes != c3):
        ws = jax.random.normal(ks[3], (c3, cin, 1, 1), jnp.float32) * 0.1
        p["ws"] = pad2(ws[:, :, 0, 0].T, cin_p, c3_p).astype(jnp.bfloat16)
        p["gs"] = _pad_axis(jnp.ones((1, c3), jnp.float32), 1, c3_p)
        p["bs"] = _pad_axis(jnp.zeros((1, c3), jnp.float32), 1, c3_p)
    return p


# ---------------------------------------------------------------------------
# Forward pass
# ---------------------------------------------------------------------------
def custom_bottleneck_forward_nhwc(x_nhwc, params, *, in_planes, planes, stride,
                                   expansion=4, row_tile=512):
    n, h, w, cin = x_nhwc.shape
    assert cin == in_planes
    c1, c3 = planes, expansion * planes
    cin_p, c1_p, c3_p = _round_up(cin, LANE), _round_up(c1, LANE), _round_up(c3, LANE)

    # one-time lane-padding + bf16 cast at the boundary
    xp = _pad_axis(x_nhwc, 3, cin_p).astype(jnp.bfloat16)     # (N, H, W, cin_p)
    m1 = n * h * w
    x_flat = xp.reshape(m1, cin_p)

    # --- stage 1: 1x1 conv + BN1 stats (two-pass BN, pass 1) ----------------
    y1, s1, q1 = conv1x1_stats(x_flat, params["w1"], row_tile=row_tile)
    scale1, shift1 = _bn_affine(s1, q1, params["g1"], params["b1"], m1)

    # --- stage 2: BN1+ReLU folded in, 3x3 conv with on-chip im2col ----------
    y1_img = y1.reshape(n, h, w, c1_p)
    y2, s2, q2, ho, wo = conv3x3_stats(y1_img, params["w2"], scale1, shift1, stride=stride)
    m2 = n * ho * wo
    scale2, shift2 = _bn_affine(s2, q2, params["g2"], params["b2"], m2)

    # --- stage 3 (+ shortcut conv fused) -------------------------------------
    has_shortcut = (stride != 1) or (in_planes != c3)
    if has_shortcut:
        x_s = xp[:, ::stride, ::stride, :].reshape(m2, cin_p)
        y3, sr, s3, q3, ss, qs = stage3_shortcut(
            y2, x_s, params["w3"], params["ws"], scale2, shift2, row_tile=row_tile)
        scale3, shift3 = _bn_affine(s3, q3, params["g3"], params["b3"], m2)
        scales, shifts = _bn_affine(ss, qs, params["gs"], params["bs"], m2)
    else:
        y3, s3, q3 = stage3(y2, params["w3"], scale2, shift2, row_tile=row_tile)
        scale3, shift3 = _bn_affine(s3, q3, params["g3"], params["b3"], m2)
        sr = x_flat                                   # identity shortcut (no BN)
        scales = jnp.ones((1, c3_p), jnp.float32)
        shifts = jnp.zeros((1, c3_p), jnp.float32)

    # --- finalize: BN3/BN_s affine + residual add + ReLU ---------------------
    out = finalize(y3, sr, scale3, shift3, scales, shifts, row_tile=row_tile)
    return out[:, :c3].reshape(n, ho, wo, c3)


def custom_bottleneck_forward(x_nchw, params, *, in_planes, planes, stride,
                              expansion=4, row_tile=512):
    """PyTorch-parity NCHW boundary (NHWC is the kernels' native layout)."""
    x_nhwc = jnp.transpose(x_nchw, (0, 2, 3, 1))
    out = custom_bottleneck_forward_nhwc(
        x_nhwc, params, in_planes=in_planes, planes=planes, stride=stride,
        expansion=expansion, row_tile=row_tile)
    return jnp.transpose(out, (0, 3, 1, 2))


# ---------------------------------------------------------------------------
# Pure-JAX reference mirroring the kernels' precision policy (bf16 MXU inputs,
# f32 statistics / elementwise math) — used for a tight correctness check.
# ---------------------------------------------------------------------------
def _bf16(v):
    return v.astype(jnp.bfloat16)


def _f32(v):
    return v.astype(jnp.float32)


def reference_forward(x_nchw, params, *, in_planes, planes, stride, expansion=4):
    n, cin, h, w = x_nchw.shape
    c1, c3 = planes, expansion * planes
    cin_p, c1_p, c3_p = _round_up(cin, LANE), _round_up(c1, LANE), _round_up(c3, LANE)

    x = jnp.transpose(x_nchw, (0, 2, 3, 1))
    xp = _bf16(_pad_axis(x, 3, cin_p))
    m1 = n * h * w
    x_flat = xp.reshape(m1, cin_p)

    # stage 1
    y1 = jnp.dot(x_flat, params["w1"], preferred_element_type=jnp.float32)
    sc1, sh1 = _bn_affine(jnp.sum(y1, 0, keepdims=True),
                          jnp.sum(y1 * y1, 0, keepdims=True),
                          params["g1"], params["b1"], m1)
    a1 = jnp.maximum(_f32(_bf16(y1)) * sc1 + sh1, 0.0).reshape(n, h, w, c1_p)

    # stage 2 (3x3, pad=1, stride)
    ho = (h - 1) // stride + 1
    wo = (w - 1) // stride + 1
    m2 = n * ho * wo
    ap = jnp.pad(a1, ((0, 0), (1, 1), (1, 1), (0, 0)))
    y2 = jnp.zeros((m2, c1_p), jnp.float32)
    for t in range(9):
        ki, kj = t // 3, t % 3
        tap = ap[:, ki:ki + stride * (ho - 1) + 1:stride,
                 kj:kj + stride * (wo - 1) + 1:stride, :]
        y2 = y2 + jnp.dot(_bf16(tap.reshape(m2, c1_p)), params["w2"][t],
                          preferred_element_type=jnp.float32)
    sc2, sh2 = _bn_affine(jnp.sum(y2, 0, keepdims=True),
                          jnp.sum(y2 * y2, 0, keepdims=True),
                          params["g2"], params["b2"], m2)
    a2 = jnp.maximum(_f32(_bf16(y2)) * sc2 + sh2, 0.0)

    # stage 3 + shortcut
    y3 = jnp.dot(_bf16(a2), params["w3"], preferred_element_type=jnp.float32)
    sc3, sh3 = _bn_affine(jnp.sum(y3, 0, keepdims=True),
                          jnp.sum(y3 * y3, 0, keepdims=True),
                          params["g3"], params["b3"], m2)
    if (stride != 1) or (in_planes != c3):
        x_s = xp[:, ::stride, ::stride, :].reshape(m2, cin_p)
        sr = jnp.dot(x_s, params["ws"], preferred_element_type=jnp.float32)
        scs, shs = _bn_affine(jnp.sum(sr, 0, keepdims=True),
                              jnp.sum(sr * sr, 0, keepdims=True),
                              params["gs"], params["bs"], m2)
        short = _f32(_bf16(sr)) * scs + shs
    else:
        short = _f32(x_flat)
    out = jnp.maximum(_f32(_bf16(y3)) * sc3 + sh3 + short, 0.0)
    out = out[:, :c3].reshape(n, ho, wo, c3)
    return jnp.transpose(out, (0, 3, 1, 2))


# ---------------------------------------------------------------------------
if __name__ == "__main__":
    key = jax.random.PRNGKey(0)
    kx, kp = jax.random.split(key)

    N, IN_PLANES, H, W = 2, 4, 16, 16
    PLANES, STRIDE = 4, 2      # stride!=1 and in_planes != 4*planes -> conv shortcut

    x = jax.random.normal(kx, (N, IN_PLANES, H, W), jnp.float32)
    params = make_params(kp, IN_PLANES, PLANES, STRIDE)

    # row_tile=256 at these toy sizes so the M grid has >1 step and the
    # cross-tile BN-stat accumulation is actually exercised (use 512-1024 at
    # real ResNet sizes; small enough for v7x's 64 MiB VMEM either way).
    fwd = jax.jit(functools.partial(
        custom_bottleneck_forward,
        in_planes=IN_PLANES, planes=PLANES, stride=STRIDE, row_tile=256))

    out = jax.block_until_ready(fwd(x, params))

    ref = reference_forward(x, params, in_planes=IN_PLANES, planes=PLANES, stride=STRIDE)
    assert out.shape == (N, 4 * PLANES, H // STRIDE, W // STRIDE), out.shape
    max_err = float(jnp.max(jnp.abs(out - ref)))
    assert jnp.allclose(out, ref, rtol=2e-2, atol=2e-2), max_err

    print("KERNEL_OK")
</pallas_src>

<mosaic_0001>
module attributes {stable_mosaic.version = 11 : i64} {
  func.func @_conv1x1_stats_kernel(%arg0: i32, %arg1: memref<256x128xbf16, #tpu.memory_space<vmem>>, %arg2: memref<128x128xbf16, #tpu.memory_space<vmem>>, %arg3: memref<256x128xbf16, #tpu.memory_space<vmem>>, %arg4: memref<1x128xf32, #tpu.memory_space<vmem>>, %arg5: memref<1x128xf32, #tpu.memory_space<vmem>>) attributes {dimension_semantics = [#tpu.dimension_semantics<arbitrary>], iteration_bounds = array<i64: 2>, scalar_prefetch = 0 : i64, scratch_operands = 0 : i64, tpu.core_type = #tpu.core_type<tc>, window_params = [{transform_indices = @transform_0, window_bounds = array<i64: 256, 128>}, {pipeline_mode = #tpu.pipeline_mode<synchronous>, transform_indices = @transform_1, window_bounds = array<i64: 128, 128>}, {transform_indices = @transform_2, window_bounds = array<i64: 256, 128>}, {pipeline_mode = #tpu.pipeline_mode<synchronous>, transform_indices = @transform_3, window_bounds = array<i64: 1, 128>}, {pipeline_mode = #tpu.pipeline_mode<synchronous>, transform_indices = @transform_4, window_bounds = array<i64: 1, 128>}]} {
    %c0_i32 = arith.constant 0 : i32
    %0 = arith.cmpi eq, %arg0, %c0_i32 : i32
    %1 = arith.extui %0 : i1 to i32
    %c0_i32_0 = arith.constant 0 : i32
    %2 = arith.cmpi ne, %1, %c0_i32_0 : i32
    scf.if %2 {
      %cst_16 = arith.constant 0.000000e+00 : f32
      %19 = vector.broadcast %cst_16 : f32 to vector<1x128xf32>
      %c0_17 = arith.constant 0 : index
      %c0_18 = arith.constant 0 : index
      %20 = vector.load %arg4[%c0_17, %c0_18] : memref<1x128xf32, #tpu.memory_space<vmem>>, vector<1x128xf32>
      tpu.vector_store %arg4[%c0_17, %c0_18], %19 {strides = array<i32>} : memref<1x128xf32, #tpu.memory_space<vmem>>, vector<1x128xf32>,
      %cst_19 = arith.constant 0.000000e+00 : f32
      %21 = vector.broadcast %cst_19 : f32 to vector<1x128xf32>
      %c0_20 = arith.constant 0 : index
      %c0_21 = arith.constant 0 : index
      %22 = vector.load %arg5[%c0_20, %c0_21] : memref<1x128xf32, #tpu.memory_space<vmem>>, vector<1x128xf32>
      tpu.vector_store %arg5[%c0_20, %c0_21], %21 {strides = array<i32>} : memref<1x128xf32, #tpu.memory_space<vmem>>, vector<1x128xf32>,
    } else {
    }
    %c0 = arith.constant 0 : index
    %c0_1 = arith.constant 0 : index
    %3 = vector.load %arg1[%c0, %c0_1] : memref<256x128xbf16, #tpu.memory_space<vmem>>, vector<256x128xbf16>
    %c0_2 = arith.constant 0 : index
    %c0_3 = arith.constant 0 : index
    %4 = vector.load %arg2[%c0_2, %c0_3] : memref<128x128xbf16, #tpu.memory_space<vmem>>, vector<128x128xbf16>
    %cst = arith.constant dense<0.000000e+00> : vector<256x128xf32>
    %5 = tpu.matmul %3, %4, %cst {dimension_numbers = #tpu.dot_dimension_numbers<[1], [0], [0], [1], [0, 0, 1, 1], [], []>} : vector<256x128xbf16>, vector<128x128xbf16>, vector<256x128xf32> -> vector<256x128xf32>
    %6 = arith.truncf %5 : vector<256x128xf32> to vector<256x128xbf16>
    %c0_4 = arith.constant 0 : index
    %c0_5 = arith.constant 0 : index
    %7 = vector.load %arg3[%c0_4, %c0_5] : memref<256x128xbf16, #tpu.memory_space<vmem>>, vector<256x128xbf16>
    tpu.vector_store %arg3[%c0_4, %c0_5], %6 {strides = array<i32>} : memref<256x128xbf16, #tpu.memory_space<vmem>>, vector<256x128xbf16>,
    %c0_6 = arith.constant 0 : index
    %c0_7 = arith.constant 0 : index
    %8 = vector.load %arg4[%c0_6, %c0_7] : memref<1x128xf32, #tpu.memory_space<vmem>>, vector<1x128xf32>
    %cst_8 = arith.constant dense<0.000000e+00> : vector<128xf32>
    %9 = vector.multi_reduction <add>, %5, %cst_8 [0] : vector<256x128xf32> to vector<128xf32>
    %10 = vector.shape_cast %9 : vector<128xf32> to vector<1x128xf32>
    %11 = arith.addf %8, %10 : vector<1x128xf32>
    %c0_9 = arith.constant 0 : index
    %c0_10 = arith.constant 0 : index
    %12 = vector.load %arg4[%c0_9, %c0_10] : memref<1x128xf32, #tpu.memory_space<vmem>>, vector<1x128xf32>
    tpu.vector_store %arg4[%c0_9, %c0_10], %11 {strides = array<i32>} : memref<1x128xf32, #tpu.memory_space<vmem>>, vector<1x128xf32>,
    %c0_11 = arith.constant 0 : index
    %c0_12 = arith.constant 0 : index
    %13 = vector.load %arg5[%c0_11, %c0_12] : memref<1x128xf32, #tpu.memory_space<vmem>>, vector<1x128xf32>
    %14 = arith.mulf %5, %5 : vector<256x128xf32>
    %cst_13 = arith.constant dense<0.000000e+00> : vector<128xf32>
    %15 = vector.multi_reduction <add>, %14, %cst_13 [0] : vector<256x128xf32> to vector<128xf32>
    %16 = vector.shape_cast %15 : vector<128xf32> to vector<1x128xf32>
    %17 = arith.addf %13, %16 : vector<1x128xf32>
    %c0_14 = arith.constant 0 : index
    %c0_15 = arith.constant 0 : index
    %18 = vector.load %arg5[%c0_14, %c0_15] : memref<1x128xf32, #tpu.memory_space<vmem>>, vector<1x128xf32>
    tpu.vector_store %arg5[%c0_14, %c0_15], %17 {strides = array<i32>} : memref<1x128xf32, #tpu.memory_space<vmem>>, vector<1x128xf32>,
    return
  }
  func.func @transform_0(%arg0: i32) -> (i32, i32) {
    %c0_i32 = arith.constant 0 : i32
    %c0_i32_0 = arith.constant 0 : i32
    return %arg0, %c0_i32 : i32, i32
  }
  func.func @transform_1(%arg0: i32) -> (i32, i32) {
    %c0_i32 = arith.constant 0 : i32
    %c0_i32_0 = arith.constant 0 : i32
    %c0_i32_1 = arith.constant 0 : i32
    return %c0_i32, %c0_i32_0 : i32, i32
  }
  func.func @transform_2(%arg0: i32) -> (i32, i32) {
    %c0_i32 = arith.constant 0 : i32
    %c0_i32_0 = arith.constant 0 : i32
    return %arg0, %c0_i32 : i32, i32
  }
  func.func @transform_3(%arg0: i32) -> (i32, i32) {
    %c0_i32 = arith.constant 0 : i32
    %c0_i32_0 = arith.constant 0 : i32
    %c0_i32_1 = arith.constant 0 : i32
    return %c0_i32, %c0_i32_0 : i32, i32
  }
  func.func @transform_4(%arg0: i32) -> (i32, i32) {
    %c0_i32 = arith.constant 0 : i32
    %c0_i32_0 = arith.constant 0 : i32
    %c0_i32_1 = arith.constant 0 : i32
    return %c0_i32, %c0_i32_0 : i32, i32
  }
}

module attributes {stable_mosaic.version = 11 : i64} {
  func.func @_conv3x3_stats_kernel(%arg0: i32, %arg1: memref<1x16x16x128xbf16, #tpu.memory_space<vmem>>, %arg2: memref<9x128x128xbf16, #tpu.memory_space<vmem>>, %arg3: memref<1x128xf32, #tpu.memory_space<vmem>>, %arg4: memref<1x128xf32, #tpu.memory_space<vmem>>, %arg5: memref<1x64x128xbf16, #tpu.memory_space<vmem>>, %arg6: memref<1x128xf32, #tpu.memory_space<vmem>>, %arg7: memref<1x128xf32, #tpu.memory_space<vmem>>, %arg8: memref<18x18x128xf32, #tpu.memory_space<vmem>>) attributes {dimension_semantics = [#tpu.dimension_semantics<arbitrary>], iteration_bounds = array<i64: 2>, scalar_prefetch = 0 : i64, scratch_operands = 1 : i64, tpu.core_type = #tpu.core_type<tc>, window_params = [{transform_indices = @transform_0, window_bounds = array<i64: 1, 16, 16, 128>}, {pipeline_mode = #tpu.pipeline_mode<synchronous>, transform_indices = @transform_1, window_bounds = array<i64: 9, 128, 128>}, {pipeline_mode = #tpu.pipeline_mode<synchronous>, transform_indices = @transform_2, window_bounds = array<i64: 1, 128>}, {pipeline_mode = #tpu.pipeline_mode<synchronous>, transform_indices = @transform_3, window_bounds = array<i64: 1, 128>}, {transform_indices = @transform_4, window_bounds = array<i64: 1, 64, 128>}, {pipeline_mode = #tpu.pipeline_mode<synchronous>, transform_indices = @transform_5, window_bounds = array<i64: 1, 128>}, {pipeline_mode = #tpu.pipeline_mode<synchronous>, transform_indices = @transform_6, window_bounds = array<i64: 1, 128>}]} {
    %c0_i32 = arith.constant 0 : i32
    %0 = arith.cmpi eq, %arg0, %c0_i32 : i32
    %1 = arith.extui %0 : i1 to i32
    %c0_i32_0 = arith.constant 0 : i32
    %2 = arith.cmpi ne, %1, %c0_i32_0 : i32
    scf.if %2 {
      %cst_80 = arith.constant 0.000000e+00 : f32
      %96 = vector.broadcast %cst_80 : f32 to vector<1x128xf32>
      %c0_81 = arith.constant 0 : index
      %c0_82 = arith.constant 0 : index
      %97 = vector.load %arg6[%c0_81, %c0_82] : memref<1x128xf32, #tpu.memory_space<vmem>>, vector<1x128xf32>
      tpu.vector_store %arg6[%c0_81, %c0_82], %96 {strides = array<i32>} : memref<1x128xf32, #tpu.memory_space<vmem>>, vector<1x128xf32>,
      %cst_83 = arith.constant 0.000000e+00 : f32
      %98 = vector.broadcast %cst_83 : f32 to vector<1x128xf32>
      %c0_84 = arith.constant 0 : index
      %c0_85 = arith.constant 0 : index
      %99 = vector.load %arg7[%c0_84, %c0_85] : memref<1x128xf32, #tpu.memory_space<vmem>>, vector<1x128xf32>
      tpu.vector_store %arg7[%c0_84, %c0_85], %98 {strides = array<i32>} : memref<1x128xf32, #tpu.memory_space<vmem>>, vector<1x128xf32>,
      %cst_86 = arith.constant 0.000000e+00 : f32
      %100 = vector.broadcast %cst_86 : f32 to vector<18x18x128xf32>
      %c0_87 = arith.constant 0 : index
      %c0_88 = arith.constant 0 : index
      %c0_89 = arith.constant 0 : index
      %101 = vector.load %arg8[%c0_87, %c0_88, %c0_89] : memref<18x18x128xf32, #tpu.memory_space<vmem>>, vector<18x18x128xf32>
      tpu.vector_store %arg8[%c0_87, %c0_88, %c0_89], %100 {strides = array<i32>} : memref<18x18x128xf32, #tpu.memory_space<vmem>>, vector<18x18x128xf32>,
    } else {
    }
    %c0 = arith.constant 0 : index
    %c0_1 = arith.constant 0 : index
    %c0_2 = arith.constant 0 : index
    %c0_3 = arith.constant 0 : index
    %3 = vector.load %arg1[%c0, %c0_1, %c0_2, %c0_3] : memref<1x16x16x128xbf16, #tpu.memory_space<vmem>>, vector<1x16x16x128xbf16>
    %4 = vector.shape_cast %3 : vector<1x16x16x128xbf16> to vector<16x16x128xbf16>
    %5 = arith.extf %4 : vector<16x16x128xbf16> to vector<16x16x128xf32>
    %c0_4 = arith.constant 0 : index
    %c0_5 = arith.constant 0 : index
    %6 = vector.load %arg3[%c0_4, %c0_5] : memref<1x128xf32, #tpu.memory_space<vmem>>, vector<1x128xf32>
    %7 = vector.shape_cast %6 : vector<1x128xf32> to vector<1x1x128xf32>
    %8 = vector.broadcast %7 : vector<1x1x128xf32> to vector<16x16x128xf32>
    %9 = arith.mulf %5, %8 : vector<16x16x128xf32>
    %c0_6 = arith.constant 0 : index
    %c0_7 = arith.constant 0 : index
    %10 = vector.load %arg4[%c0_6, %c0_7] : memref<1x128xf32, #tpu.memory_space<vmem>>, vector<1x128xf32>
    %11 = vector.shape_cast %10 : vector<1x128xf32> to vector<1x1x128xf32>
    %12 = vector.broadcast %11 : vector<1x1x128xf32> to vector<16x16x128xf32>
    %13 = arith.addf %9, %12 : vector<16x16x128xf32>
    %cst = arith.constant 0.000000e+00 : f32
    %14 = vector.broadcast %cst : f32 to vector<16x16x128xf32>
    %15 = arith.maximumf %13, %14 : vector<16x16x128xf32>
    %c1 = arith.constant 1 : index
    %c1_8 = arith.constant 1 : index
    %c0_9 = arith.constant 0 : index
    %16 = vector.load %arg8[%c1, %c1_8, %c0_9] : memref<18x18x128xf32, #tpu.memory_space<vmem>>, vector<16x16x128xf32>
    tpu.vector_store %arg8[%c1, %c1_8, %c0_9], %15 {strides = array<i32>} : memref<18x18x128xf32, #tpu.memory_space<vmem>>, vector<16x16x128xf32>,
    %cst_10 = arith.constant 0.000000e+00 : f32
    %17 = vector.broadcast %cst_10 : f32 to vector<64x128xf32>
    %c0_11 = arith.constant 0 : index
    %c0_12 = arith.constant 0 : index
    %c0_13 = arith.constant 0 : index
    %18 = tpu.strided_load %arg8[%c0_11, %c0_12, %c0_13] {strides = array<i32: 2, 2, 1>} : memref<18x18x128xf32, #tpu.memory_space<vmem>>, vector<8x8x128xf32>
    %19 = vector.shape_cast %18 : vector<8x8x128xf32> to vector<64x128xf32>
    %20 = arith.truncf %19 : vector<64x128xf32> to vector<64x128xbf16>
    %c0_14 = arith.constant 0 : index
    %c0_15 = arith.constant 0 : index
    %c0_16 = arith.constant 0 : index
    %21 = vector.load %arg2[%c0_14, %c0_15, %c0_16] : memref<9x128x128xbf16, #tpu.memory_space<vmem>>, vector<1x128x128xbf16>
    %22 = vector.shape_cast %21 : vector<1x128x128xbf16> to vector<128x128xbf16>
    %cst_17 = arith.constant dense<0.000000e+00> : vector<64x128xf32>
    %23 = tpu.matmul %20, %22, %cst_17 {dimension_numbers = #tpu.dot_dimension_numbers<[1], [0], [0], [1], [0, 0, 1, 1], [], []>} : vector<64x128xbf16>, vector<128x128xbf16>, vector<64x128xf32> -> vector<64x128xf32>
    %24 = arith.addf %17, %23 : vector<64x128xf32>
    %c0_18 = arith.constant 0 : index
    %c1_19 = arith.constant 1 : index
    %c0_20 = arith.constant 0 : index
    %25 = tpu.strided_load %arg8[%c0_18, %c1_19, %c0_20] {strides = array<i32: 2, 2, 1>} : memref<18x18x128xf32, #tpu.memory_space<vmem>>, vector<8x8x128xf32>
    %26 = vector.shape_cast %25 : vector<8x8x128xf32> to vector<64x128xf32>
    %27 = arith.truncf %26 : vector<64x128xf32> to vector<64x128xbf16>
    %c1_21 = arith.constant 1 : index
    %c0_22 = arith.constant 0 : index
    %c0_23 = arith.constant 0 : index
    %28 = vector.load %arg2[%c1_21, %c0_22, %c0_23] : memref<9x128x128xbf16, #tpu.memory_space<vmem>>, vector<1x128x128xbf16>
    %29 = vector.shape_cast %28 : vector<1x128x128xbf16> to vector<128x128xbf16>
    %cst_24 = arith.constant dense<0.000000e+00> : vector<64x128xf32>
    %30 = tpu.matmul %27, %29, %cst_24 {dimension_numbers = #tpu.dot_dimension_numbers<[1], [0], [0], [1], [0, 0, 1, 1], [], []>} : vector<64x128xbf16>, vector<128x128xbf16>, vector<64x128xf32> -> vector<64x128xf32>
    %31 = arith.addf %24, %30 : vector<64x128xf32>
    %c0_25 = arith.constant 0 : index
    %c2 = arith.constant 2 : index
    %c0_26 = arith.constant 0 : index
    %32 = tpu.strided_load %arg8[%c0_25, %c2, %c0_26] {strides = array<i32: 2, 2, 1>} : memref<18x18x128xf32, #tpu.memory_space<vmem>>, vector<8x8x128xf32>
    %33 = vector.shape_cast %32 : vector<8x8x128xf32> to vector<64x128xf32>
    %34 = arith.truncf %33 : vector<64x128xf32> to vector<64x128xbf16>
    %c2_27 = arith.constant 2 : index
    %c0_28 = arith.constant 0 : index
    %c0_29 = arith.constant 0 : index
    %35 = vector.load %arg2[%c2_27, %c0_28, %c0_29] : memref<9x128x128xbf16, #tpu.memory_space<vmem>>, vector<1x128x128xbf16>
    %36 = vector.shape_cast %35 : vector<1x128x128xbf16> to vector<128x128xbf16>
    %cst_30 = arith.constant dense<0.000000e+00> : vector<64x128xf32>
    %37 = tpu.matmul %34, %36, %cst_30 {dimension_numbers = #tpu.dot_dimension_numbers<[1], [0], [0], [1], [0, 0, 1, 1], [], []>} : vector<64x128xbf16>, vector<128x128xbf16>, vector<64x128xf32> -> vector<64x128xf32>
    %38 = arith.addf %31, %37 : vector<64x128xf32>
    %c1_31 = arith.constant 1 : index
    %c0_32 = arith.constant 0 : index
    %c0_33 = arith.constant 0 : index
    %39 = tpu.strided_load %arg8[%c1_31, %c0_32, %c0_33] {strides = array<i32: 2, 2, 1>} : memref<18x18x128xf32, #tpu.memory_space<vmem>>, vector<8x8x128xf32>
    %40 = vector.shape_cast %39 : vector<8x8x128xf32> to vector<64x128xf32>
    %41 = arith.truncf %40 : vector<64x128xf32> to vector<64x128xbf16>
    %c3 = arith.constant 3 : index
    %c0_34 = arith.constant 0 : index
    %c0_35 = arith.constant 0 : index
    %42 = vector.load %arg2[%c3, %c0_34, %c0_35] : memref<9x128x128xbf16, #tpu.memory_space<vmem>>, vector<1x128x128xbf16>
    %43 = vector.shape_cast %42 : vector<1x128x128xbf16> to vector<128x128xbf16>
    %cst_36 = arith.constant dense<0.000000e+00> : vector<64x128xf32>
    %44 = tpu.matmul %41, %43, %cst_36 {dimension_numbers = #tpu.dot_dimension_numbers<[1], [0], [0], [1], [0, 0, 1, 1], [], []>} : vector<64x128xbf16>, vector<128x128xbf16>, vector<64x128xf32> -> vector<64x128xf32>
    %45 = arith.addf %38, %44 : vector<64x128xf32>
    %c1_37 = arith.constant 1 : index
    %c1_38 = arith.constant 1 : index
    %c0_39 = arith.constant 0 : index
    %46 = tpu.strided_load %arg8[%c1_37, %c1_38, %c0_39] {strides = array<i32: 2, 2, 1>} : memref<18x18x128xf32, #tpu.memory_space<vmem>>, vector<8x8x128xf32>
    %47 = vector.shape_cast %46 : vector<8x8x128xf32> to vector<64x128xf32>
    %48 = arith.truncf %47 : vector<64x128xf32> to vector<64x128xbf16>
    %c4 = arith.constant 4 : index
    %c0_40 = arith.constant 0 : index
    %c0_41 = arith.constant 0 : index
    %49 = vector.load %arg2[%c4, %c0_40, %c0_41] : memref<9x128x128xbf16, #tpu.memory_space<vmem>>, vector<1x128x128xbf16>
    %50 = vector.shape_cast %49 : vector<1x128x128xbf16> to vector<128x128xbf16>
    %cst_42 = arith.constant dense<0.000000e+00> : vector<64x128xf32>
    %51 = tpu.matmul %48, %50, %cst_42 {dimension_numbers = #tpu.dot_dimension_numbers<[1], [0], [0], [1], [0, 0, 1, 1], [], []>} : vector<64x128xbf16>, vector<128x128xbf16>, vector<64x128xf32> -> vector<64x128xf32>
    %52 = arith.addf %45, %51 : vector<64x128xf32>
    %c1_43 = arith.constant 1 : index
    %c2_44 = arith.constant 2 : index
    %c0_45 = arith.constant 0 : index
    %53 = tpu.strided_load %arg8[%c1_43, %c2_44, %c0_45] {strides = array<i32: 2, 2, 1>} : memref<18x18x128xf32, #tpu.memory_space<vmem>>, vector<8x8x128xf32>
    %54 = vector.shape_cast %53 : vector<8x8x128xf32> to vector<64x128xf32>
    %55 = arith.truncf %54 : vector<64x128xf32> to vector<64x128xbf16>
    %c5 = arith.constant 5 : index
    %c0_46 = arith.constant 0 : index
    %c0_47 = arith.constant 0 : index
    %56 = vector.load %arg2[%c5, %c0_46, %c0_47] : memref<9x128x128xbf16, #tpu.memory_space<vmem>>, vector<1x128x128xbf16>
    %57 = vector.shape_cast %56 : vector<1x128x128xbf16> to vector<128x128xbf16>
    %cst_48 = arith.constant dense<0.000000e+00> : vector<64x128xf32>
    %58 = tpu.matmul %55, %57, %cst_48 {dimension_numbers = #tpu.dot_dimension_numbers<[1], [0], [0], [1], [0, 0, 1, 1], [], []>} : vector<64x128xbf16>, vector<128x128xbf16>, vector<64x128xf32> -> vector<64x128xf32>
    %59 = arith.addf %52, %58 : vector<64x128xf32>
    %c2_49 = arith.constant 2 : index
    %c0_50 = arith.constant 0 : index
    %c0_51 = arith.constant 0 : index
    %60 = tpu.strided_load %arg8[%c2_49, %c0_50, %c0_51] {strides = array<i32: 2, 2, 1>} : memref<18x18x128xf32, #tpu.memory_space<vmem>>, vector<8x8x128xf32>
    %61 = vector.shape_cast %60 : vector<8x8x128xf32> to vector<64x128xf32>
    %62 = arith.truncf %61 : vector<64x128xf32> to vector<64x128xbf16>
    %c6 = arith.constant 6 : index
    %c0_52 = arith.constant 0 : index
    %c0_53 = arith.constant 0 : index
    %63 = vector.load %arg2[%c6, %c0_52, %c0_53] : memref<9x128x128xbf16, #tpu.memory_space<vmem>>, vector<1x128x128xbf16>
    %64 = vector.shape_cast %63 : vector<1x128x128xbf16> to vector<128x128xbf16>
    %cst_54 = arith.constant dense<0.000000e+00> : vector<64x128xf32>
    %65 = tpu.matmul %62, %64, %cst_54 {dimension_numbers = #tpu.dot_dimension_numbers<[1], [0], [0], [1], [0, 0, 1, 1], [], []>} : vector<64x128xbf16>, vector<128x128xbf16>, vector<64x128xf32> -> vector<64x128xf32>
    %66 = arith.addf %59, %65 : vector<64x128xf32>
    %c2_55 = arith.constant 2 : index
    %c1_56 = arith.constant 1 : index
    %c0_57 = arith.constant 0 : index
    %67 = tpu.strided_load %arg8[%c2_55, %c1_56, %c0_57] {strides = array<i32: 2, 2, 1>} : memref<18x18x128xf32, #tpu.memory_space<vmem>>, vector<8x8x128xf32>
    %68 = vector.shape_cast %67 : vector<8x8x128xf32> to vector<64x128xf32>
    %69 = arith.truncf %68 : vector<64x128xf32> to vector<64x128xbf16>
    %c7 = arith.constant 7 : index
    %c0_58 = arith.constant 0 : index
    %c0_59 = arith.constant 0 : index
    %70 = vector.load %arg2[%c7, %c0_58, %c0_59] : memref<9x128x128xbf16, #tpu.memory_space<vmem>>, vector<1x128x128xbf16>
    %71 = vector.shape_cast %70 : vector<1x128x128xbf16> to vector<128x128xbf16>
    %cst_60 = arith.constant dense<0.000000e+00> : vector<64x128xf32>
    %72 = tpu.matmul %69, %71, %cst_60 {dimension_numbers = #tpu.dot_dimension_numbers<[1], [0], [0], [1], [0, 0, 1, 1], [], []>} : vector<64x128xbf16>, vector<128x128xbf16>, vector<64x128xf32> -> vector<64x128xf32>
    %73 = arith.addf %66, %72 : vector<64x128xf32>
    %c2_61 = arith.constant 2 : index
    %c2_62 = arith.constant 2 : index
    %c0_63 = arith.constant 0 : index
    %74 = tpu.strided_load %arg8[%c2_61, %c2_62, %c0_63] {strides = array<i32: 2, 2, 1>} : memref<18x18x128xf32, #tpu.memory_space<vmem>>, vector<8x8x128xf32>
    %75 = vector.shape_cast %74 : vector<8x8x128xf32> to vector<64x128xf32>
    %76 = arith.truncf %75 : vector<64x128xf32> to vector<64x128xbf16>
    %c8 = arith.constant 8 : index
    %c0_64 = arith.constant 0 : index
    %c0_65 = arith.constant 0 : index
    %77 = vector.load %arg2[%c8, %c0_64, %c0_65] : memref<9x128x128xbf16, #tpu.memory_space<vmem>>, vector<1x128x128xbf16>
    %78 = vector.shape_cast %77 : vector<1x128x128xbf16> to vector<128x128xbf16>
    %cst_66 = arith.constant dense<0.000000e+00> : vector<64x128xf32>
    %79 = tpu.matmul %76, %78, %cst_66 {dimension_numbers = #tpu.dot_dimension_numbers<[1], [0], [0], [1], [0, 0, 1, 1], [], []>} : vector<64x128xbf16>, vector<128x128xbf16>, vector<64x128xf32> -> vector<64x128xf32>
    %80 = arith.addf %73, %79 : vector<64x128xf32>
    %81 = arith.truncf %80 : vector<64x128xf32> to vector<64x128xbf16>
    %c0_67 = arith.constant 0 : index
    %c0_68 = arith.constant 0 : index
    %c0_69 = arith.constant 0 : index
    %82 = vector.load %arg5[%c0_67, %c0_68, %c0_69] : memref<1x64x128xbf16, #tpu.memory_space<vmem>>, vector<1x64x128xbf16>
    %83 = vector.shape_cast %82 : vector<1x64x128xbf16> to vector<64x128xbf16>
    %84 = vector.shape_cast %81 : vector<64x128xbf16> to vector<1x64x128xbf16>
    tpu.vector_store %arg5[%c0_67, %c0_68, %c0_69], %84 {strides = array<i32>} : memref<1x64x128xbf16, #tpu.memory_space<vmem>>, vector<1x64x128xbf16>,
    %c0_70 = arith.constant 0 : index
    %c0_71 = arith.constant 0 : index
    %85 = vector.load %arg6[%c0_70, %c0_71] : memref<1x128xf32, #tpu.memory_space<vmem>>, vector<1x128xf32>
    %cst_72 = arith.constant dense<0.000000e+00> : vector<128xf32>
    %86 = vector.multi_reduction <add>, %80, %cst_72 [0] : vector<64x128xf32> to vector<128xf32>
    %87 = vector.shape_cast %86 : vector<128xf32> to vector<1x128xf32>
    %88 = arith.addf %85, %87 : vector<1x128xf32>
    %c0_73 = arith.constant 0 : index
    %c0_74 = arith.constant 0 : index
    %89 = vector.load %arg6[%c0_73, %c0_74] : memref<1x128xf32, #tpu.memory_space<vmem>>, vector<1x128xf32>
    tpu.vector_store %arg6[%c0_73, %c0_74], %88 {strides = array<i32>} : memref<1x128xf32, #tpu.memory_space<vmem>>, vector<1x128xf32>,
    %c0_75 = arith.constant 0 : index
    %c0_76 = arith.constant 0 : index
    %90 = vector.load %arg7[%c0_75, %c0_76] : memref<1x128xf32, #tpu.memory_space<vmem>>, vector<1x128xf32>
    %91 = arith.mulf %80, %80 : vector<64x128xf32>
    %cst_77 = arith.constant dense<0.000000e+00> : vector<128xf32>
    %92 = vector.multi_reduction <add>, %91, %cst_77 [0] : vector<64x128xf32> to vector<128xf32>
    %93 = vector.shape_cast %92 : vector<128xf32> to vector<1x128xf32>
    %94 = arith.addf %90, %93 : vector<1x128xf32>
    %c0_78 = arith.constant 0 : index
    %c0_79 = arith.constant 0 : index
    %95 = vector.load %arg7[%c0_78, %c0_79] : memref<1x128xf32, #tpu.memory_space<vmem>>, vector<1x128xf32>
    tpu.vector_store %arg7[%c0_78, %c0_79], %94 {strides = array<i32>} : memref<1x128xf32, #tpu.memory_space<vmem>>, vector<1x128xf32>,
    return
  }
  func.func @transform_0(%arg0: i32) -> (i32, i32, i32, i32) {
    %c0_i32 = arith.constant 0 : i32
    %c0_i32_0 = arith.constant 0 : i32
    %c0_i32_1 = arith.constant 0 : i32
    %c0_i32_2 = arith.constant 0 : i32
    return %arg0, %c0_i32, %c0_i32_0, %c0_i32_1 : i32, i32, i32, i32
  }
  func.func @transform_1(%arg0: i32) -> (i32, i32, i32) {
    %c0_i32 = arith.constant 0 : i32
    %c0_i32_0 = arith.constant 0 : i32
    %c0_i32_1 = arith.constant 0 : i32
    %c0_i32_2 = arith.constant 0 : i32
    return %c0_i32, %c0_i32_0, %c0_i32_1 : i32, i32, i32
  }
  func.func @transform_2(%arg0: i32) -> (i32, i32) {
    %c0_i32 = arith.constant 0 : i32
    %c0_i32_0 = arith.constant 0 : i32
    %c0_i32_1 = arith.constant 0 : i32
    return %c0_i32, %c0_i32_0 : i32, i32
  }
  func.func @transform_3(%arg0: i32) -> (i32, i32) {
    %c0_i32 = arith.constant 0 : i32
    %c0_i32_0 = arith.constant 0 : i32
    %c0_i32_1 = arith.constant 0 : i32
    return %c0_i32, %c0_i32_0 : i32, i32
  }
  func.func @transform_4(%arg0: i32) -> (i32, i32, i32) {
    %c0_i32 = arith.constant 0 : i32
    %c0_i32_0 = arith.constant 0 : i32
    %c0_i32_1 = arith.constant 0 : i32
    return %arg0, %c0_i32, %c0_i32_0 : i32, i32, i32
  }
  func.func @transform_5(%arg0: i32) -> (i32, i32) {
    %c0_i32 = arith.constant 0 : i32
    %c0_i32_0 = arith.constant 0 : i32
    %c0_i32_1 = arith.constant 0 : i32
    return %c0_i32, %c0_i32_0 : i32, i32
  }
  func.func @transform_6(%arg0: i32) -> (i32, i32) {
    %c0_i32 = arith.constant 0 : i32
    %c0_i32_0 = arith.constant 0 : i32
    %c0_i32_1 = arith.constant 0 : i32
    return %c0_i32, %c0_i32_0 : i32, i32
  }
}

module attributes {stable_mosaic.version = 11 : i64} {
  func.func @_stage3_shortcut_kernel(%arg0: i32, %arg1: memref<128x128xbf16, #tpu.memory_space<vmem>>, %arg2: memref<128x128xbf16, #tpu.memory_space<vmem>>, %arg3: memref<128x128xbf16, #tpu.memory_space<vmem>>, %arg4: memref<128x128xbf16, #tpu.memory_space<vmem>>, %arg5: memref<1x128xf32, #tpu.memory_space<vmem>>, %arg6: memref<1x128xf32, #tpu.memory_space<vmem>>, %arg7: memref<128x128xbf16, #tpu.memory_space<vmem>>, %arg8: memref<128x128xbf16, #tpu.memory_space<vmem>>, %arg9: memref<1x128xf32, #tpu.memory_space<vmem>>, %arg10: memref<1x128xf32, #tpu.memory_space<vmem>>, %arg11: memref<1x128xf32, #tpu.memory_space<vmem>>, %arg12: memref<1x128xf32, #tpu.memory_space<vmem>>) attributes {dimension_semantics = [#tpu.dimension_semantics<arbitrary>], iteration_bounds = array<i64: 1>, scalar_prefetch = 0 : i64, scratch_operands = 0 : i64, tpu.core_type = #tpu.core_type<tc>, window_params = [{transform_indices = @transform_0, window_bounds = array<i64: 128, 128>}, {transform_indices = @transform_1, window_bounds = array<i64: 128, 128>}, {pipeline_mode = #tpu.pipeline_mode<synchronous>, transform_indices = @transform_2, window_bounds = array<i64: 128, 128>}, {pipeline_mode = #tpu.pipeline_mode<synchronous>, transform_indices = @transform_3, window_bounds = array<i64: 128, 128>}, {pipeline_mode = #tpu.pipeline_mode<synchronous>, transform_indices = @transform_4, window_bounds = array<i64: 1, 128>}, {pipeline_mode = #tpu.pipeline_mode<synchronous>, transform_indices = @transform_5, window_bounds = array<i64: 1, 128>}, {transform_indices = @transform_6, window_bounds = array<i64: 128, 128>}, {transform_indices = @transform_7, window_bounds = array<i64: 128, 128>}, {pipeline_mode = #tpu.pipeline_mode<synchronous>, transform_indices = @transform_8, window_bounds = array<i64: 1, 128>}, {pipeline_mode = #tpu.pipeline_mode<synchronous>, transform_indices = @transform_9, window_bounds = array<i64: 1, 128>}, {pipeline_mode = #tpu.pipeline_mode<synchronous>, transform_indices = @transform_10, window_bounds = array<i64: 1, 128>}, {pipeline_mode = #tpu.pipeline_mode<synchronous>, transform_indices = @transform_11, window_bounds = array<i64: 1, 128>}]} {
    %c0_i32 = arith.constant 0 : i32
    %0 = arith.cmpi eq, %arg0, %c0_i32 : i32
    %1 = arith.extui %0 : i1 to i32
    %c0_i32_0 = arith.constant 0 : i32
    %2 = arith.cmpi ne, %1, %c0_i32_0 : i32
    scf.if %2 {
      %cst_38 = arith.constant 0.000000e+00 : f32
      %45 = vector.broadcast %cst_38 : f32 to vector<1x128xf32>
      %c0_39 = arith.constant 0 : index
      %c0_40 = arith.constant 0 : index
      %46 = vector.load %arg9[%c0_39, %c0_40] : memref<1x128xf32, #tpu.memory_space<vmem>>, vector<1x128xf32>
      tpu.vector_store %arg9[%c0_39, %c0_40], %45 {strides = array<i32>} : memref<1x128xf32, #tpu.memory_space<vmem>>, vector<1x128xf32>,
      %cst_41 = arith.constant 0.000000e+00 : f32
      %47 = vector.broadcast %cst_41 : f32 to vector<1x128xf32>
      %c0_42 = arith.constant 0 : index
      %c0_43 = arith.constant 0 : index
      %48 = vector.load %arg10[%c0_42, %c0_43] : memref<1x128xf32, #tpu.memory_space<vmem>>, vector<1x128xf32>
      tpu.vector_store %arg10[%c0_42, %c0_43], %47 {strides = array<i32>} : memref<1x128xf32, #tpu.memory_space<vmem>>, vector<1x128xf32>,
      %cst_44 = arith.constant 0.000000e+00 : f32
      %49 = vector.broadcast %cst_44 : f32 to vector<1x128xf32>
      %c0_45 = arith.constant 0 : index
      %c0_46 = arith.constant 0 : index
      %50 = vector.load %arg11[%c0_45, %c0_46] : memref<1x128xf32, #tpu.memory_space<vmem>>, vector<1x128xf32>
      tpu.vector_store %arg11[%c0_45, %c0_46], %49 {strides = array<i32>} : memref<1x128xf32, #tpu.memory_space<vmem>>, vector<1x128xf32>,
      %cst_47 = arith.constant 0.000000e+00 : f32
      %51 = vector.broadcast %cst_47 : f32 to vector<1x128xf32>
      %c0_48 = arith.constant 0 : index
      %c0_49 = arith.constant 0 : index
      %52 = vector.load %arg12[%c0_48, %c0_49] : memref<1x128xf32, #tpu.memory_space<vmem>>, vector<1x128xf32>
      tpu.vector_store %arg12[%c0_48, %c0_49], %51 {strides = array<i32>} : memref<1x128xf32, #tpu.memory_space<vmem>>, vector<1x128xf32>,
    } else {
    }
    %c0 = arith.constant 0 : index
    %c0_1 = arith.constant 0 : index
    %3 = vector.load %arg1[%c0, %c0_1] : memref<128x128xbf16, #tpu.memory_space<vmem>>, vector<128x128xbf16>
    %4 = arith.extf %3 : vector<128x128xbf16> to vector<128x128xf32>
    %c0_2 = arith.constant 0 : index
    %c0_3 = arith.constant 0 : index
    %5 = vector.load %arg5[%c0_2, %c0_3] : memref<1x128xf32, #tpu.memory_space<vmem>>, vector<1x128xf32>
    %6 = vector.broadcast %5 : vector<1x128xf32> to vector<128x128xf32>
    %7 = arith.mulf %4, %6 : vector<128x128xf32>
    %c0_4 = arith.constant 0 : index
    %c0_5 = arith.constant 0 : index
    %8 = vector.load %arg6[%c0_4, %c0_5] : memref<1x128xf32, #tpu.memory_space<vmem>>, vector<1x128xf32>
    %9 = vector.broadcast %8 : vector<1x128xf32> to vector<128x128xf32>
    %10 = arith.addf %7, %9 : vector<128x128xf32>
    %cst = arith.constant 0.000000e+00 : f32
    %11 = vector.broadcast %cst : f32 to vector<128x128xf32>
    %12 = arith.maximumf %10, %11 : vector<128x128xf32>
    %13 = arith.truncf %12 : vector<128x128xf32> to vector<128x128xbf16>
    %c0_6 = arith.constant 0 : index
    %c0_7 = arith.constant 0 : index
    %14 = vector.load %arg3[%c0_6, %c0_7] : memref<128x128xbf16, #tpu.memory_space<vmem>>, vector<128x128xbf16>
    %cst_8 = arith.constant dense<0.000000e+00> : vector<128x128xf32>
    %15 = tpu.matmul %13, %14, %cst_8 {dimension_numbers = #tpu.dot_dimension_numbers<[1], [0], [0], [1], [0, 0, 1, 1], [], []>} : vector<128x128xbf16>, vector<128x128xbf16>, vector<128x128xf32> -> vector<128x128xf32>
    %c0_9 = arith.constant 0 : index
    %c0_10 = arith.constant 0 : index
    %16 = vector.load %arg2[%c0_9, %c0_10] : memref<128x128xbf16, #tpu.memory_space<vmem>>, vector<128x128xbf16>
    %c0_11 = arith.constant 0 : index
    %c0_12 = arith.constant 0 : index
    %17 = vector.load %arg4[%c0_11, %c0_12] : memref<128x128xbf16, #tpu.memory_space<vmem>>, vector<128x128xbf16>
    %cst_13 = arith.constant dense<0.000000e+00> : vector<128x128xf32>
    %18 = tpu.matmul %16, %17, %cst_13 {dimension_numbers = #tpu.dot_dimension_numbers<[1], [0], [0], [1], [0, 0, 1, 1], [], []>} : vector<128x128xbf16>, vector<128x128xbf16>, vector<128x128xf32> -> vector<128x128xf32>
    %19 = arith.truncf %15 : vector<128x128xf32> to vector<128x128xbf16>
    %c0_14 = arith.constant 0 : index
    %c0_15 = arith.constant 0 : index
    %20 = vector.load %arg7[%c0_14, %c0_15] : memref<128x128xbf16, #tpu.memory_space<vmem>>, vector<128x128xbf16>
    tpu.vector_store %arg7[%c0_14, %c0_15], %19 {strides = array<i32>} : memref<128x128xbf16, #tpu.memory_space<vmem>>, vector<128x128xbf16>,
    %21 = arith.truncf %18 : vector<128x128xf32> to vector<128x128xbf16>
    %c0_16 = arith.constant 0 : index
    %c0_17 = arith.constant 0 : index
    %22 = vector.load %arg8[%c0_16, %c0_17] : memref<128x128xbf16, #tpu.memory_space<vmem>>, vector<128x128xbf16>
    tpu.vector_store %arg8[%c0_16, %c0_17], %21 {strides = array<i32>} : memref<128x128xbf16, #tpu.memory_space<vmem>>, vector<128x128xbf16>,
    %c0_18 = arith.constant 0 : index
    %c0_19 = arith.constant 0 : index
    %23 = vector.load %arg9[%c0_18, %c0_19] : memref<1x128xf32, #tpu.memory_space<vmem>>, vector<1x128xf32>
    %cst_20 = arith.constant dense<0.000000e+00> : vector<128xf32>
    %24 = vector.multi_reduction <add>, %15, %cst_20 [0] : vector<128x128xf32> to vector<128xf32>
    %25 = vector.shape_cast %24 : vector<128xf32> to vector<1x128xf32>
    %26 = arith.addf %23, %25 : vector<1x128xf32>
    %c0_21 = arith.constant 0 : index
    %c0_22 = arith.constant 0 : index
    %27 = vector.load %arg9[%c0_21, %c0_22] : memref<1x128xf32, #tpu.memory_space<vmem>>, vector<1x128xf32>
    tpu.vector_store %arg9[%c0_21, %c0_22], %26 {strides = array<i32>} : memref<1x128xf32, #tpu.memory_space<vmem>>, vector<1x128xf32>,
    %c0_23 = arith.constant 0 : index
    %c0_24 = arith.constant 0 : index
    %28 = vector.load %arg10[%c0_23, %c0_24] : memref<1x128xf32, #tpu.memory_space<vmem>>, vector<1x128xf32>
    %29 = arith.mulf %15, %15 : vector<128x128xf32>
    %cst_25 = arith.constant dense<0.000000e+00> : vector<128xf32>
    %30 = vector.multi_reduction <add>, %29, %cst_25 [0] : vector<128x128xf32> to vector<128xf32>
    %31 = vector.shape_cast %30 : vector<128xf32> to vector<1x128xf32>
    %32 = arith.addf %28, %31 : vector<1x128xf32>
    %c0_26 = arith.constant 0 : index
    %c0_27 = arith.constant 0 : index
    %33 = vector.load %arg10[%c0_26, %c0_27] : memref<1x128xf32, #tpu.memory_space<vmem>>, vector<1x128xf32>
    tpu.vector_store %arg10[%c0_26, %c0_27], %32 {strides = array<i32>} : memref<1x128xf32, #tpu.memory_space<vmem>>, vector<1x128xf32>,
    %c0_28 = arith.constant 0 : index
    %c0_29 = arith.constant 0 : index
    %34 = vector.load %arg11[%c0_28, %c0_29] : memref<1x128xf32, #tpu.memory_space<vmem>>, vector<1x128xf32>
    %cst_30 = arith.constant dense<0.000000e+00> : vector<128xf32>
    %35 = vector.multi_reduction <add>, %18, %cst_30 [0] : vector<128x128xf32> to vector<128xf32>
    %36 = vector.shape_cast %35 : vector<128xf32> to vector<1x128xf32>
    %37 = arith.addf %34, %36 : vector<1x128xf32>
    %c0_31 = arith.constant 0 : index
    %c0_32 = arith.constant 0 : index
    %38 = vector.load %arg11[%c0_31, %c0_32] : memref<1x128xf32, #tpu.memory_space<vmem>>, vector<1x128xf32>
    tpu.vector_store %arg11[%c0_31, %c0_32], %37 {strides = array<i32>} : memref<1x128xf32, #tpu.memory_space<vmem>>, vector<1x128xf32>,
    %c0_33 = arith.constant 0 : index
    %c0_34 = arith.constant 0 : index
    %39 = vector.load %arg12[%c0_33, %c0_34] : memref<1x128xf32, #tpu.memory_space<vmem>>, vector<1x128xf32>
    %40 = arith.mulf %18, %18 : vector<128x128xf32>
    %cst_35 = arith.constant dense<0.000000e+00> : vector<128xf32>
    %41 = vector.multi_reduction <add>, %40, %cst_35 [0] : vector<128x128xf32> to vector<128xf32>
    %42 = vector.shape_cast %41 : vector<128xf32> to vector<1x128xf32>
    %43 = arith.addf %39, %42 : vector<1x128xf32>
    %c0_36 = arith.constant 0 : index
    %c0_37 = arith.constant 0 : index
    %44 = vector.load %arg12[%c0_36, %c0_37] : memref<1x128xf32, #tpu.memory_space<vmem>>, vector<1x128xf32>
    tpu.vector_store %arg12[%c0_36, %c0_37], %43 {strides = array<i32>} : memref<1x128xf32, #tpu.memory_space<vmem>>, vector<1x128xf32>,
    return
  }
  func.func @transform_0(%arg0: i32) -> (i32, i32) {
    %c0_i32 = arith.constant 0 : i32
    %c0_i32_0 = arith.constant 0 : i32
    return %arg0, %c0_i32 : i32, i32
  }
  func.func @transform_1(%arg0: i32) -> (i32, i32) {
    %c0_i32 = arith.constant 0 : i32
    %c0_i32_0 = arith.constant 0 : i32
    return %arg0, %c0_i32 : i32, i32
  }
  func.func @transform_2(%arg0: i32) -> (i32, i32) {
    %c0_i32 = arith.constant 0 : i32
    %c0_i32_0 = arith.constant 0 : i32
    %c0_i32_1 = arith.constant 0 : i32
    return %c0_i32, %c0_i32_0 : i32, i32
  }
  func.func @transform_3(%arg0: i32) -> (i32, i32) {
    %c0_i32 = arith.constant 0 : i32
    %c0_i32_0 = arith.constant 0 : i32
    %c0_i32_1 = arith.constant 0 : i32
    return %c0_i32, %c0_i32_0 : i32, i32
  }
  func.func @transform_4(%arg0: i32) -> (i32, i32) {
    %c0_i32 = arith.constant 0 : i32
    %c0_i32_0 = arith.constant 0 : i32
    %c0_i32_1 = arith.constant 0 : i32
    return %c0_i32, %c0_i32_0 : i32, i32
  }
  func.func @transform_5(%arg0: i32) -> (i32, i32) {
    %c0_i32 = arith.constant 0 : i32
    %c0_i32_0 = arith.constant 0 : i32
    %c0_i32_1 = arith.constant 0 : i32
    return %c0_i32, %c0_i32_0 : i32, i32
  }
  func.func @transform_6(%arg0: i32) -> (i32, i32) {
    %c0_i32 = arith.constant 0 : i32
    %c0_i32_0 = arith.constant 0 : i32
    return %arg0, %c0_i32 : i32, i32
  }
  func.func @transform_7(%arg0: i32) -> (i32, i32) {
    %c0_i32 = arith.constant 0 : i32
    %c0_i32_0 = arith.constant 0 : i32
    return %arg0, %c0_i32 : i32, i32
  }
  func.func @transform_8(%arg0: i32) -> (i32, i32) {
    %c0_i32 = arith.constant 0 : i32
    %c0_i32_0 = arith.constant 0 : i32
    %c0_i32_1 = arith.constant 0 : i32
    return %c0_i32, %c0_i32_0 : i32, i32
  }
  func.func @transform_9(%arg0: i32) -> (i32, i32) {
    %c0_i32 = arith.constant 0 : i32
    %c0_i32_0 = arith.constant 0 : i32
    %c0_i32_1 = arith.constant 0 : i32
    return %c0_i32, %c0_i32_0 : i32, i32
  }
  func.func @transform_10(%arg0: i32) -> (i32, i32) {
    %c0_i32 = arith.constant 0 : i32
    %c0_i32_0 = arith.constant 0 : i32
    %c0_i32_1 = arith.constant 0 : i32
    return %c0_i32, %c0_i32_0 : i32, i32
  }
  func.func @transform_11(%arg0: i32) -> (i32, i32) {
    %c0_i32 = arith.constant 0 : i32
    %c0_i32_0 = arith.constant 0 : i32
    %c0_i32_1 = arith.constant 0 : i32
    return %c0_i32, %c0_i32_0 : i32, i32
  }
}

module attributes {stable_mosaic.version = 11 : i64} {
  func.func @_finalize_kernel(%arg0: i32, %arg1: memref<128x128xbf16, #tpu.memory_space<vmem>>, %arg2: memref<128x128xbf16, #tpu.memory_space<vmem>>, %arg3: memref<1x128xf32, #tpu.memory_space<vmem>>, %arg4: memref<1x128xf32, #tpu.memory_space<vmem>>, %arg5: memref<1x128xf32, #tpu.memory_space<vmem>>, %arg6: memref<1x128xf32, #tpu.memory_space<vmem>>, %arg7: memref<128x128xf32, #tpu.memory_space<vmem>>) attributes {dimension_semantics = [#tpu.dimension_semantics<parallel>], iteration_bounds = array<i64: 1>, scalar_prefetch = 0 : i64, scratch_operands = 0 : i64, tpu.core_type = #tpu.core_type<tc>, window_params = [{transform_indices = @transform_0, window_bounds = array<i64: 128, 128>}, {transform_indices = @transform_1, window_bounds = array<i64: 128, 128>}, {pipeline_mode = #tpu.pipeline_mode<synchronous>, transform_indices = @transform_2, window_bounds = array<i64: 1, 128>}, {pipeline_mode = #tpu.pipeline_mode<synchronous>, transform_indices = @transform_3, window_bounds = array<i64: 1, 128>}, {pipeline_mode = #tpu.pipeline_mode<synchronous>, transform_indices = @transform_4, window_bounds = array<i64: 1, 128>}, {pipeline_mode = #tpu.pipeline_mode<synchronous>, transform_indices = @transform_5, window_bounds = array<i64: 1, 128>}, {transform_indices = @transform_6, window_bounds = array<i64: 128, 128>}]} {
    %c0 = arith.constant 0 : index
    %c0_0 = arith.constant 0 : index
    %0 = vector.load %arg1[%c0, %c0_0] : memref<128x128xbf16, #tpu.memory_space<vmem>>, vector<128x128xbf16>
    %1 = arith.extf %0 : vector<128x128xbf16> to vector<128x128xf32>
    %c0_1 = arith.constant 0 : index
    %c0_2 = arith.constant 0 : index
    %2 = vector.load %arg3[%c0_1, %c0_2] : memref<1x128xf32, #tpu.memory_space<vmem>>, vector<1x128xf32>
    %3 = vector.broadcast %2 : vector<1x128xf32> to vector<128x128xf32>
    %4 = arith.mulf %1, %3 : vector<128x128xf32>
    %c0_3 = arith.constant 0 : index
    %c0_4 = arith.constant 0 : index
    %5 = vector.load %arg4[%c0_3, %c0_4] : memref<1x128xf32, #tpu.memory_space<vmem>>, vector<1x128xf32>
    %6 = vector.broadcast %5 : vector<1x128xf32> to vector<128x128xf32>
    %7 = arith.addf %4, %6 : vector<128x128xf32>
    %c0_5 = arith.constant 0 : index
    %c0_6 = arith.constant 0 : index
    %8 = vector.load %arg2[%c0_5, %c0_6] : memref<128x128xbf16, #tpu.memory_space<vmem>>, vector<128x128xbf16>
    %9 = arith.extf %8 : vector<128x128xbf16> to vector<128x128xf32>
    %c0_7 = arith.constant 0 : index
    %c0_8 = arith.constant 0 : index
    %10 = vector.load %arg5[%c0_7, %c0_8] : memref<1x128xf32, #tpu.memory_space<vmem>>, vector<1x128xf32>
    %11 = vector.broadcast %10 : vector<1x128xf32> to vector<128x128xf32>
    %12 = arith.mulf %9, %11 : vector<128x128xf32>
    %c0_9 = arith.constant 0 : index
    %c0_10 = arith.constant 0 : index
    %13 = vector.load %arg6[%c0_9, %c0_10] : memref<1x128xf32, #tpu.memory_space<vmem>>, vector<1x128xf32>
    %14 = vector.broadcast %13 : vector<1x128xf32> to vector<128x128xf32>
    %15 = arith.addf %12, %14 : vector<128x128xf32>
    %16 = arith.addf %7, %15 : vector<128x128xf32>
    %cst = arith.constant 0.000000e+00 : f32
    %17 = vector.broadcast %cst : f32 to vector<128x128xf32>
    %18 = arith.maximumf %16, %17 : vector<128x128xf32>
    %c0_11 = arith.constant 0 : index
    %c0_12 = arith.constant 0 : index
    %19 = vector.load %arg7[%c0_11, %c0_12] : memref<128x128xf32, #tpu.memory_space<vmem>>, vector<128x128xf32>
    tpu.vector_store %arg7[%c0_11, %c0_12], %18 {strides = array<i32>} : memref<128x128xf32, #tpu.memory_space<vmem>>, vector<128x128xf32>,
    return
  }
  func.func @transform_0(%arg0: i32) -> (i32, i32) {
    %c0_i32 = arith.constant 0 : i32
    %c0_i32_0 = arith.constant 0 : i32
    return %arg0, %c0_i32 : i32, i32
  }
  func.func @transform_1(%arg0: i32) -> (i32, i32) {
    %c0_i32 = arith.constant 0 : i32
    %c0_i32_0 = arith.constant 0 : i32
    return %arg0, %c0_i32 : i32, i32
  }
  func.func @transform_2(%arg0: i32) -> (i32, i32) {
    %c0_i32 = arith.constant 0 : i32
    %c0_i32_0 = arith.constant 0 : i32
    %c0_i32_1 = arith.constant 0 : i32
    return %c0_i32, %c0_i32_0 : i32, i32
  }
  func.func @transform_3(%arg0: i32) -> (i32, i32) {
    %c0_i32 = arith.constant 0 : i32
    %c0_i32_0 = arith.constant 0 : i32
    %c0_i32_1 = arith.constant 0 : i32
    return %c0_i32, %c0_i32_0 : i32, i32
  }
  func.func @transform_4(%arg0: i32) -> (i32, i32) {
    %c0_i32 = arith.constant 0 : i32
    %c0_i32_0 = arith.constant 0 : i32
    %c0_i32_1 = arith.constant 0 : i32
    return %c0_i32, %c0_i32_0 : i32, i32
  }
  func.func @transform_5(%arg0: i32) -> (i32, i32) {
    %c0_i32 = arith.constant 0 : i32
    %c0_i32_0 = arith.constant 0 : i32
    %c0_i32_1 = arith.constant 0 : i32
    return %c0_i32, %c0_i32_0 : i32, i32
  }
  func.func @transform_6(%arg0: i32) -> (i32, i32) {
    %c0_i32 = arith.constant 0 : i32
    %c0_i32_0 = arith.constant 0 : i32
    return %arg0, %c0_i32 : i32, i32
  }
}

</mosaic_0001>

<bundles_post_ra>
// kernel: custom_bottleneck_forward.4
= control target key start
LH: loop header
LB: loop body
LE: loop exit
PB: predicated region body
PF: predicated region fallthrough
CT: control target
= control target key end

     0   :  { %s1246_s15 = smov 0   ;;  %s1431_s0 = inlined_call_operand.vmem [shape: bf16[512,128], index: 0, kind: input, shape index: {}]   ;;  %s1432_s1 = inlined_call_operand.vmem [shape: bf16[128,128], index: 1, kind: input, shape index: {}]   ;;  %s1433_s2 = inlined_call_operand.vmem [shape: bf16[512,128], index: 2, kind: output, shape index: {0}]   ;;  %s1434_s3 = inlined_call_operand.vmem [shape: f32[1,128], index: 3, kind: output, shape index: {1}]   ;;  %s1435_s4 = inlined_call_operand.vmem [shape: f32[1,128], index: 4, kind: output, shape index: {2}]  }
   0x1 LB: > { %s896_s16 = sadd.s32 4294967295, %s1218_s15   ;;  %p900_p0 = scmp.ge.s32.totalorder %s1218_s15, 1  ;;  %s1218_s15 = sphi %s1246_s15, %s15_s15  }
   0x2   : > { %p158_p1 = scmp.lt.s32.totalorder %s1218_s15, 3 }
   0x4   : > { %p159_p2 = pnand %p900_p0, %p158_p1 }
   0x5   : > { %s901_s17 = sshll.u32 (!%p159_p2), %s896_s16, 5  ;;  %p905_p4 = scmp.ne.s32.totalorder (!%p159_p2), %s896_s16, 0 }
   0x6   : > { %162 = sbr.rel (%p159_p2) target bundleno = 329 (0x149), region = 28  ;;  %p185_p3 = scmp.lt.s32.totalorder (!%p159_p2), %s901_s17, 63 }
   0xb   : > { %s1437_s17 = smov (!%p185_p3, %s901_s17), 63  ;;  %200 = sbr.rel (%p905_p4) target bundleno = 18 (0x12), region = 32 }
   0xc   : > { %s902_s18 = sshll.u32 %s1437_s17, 2 }
   0xd   : > { %s1257_s21 = scalar_lea.vmem %s1431_s0, %s902_s18  ;;  %s1262_s24 = scalar_lea.vmem %s1433_s2, %s902_s18 }
  0x10   : > { %v1220_v0 = vmov 0.0  }
  0x11   : > { %201 = vst [vmem:[%s1434_s3] sm:$0x1] %v1220_v0  ;;  %202 = vst [vmem:[%s1435_s4] sm:$0x1] %v1220_v0 }
  0x12 PF: > { %v1188_v1 = vld [vmem:[%s1432_s1 + $0x38] sm:$0xff]   ;;  %v1189_v2 = vld [vmem:[%s1432_s1 + $0x30] sm:$0xff]   ;;  %v1190_v3 = vld [vmem:[%s1432_s1 + $0x28] sm:$0xff]  }
  0x13   : > { %1115 = vmatprep.subr.bf16.mxu0 %v1188_v1  ;;  %1163 = vmatprep.subr.bf16.mxu1 %v1188_v1  ;;  %v1191_v4 = vld [vmem:[%s1432_s1 + $0x20] sm:$0xff]   ;;  %v1192_v6 = vld [vmem:[%s1432_s1 + $0x18] sm:$0xff]   ;;  %v1193_v7 = vld [vmem:[%s1432_s1 + $0x10] sm:$0xff]  }
  0x14   : > { %1116 = vmatpush3.bf16.msra.mxu0 %v1188_v1  ;;  %1171 = vmatpush3.bf16.msra.mxu1 %v1188_v1  ;;  %v1196_v5 = vld [vmem:[%s1257_s21] sm:$0xff]   ;;  %v1194_v9 = vld [vmem:[%s1432_s1 + $0x8] sm:$0xff]   ;;  %v1198_v13 = vld [vmem:[%s1257_s21 + $0x10] sm:$0xff]  }
  0x15   : > { %1117 = vmatprep.subr.bf16.mxu0 %v1189_v2  ;;  %1164 = vmatprep.subr.bf16.mxu1 %v1189_v2  ;;  %v1204_v8 = vld [vmem:[%s1257_s21 + $0x40] sm:$0xff]   ;;  %v1197_v11 = vld [vmem:[%s1257_s21 + $0x8] sm:$0xff]   ;;  %v1206_v14 = vld [vmem:[%s1257_s21 + $0x50] sm:$0xff]  }
  0x16   : > { %1131 = vmatprep.mubr.bf16.mxu0 %v1196_v5  ;;  %1147 = vmatprep.mubr.bf16.mxu1 %v1204_v8  ;;  %v1195_v10 = vld [vmem:[%s1432_s1] sm:$0xff]   ;;  %v1205_v12 = vld [vmem:[%s1257_s21 + $0x48] sm:$0xff]   ;;  %v1199_v15 = vld [vmem:[%s1257_s21 + $0x18] sm:$0xff]  }
  0x17   : > { %v1207_v16 = vld [vmem:[%s1257_s21 + $0x58] sm:$0xff]   ;;  %v1200_v17 = vld [vmem:[%s1257_s21 + $0x20] sm:$0xff]   ;;  %v1201_v19 = vld [vmem:[%s1257_s21 + $0x28] sm:$0xff]  }
  0x18   : > { %1118 = vmatpush3.bf16.msra.mxu0 %v1189_v2  ;;  %1172 = vmatpush3.bf16.msra.mxu1 %v1189_v2  ;;  %v1208_v18 = vld [vmem:[%s1257_s21 + $0x60] sm:$0xff]   ;;  %v1209_v20 = vld [vmem:[%s1257_s21 + $0x68] sm:$0xff]   ;;  %v1202_v21 = vld [vmem:[%s1257_s21 + $0x30] sm:$0xff]  }
  0x19   : > { %1119 = vmatprep.subr.bf16.mxu0 %v1190_v3  ;;  %1165 = vmatprep.subr.bf16.mxu1 %v1190_v3  ;;  %v1210_v22 = vld [vmem:[%s1257_s21 + $0x70] sm:$0xff]   ;;  %v1203_v23 = vld [vmem:[%s1257_s21 + $0x38] sm:$0xff]  }
  0x1a   : > { %v1211_v24 = vld [vmem:[%s1257_s21 + $0x78] sm:$0xff]  }
  0x1c   : > { %1120 = vmatpush3.bf16.msra.mxu0 %v1190_v3  ;;  %1173 = vmatpush3.bf16.msra.mxu1 %v1190_v3 }
  0x1d   : > { %1121 = vmatprep.subr.bf16.mxu0 %v1191_v4  ;;  %1166 = vmatprep.subr.bf16.mxu1 %v1191_v4 }
  0x20   : > { %1122 = vmatpush3.bf16.msra.mxu0 %v1191_v4  ;;  %1174 = vmatpush3.bf16.msra.mxu1 %v1191_v4 }
  0x21   : > { %1123 = vmatprep.subr.bf16.mxu0 %v1192_v6  ;;  %1167 = vmatprep.subr.bf16.mxu1 %v1192_v6 }
  0x24   : > { %1124 = vmatpush3.bf16.msra.mxu0 %v1192_v6  ;;  %1175 = vmatpush3.bf16.msra.mxu1 %v1192_v6 }
  0x25   : > { %1125 = vmatprep.subr.bf16.mxu0 %v1193_v7  ;;  %1168 = vmatprep.subr.bf16.mxu1 %v1193_v7 }
  0x28   : > { %1126 = vmatpush3.bf16.msra.mxu0 %v1193_v7  ;;  %1176 = vmatpush3.bf16.msra.mxu1 %v1193_v7 }
  0x29   : > { %1127 = vmatprep.subr.bf16.mxu0 %v1194_v9  ;;  %1169 = vmatprep.subr.bf16.mxu1 %v1194_v9 }
  0x2c   : > { %1128 = vmatpush3.bf16.msra.mxu0 %v1194_v9  ;;  %1177 = vmatpush3.bf16.msra.mxu1 %v1194_v9 }
  0x2d   : > { %1129 = vmatprep.subr.bf16.mxu0 %v1195_v10  ;;  %1170 = vmatprep.subr.bf16.mxu1 %v1195_v10 }
  0x30   : > { %1130 = vmatpush3.bf16.msra.mxu0 %v1195_v10  ;;  %1178 = vmatpush3.bf16.msra.mxu1 %v1195_v10 }
  0x33   : > { %1132 = vmatmul.mubr.bf16.vlgmr.msra.gmra.mxu0 %v1197_v11  ;;  %1148 = vmatmul.mubr.bf16.vlgmr.msra.gmra.mxu1 %v1205_v12 }
  0x34   : > { %1135 = vmatprep.mubr.bf16.mxu0 %v1198_v13  ;;  %1151 = vmatprep.mubr.bf16.mxu1 %v1206_v14 }
  0x3b   : > { %1136 = vmatmul.mubr.bf16.gmra.mxu0 %v1199_v15  ;;  %1152 = vmatmul.mubr.bf16.gmra.mxu1 %v1207_v16 }
  0x3c   : > { %1139 = vmatprep.mubr.bf16.mxu0 %v1200_v17  ;;  %1155 = vmatprep.mubr.bf16.mxu1 %v1208_v18 }
  0x43   : > { %1140 = vmatmul.mubr.bf16.gmra.mxu0 %v1201_v19  ;;  %1156 = vmatmul.mubr.bf16.gmra.mxu1 %v1209_v20 }
  0x44   : > { %1143 = vmatprep.mubr.bf16.mxu0 %v1202_v21  ;;  %1159 = vmatprep.mubr.bf16.mxu1 %v1210_v22 }
  0x4b   : > { %1144 = vmatmul.mubr.bf16.gmra.mxu0 %v1203_v23  ;;  %1160 = vmatmul.mubr.bf16.gmra.mxu1 %v1211_v24 }
  0xf3   : > { %v1133_v25 = vpop.f32.mrf.mxu0  ;;  %v1310_v26 = vpop.f32.mrf.mxu1 }
  0xf4   : > { %v759_v42 = vmul.f32 %v1133_v25, %v1133_v25 }
  0xf5   : > { %v429_v27 = vpop.f32.mrf.mxu0  ;;  %v1312_v28 = vpop.f32.mrf.mxu1 }
  0xf6   : > { %v757_v33 = vmul.f32 %v429_v27, %v429_v27 }
  0xf7   : > { %v1134_v29 = vpop.f32.mrf.mxu0  ;;  %v1314_v30 = vpop.f32.mrf.mxu1 }
  0xf8   : > { %v1004_v31 = vpack.c.bf16 %v1134_v29, %v1133_v25  ;;  %v1044_v32 = vpack.c.bf16 %v1314_v30, %v1310_v26  ;;  %v760_v47 = vmul.f32 %v1134_v29, %v1134_v29 }
  0xf9   : > { %v432_v34 = vpop.f32.mrf.mxu0  ;;  %v1318_v35 = vpop.f32.mrf.mxu1 }
  0xfa   : > { %1076 = vst [vmem:[%s1262_s24 + $0x8] sm:$0xff] %v1004_v31   ;;  %v999_v36 = vpack.c.bf16 %v432_v34, %v429_v27  ;;  %v717_v37 = vadd.f32 %v432_v34, %v429_v27  ;;  %v758_v38 = vmul.f32 %v432_v34, %v432_v34  ;;  %1084 = vst [vmem:[%s1262_s24 + $0x48] sm:$0xff] %v1044_v32  }
  0xfb   : > { %v1039_v39 = vpack.c.bf16 %v1318_v35, %v1312_v28  ;;  %v1137_v40 = vpop.f32.mrf.mxu0  ;;  %v1324_v41 = vpop.f32.mrf.mxu1 }
  0xfc   : > { %1000 = vst [vmem:[%s1262_s24] sm:$0xff] %v999_v36   ;;  %v718_v43 = vadd.f32 %v1133_v25, %v717_v37  ;;  %v789_v44 = vadd.f32 %v758_v38, %v757_v33  ;;  %v763_v2 = vmul.f32 %v1137_v40, %v1137_v40 }
  0xfd   : > { %1083 = vst [vmem:[%s1262_s24 + $0x40] sm:$0xff] %v1039_v39   ;;  %v445_v45 = vpop.f32.mrf.mxu0  ;;  %v1328_v46 = vpop.f32.mrf.mxu1 }
  0xfe   : > { %v790_v48 = vadd.f32 %v789_v44, %v759_v42  ;;  %v719_v49 = vadd.f32 %v1134_v29, %v718_v43  ;;  %v761_v53 = vmul.f32 %v445_v45, %v445_v45 }
  0xff   : > { %v1138_v50 = vpop.f32.mrf.mxu0  ;;  %v1330_v51 = vpop.f32.mrf.mxu1 }
 0x100   : > { %v720_v52 = vadd.f32 %v719_v49, %v445_v45  ;;  %v791_v54 = vadd.f32 %v790_v48, %v760_v47  ;;  %v1014_v55 = vpack.c.bf16 %v1138_v50, %v1137_v40  ;;  %v1054_v57 = vpack.c.bf16 %v1330_v51, %v1324_v41 }
 0x101   : > { %v448_v56 = vpop.f32.mrf.mxu0  ;;  %v1334_v58 = vpop.f32.mrf.mxu1  ;;  %v764_v7 = vmul.f32 %v1138_v50, %v1138_v50 }
 0x102   : > { %v792_v59 = vadd.f32 %v791_v54, %v761_v53  ;;  %1078 = vst [vmem:[%s1262_s24 + $0x18] sm:$0xff] %v1014_v55   ;;  %v1009_v60 = vpack.c.bf16 %v448_v56, %v445_v45  ;;  %v721_v61 = vadd.f32 %v720_v52, %v448_v56  ;;  %v762_v62 = vmul.f32 %v448_v56, %v448_v56 }
 0x103   : > { %v1141_v63 = vpop.f32.mrf.mxu0  ;;  %1086 = vst [vmem:[%s1262_s24 + $0x58] sm:$0xff] %v1054_v57   ;;  %v1049_v0 = vpack.c.bf16 %v1334_v58, %v1328_v46  ;;  %v1340_v1 = vpop.f32.mrf.mxu1 }
 0x104   : > { %1077 = vst [vmem:[%s1262_s24 + $0x10] sm:$0xff] %v1009_v60   ;;  %v722_v3 = vadd.f32 %v1137_v40, %v721_v61  ;;  %v793_v4 = vadd.f32 %v792_v59, %v762_v62  ;;  %v767_v27 = vmul.f32 %v1141_v63, %v1141_v63  ;;  %v773_v62 = vmul.f32 %v1312_v28, %v1312_v28 }
 0x105   : > { %v461_v5 = vpop.f32.mrf.mxu0  ;;  %1085 = vst [vmem:[%s1262_s24 + $0x50] sm:$0xff] %v1049_v0   ;;  %v1344_v6 = vpop.f32.mrf.mxu1 }
 0x106   : > { %v794_v8 = vadd.f32 %v793_v4, %v763_v2  ;;  %v723_v9 = vadd.f32 %v1138_v50, %v722_v3  ;;  %v765_v13 = vmul.f32 %v461_v5, %v461_v5  ;;  %v774_v3 = vmul.f32 %v1318_v35, %v1318_v35 }
 0x107   : > { %v1142_v10 = vpop.f32.mrf.mxu0  ;;  %v1346_v11 = vpop.f32.mrf.mxu1 }
 0x108   : > { %v724_v12 = vadd.f32 %v723_v9, %v461_v5  ;;  %v795_v14 = vadd.f32 %v794_v8, %v764_v7  ;;  %v1024_v15 = vpack.c.bf16 %v1142_v10, %v1141_v63  ;;  %v1064_v17 = vpack.c.bf16 %v1346_v11, %v1340_v1 }
 0x109   : > { %v464_v16 = vpop.f32.mrf.mxu0  ;;  %v1350_v18 = vpop.f32.mrf.mxu1  ;;  %v768_v34 = vmul.f32 %v1142_v10, %v1142_v10  ;;  %v776_v9 = vmul.f32 %v1314_v30, %v1314_v30 }
 0x10a   : > { %v796_v19 = vadd.f32 %v795_v14, %v765_v13  ;;  %1080 = vst [vmem:[%s1262_s24 + $0x28] sm:$0xff] %v1024_v15   ;;  %v1019_v20 = vpack.c.bf16 %v464_v16, %v461_v5  ;;  %v725_v21 = vadd.f32 %v724_v12, %v464_v16  ;;  %v766_v22 = vmul.f32 %v464_v16, %v464_v16 }
 0x10b   : > { %v1145_v23 = vpop.f32.mrf.mxu0  ;;  %1088 = vst [vmem:[%s1262_s24 + $0x68] sm:$0xff] %v1064_v17   ;;  %v1059_v24 = vpack.c.bf16 %v1350_v18, %v1344_v6  ;;  %v1356_v25 = vpop.f32.mrf.mxu1  ;;  %v775_v5 = vmul.f32 %v1310_v26, %v1310_v26  ;;  %v777_v13 = vmul.f32 %v1328_v46, %v1328_v46  ;;  %v778_v16 = vmul.f32 %v1334_v58, %v1334_v58 }
 0x10c   : > { %1079 = vst [vmem:[%s1262_s24 + $0x20] sm:$0xff] %v1019_v20   ;;  %v726_v29 = vadd.f32 %v1141_v63, %v725_v21  ;;  %v797_v31 = vadd.f32 %v796_v19, %v766_v22  ;;  %v771_v55 = vmul.f32 %v1145_v23, %v1145_v23  ;;  %v781_v22 = vmul.f32 %v1344_v6, %v1344_v6 }
 0x10d   : > { %v477_v32 = vpop.f32.mrf.mxu0  ;;  %1087 = vst [vmem:[%s1262_s24 + $0x60] sm:$0xff] %v1059_v24   ;;  %v1360_v33 = vpop.f32.mrf.mxu1 }
 0x10e   : > { %v798_v36 = vadd.f32 %v797_v31, %v767_v27  ;;  %v727_v37 = vadd.f32 %v1142_v10, %v726_v29  ;;  %v769_v42 = vmul.f32 %v477_v32, %v477_v32  ;;  %v782_v27 = vmul.f32 %v1350_v18, %v1350_v18 }
 0x10f   : > { %v1146_v38 = vpop.f32.mrf.mxu0  ;;  %v1362_v39 = vpop.f32.mrf.mxu1 }
 0x110   : > { %v728_v40 = vadd.f32 %v727_v37, %v477_v32  ;;  %v799_v43 = vadd.f32 %v798_v36, %v768_v34  ;;  %v1034_v44 = vpack.c.bf16 %v1146_v38, %v1145_v23  ;;  %v1074_v47 = vpack.c.bf16 %v1362_v39, %v1356_v25 }
 0x111   : > { %v480_v45 = vpop.f32.mrf.mxu0  ;;  %v544_v48 = vpop.f32.mrf.mxu1  ;;  %v772_v59 = vmul.f32 %v1146_v38, %v1146_v38  ;;  %v785_v36 = vmul.f32 %v1360_v33, %v1360_v33 }
 0x112   : > { %v800_v49 = vadd.f32 %v799_v43, %v769_v42  ;;  %1082 = vst [vmem:[%s1262_s24 + $0x38] sm:$0xff] %v1034_v44   ;;  %v1029_v50 = vpack.c.bf16 %v480_v45, %v477_v32  ;;  %v729_v52 = vadd.f32 %v728_v40, %v480_v45  ;;  %v770_v53 = vmul.f32 %v480_v45, %v480_v45 }
 0x113   : > { %1090 = vst [vmem:[%s1262_s24 + $0x78] sm:$0xff] %v1074_v47   ;;  %v1069_v54 = vpack.c.bf16 %v544_v48, %v1360_v33  ;;  %v786_v40 = vmul.f32 %v544_v48, %v544_v48  ;;  %v787_v42 = vmul.f32 %v1356_v25, %v1356_v25  ;;  %v788_v44 = vmul.f32 %v1362_v39, %v1362_v39 }
 0x114   : > { %1081 = vst [vmem:[%s1262_s24 + $0x30] sm:$0xff] %v1029_v50   ;;  %v730_v56 = vadd.f32 %v1145_v23, %v729_v52  ;;  %v801_v57 = vadd.f32 %v800_v49, %v770_v53 }
 0x115   : > { %1089 = vst [vmem:[%s1262_s24 + $0x70] sm:$0xff] %v1069_v54  }
 0x116   : > { %v731_v60 = vadd.f32 %v1146_v38, %v730_v56  ;;  %v802_v61 = vadd.f32 %v801_v57, %v771_v55 }
 0x118   : > { %v803_v63 = vadd.f32 %v802_v61, %v772_v59  ;;  %v732_v0 = vadd.f32 %v731_v60, %v1312_v28 }
 0x11a   : > { %v733_v2 = vadd.f32 %v732_v0, %v1318_v35  ;;  %v804_v4 = vadd.f32 %v803_v63, %v773_v62 }
 0x11c   : > { %v734_v7 = vadd.f32 %v1310_v26, %v733_v2  ;;  %v805_v8 = vadd.f32 %v804_v4, %v774_v3  ;;  %v779_v26 = vmul.f32 %v1324_v41, %v1324_v41 }
 0x11e   : > { %v806_v10 = vadd.f32 %v805_v8, %v775_v5  ;;  %v735_v12 = vadd.f32 %v1314_v30, %v734_v7  ;;  %v780_v30 = vmul.f32 %v1330_v51, %v1330_v51 }
 0x120   : > { %v736_v28 = vadd.f32 %v735_v12, %v1328_v46  ;;  %v807_v14 = vadd.f32 %v806_v10, %v776_v9 }
 0x122   : > { %v808_v35 = vadd.f32 %v807_v14, %v777_v13  ;;  %v737_v15 = vadd.f32 %v736_v28, %v1334_v58 }
 0x124   : > { %v738_v17 = vadd.f32 %v1324_v41, %v737_v15  ;;  %v809_v19 = vadd.f32 %v808_v35, %v778_v16  ;;  %v783_v41 = vmul.f32 %v1340_v1, %v1340_v1 }
 0x126   : > { %v810_v20 = vadd.f32 %v809_v19, %v779_v26  ;;  %v739_v21 = vadd.f32 %v1330_v51, %v738_v17  ;;  %v784_v51 = vmul.f32 %v1346_v11, %v1346_v11 }
 0x128   : > { %v740_v46 = vadd.f32 %v739_v21, %v1344_v6  ;;  %v811_v23 = vadd.f32 %v810_v20, %v780_v30 }
 0x12a   : > { %v812_v24 = vadd.f32 %v811_v23, %v781_v22  ;;  %v741_v58 = vadd.f32 %v740_v46, %v1350_v18 }
 0x12c   : > { %v742_v29 = vadd.f32 %v1340_v1, %v741_v58  ;;  %v813_v31 = vadd.f32 %v812_v24, %v782_v27 }
 0x12e   : > { %v814_v32 = vadd.f32 %v813_v31, %v783_v41  ;;  %v743_v34 = vadd.f32 %v1346_v11, %v742_v29 }
 0x130   : > { %v744_v6 = vadd.f32 %v743_v34, %v1360_v33  ;;  %v815_v37 = vadd.f32 %v814_v32, %v784_v51 }
 0x132   : > { %v816_v38 = vadd.f32 %v815_v37, %v785_v36  ;;  %v745_v18 = vadd.f32 %v744_v6, %v544_v48 }
 0x134   : > { %v746_v1 = vadd.f32 %v1356_v25, %v745_v18  ;;  %v817_v43 = vadd.f32 %v816_v38, %v786_v40  ;;  %v716_v25 = vld [vmem:[%s1434_s3] sm:$0x1] }
 0x136   : > { %v747_v11 = vadd.f32 %v1362_v39, %v746_v1  ;;  %v818_v45 = vadd.f32 %v817_v43, %v787_v42  ;;  %v756_v39 = vld [vmem:[%s1435_s4] sm:$0x1] }
 0x138   : > { %v748_v47 = vrot.slane %v747_v11, 4  ;;  %v819_v49 = vadd.f32 %v818_v45, %v788_v44 }
 0x13a   : > { %v749_v50 = vadd.f32 %v748_v47, %v747_v11  ;;  %v820_v33 = vrot.slane %v819_v49, 4 }
 0x13c   : > { %v750_v52 = vrot.slane %v749_v50, 2  ;;  %v821_v53 = vadd.f32 %v820_v33, %v819_v49 }
 0x13e   : > { %v751_v54 = vadd.f32 %v750_v52, %v749_v50  ;;  %v822_v48 = vrot.slane %v821_v53, 2 }
 0x140   : > { %v752_v55 = vrot.slane %v751_v54, 1  ;;  %v823_v56 = vadd.f32 %v822_v48, %v821_v53 }
 0x142   : > { %v753_v57 = vadd.f32 %v752_v55, %v751_v54  ;;  %v824_v59 = vrot.slane %v823_v56, 1 }
 0x144   : > { %v754_v60 = vadd.f32 %v753_v57, %v716_v25  ;;  %v825_v61 = vadd.f32 %v824_v59, %v823_v56 }
 0x146   : > { %755 = vst [vmem:[%s1434_s3] sm:$0x1] %v754_v60  ;;  %v826_v62 = vadd.f32 %v825_v61, %v756_v39 }
 0x148   : > { %827 = vst [vmem:[%s1435_s4] sm:$0x1] %v826_v62 }
 0x149 PF: > { %s15_s15 = sadd.s32 1, %s1218_s15  }
 0x14a   : > { %p12_p5 = scmp.ge.s32.totalorder %s15_s15, 4  }
 0x14c   :  { %14 = sbr.rel (!%p12_p5) target bundleno = 1 (0x1), region = 78 }

// kernel: custom_bottleneck_forward.5
= control target key start
LH: loop header
LB: loop body
LE: loop exit
PB: predicated region body
PF: predicated region fallthrough
CT: control target
= control target key end

     0   :  { %s2910_s21 = smov 0   ;;  %s3281_s0 = inlined_call_operand.vmem [shape: bf16[2,16,16,128], index: 0, kind: input, shape index: {}]   ;;  %s3282_s1 = inlined_call_operand.vmem [shape: bf16[9,128,128], index: 1, kind: input, shape index: {}]   ;;  %s3283_s2 = inlined_call_operand.vmem [shape: f32[1,128], index: 2, kind: input, shape index: {}]   ;;  %s3284_s3 = inlined_call_operand.vmem [shape: f32[1,128], index: 3, kind: input, shape index: {}]   ;;  %s3285_s4 = inlined_call_operand.vmem [shape: bf16[2,64,128], index: 4, kind: output, shape index: {0}]   ;;  %s3286_s5 = inlined_call_operand.vmem [shape: f32[1,128], index: 5, kind: output, shape index: {1}]   ;;  %s3287_s6 = inlined_call_operand.vmem [shape: f32[1,128], index: 6, kind: output, shape index: {2}]  }
   0x1 LB: > { %s2111_s22 = sadd.s32 4294967295, %s2872_s21   ;;  %p2115_p0 = scmp.ge.s32.totalorder %s2872_s21, 1  ;;  %s2872_s21 = sphi %s2910_s21, %s17_s21  }
   0x2   : > { %p207_p1 = scmp.lt.s32.totalorder %s2872_s21, 3 }
   0x4   : > { %p208_p2 = pnand %p2115_p0, %p207_p1 }
   0x6   : > { %211 = sbr.rel (%p208_p2) target bundleno = 440 (0x1b8), region = 36 }
   0xb   : > { %p237_p3 = scmp.lt.s32.totalorder %s2111_s22, 1  ;;  %p2120_p4 = scmp.ne.s32.totalorder %s2111_s22, 0 }
   0xd   : > { %s238_s23 = scalar_select %p237_p3, %s2111_s22, 1 }
   0xe   : > { %251 = sbr.rel (%p2120_p4) target bundleno = 47 (0x2f), region = 40 }
   0xf   : > { %s2333_s24 = sshll.u32 %s238_s23, 7  ;;  %s2334_s25 = sshll.u32 %s238_s23, 5 }
  0x10   : > { %s2921_s28 = scalar_lea.vmem %s3281_s0, %s2333_s24  ;;  %s2926_s7 = scalar_lea.vmem %s3285_s4, %s2334_s25 }
  0x13   : > { %v2874_v0 = vmov 0.0  }
  0x14   : > { %252 = vst [vmem:[%s3286_s5] sm:$0x1] %v2874_v0  ;;  %253 = vst [vmem:[%s3287_s6] sm:$0x1] %v2874_v0 }
  0x15   : > { %254 = vst [vmem:[#allocation2] sm:$0xff] %v2874_v0  ;;  %255 = vst [vmem:[#allocation2 + $0x8] sm:$0xff] %v2874_v0 }
  0x16   : > { %256 = vst [vmem:[#allocation2 + $0x10] sm:$0x3] %v2874_v0  ;;  %257 = vst [vmem:[#allocation2 + $0x18] sm:$0xff] %v2874_v0 }
  0x17   : > { %258 = vst [vmem:[#allocation2 + $0x20] sm:$0xff] %v2874_v0  ;;  %259 = vst [vmem:[#allocation2 + $0x28] sm:$0x3] %v2874_v0 }
  0x18   : > { %260 = vst [vmem:[#allocation2 + $0x30] sm:$0xff] %v2874_v0  ;;  %261 = vst [vmem:[#allocation2 + $0x38] sm:$0xff] %v2874_v0 }
  0x19   : > { %262 = vst [vmem:[#allocation2 + $0x40] sm:$0x3] %v2874_v0  ;;  %263 = vst [vmem:[#allocation2 + $0x48] sm:$0xff] %v2874_v0 }
  0x1a   : > { %264 = vst [vmem:[#allocation2 + $0x50] sm:$0xff] %v2874_v0  ;;  %265 = vst [vmem:[#allocation2 + $0x58] sm:$0x3] %v2874_v0 }
  0x1b   : > { %266 = vst [vmem:[#allocation2 + $0x60] sm:$0xff] %v2874_v0  ;;  %267 = vst [vmem:[#allocation2 + $0x68] sm:$0xff] %v2874_v0 }
  0x1c   : > { %268 = vst [vmem:[#allocation2 + $0x70] sm:$0x3] %v2874_v0  ;;  %269 = vst [vmem:[#allocation2 + $0x78] sm:$0xff] %v2874_v0 }
  0x1d   : > { %270 = vst [vmem:[#allocation2 + $0x80] sm:$0xff] %v2874_v0  ;;  %271 = vst [vmem:[#allocation2 + $0x88] sm:$0x3] %v2874_v0 }
  0x1e   : > { %272 = vst [vmem:[#allocation2 + $0x90] sm:$0xff] %v2874_v0  ;;  %273 = vst [vmem:[#allocation2 + $0x98] sm:$0xff] %v2874_v0 }
  0x1f   : > { %274 = vst [vmem:[#allocation2 + $0xa0] sm:$0x3] %v2874_v0  ;;  %275 = vst [vmem:[#allocation2 + $0xa8] sm:$0xff] %v2874_v0 }
  0x20   : > { %276 = vst [vmem:[#allocation2 + $0xb0] sm:$0xff] %v2874_v0  ;;  %277 = vst [vmem:[#allocation2 + $0xb8] sm:$0x3] %v2874_v0 }
  0x21   : > { %278 = vst [vmem:[#allocation2 + $0xc0] sm:$0xff] %v2874_v0  ;;  %279 = vst [vmem:[#allocation2 + $0xc8] sm:$0xff] %v2874_v0 }
  0x22   : > { %280 = vst [vmem:[#allocation2 + $0xd0] sm:$0x3] %v2874_v0  ;;  %281 = vst [vmem:[#allocation2 + $0xd8] sm:$0xff] %v2874_v0 }
  0x23   : > { %282 = vst [vmem:[#allocation2 + $0xe0] sm:$0xff] %v2874_v0  ;;  %283 = vst [vmem:[#allocation2 + $0xe8] sm:$0x3] %v2874_v0 }
  0x24   : > { %284 = vst [vmem:[#allocation2 + $0xf0] sm:$0xff] %v2874_v0  ;;  %285 = vst [vmem:[#allocation2 + $0xf8] sm:$0xff] %v2874_v0 }
  0x25   : > { %286 = vst [vmem:[#allocation2 + $0x100] sm:$0x3] %v2874_v0  ;;  %287 = vst [vmem:[#allocation2 + $0x108] sm:$0xff] %v2874_v0 }
  0x26   : > { %288 = vst [vmem:[#allocation2 + $0x110] sm:$0xff] %v2874_v0  ;;  %289 = vst [vmem:[#allocation2 + $0x118] sm:$0x3] %v2874_v0 }
  0x27   : > { %290 = vst [vmem:[#allocation2 + $0x120] sm:$0xff] %v2874_v0  ;;  %291 = vst [vmem:[#allocation2 + $0x128] sm:$0xff] %v2874_v0 }
  0x28   : > { %292 = vst [vmem:[#allocation2 + $0x130] sm:$0x3] %v2874_v0  ;;  %293 = vst [vmem:[#allocation2 + $0x138] sm:$0xff] %v2874_v0 }
  0x29   : > { %294 = vst [vmem:[#allocation2 + $0x140] sm:$0xff] %v2874_v0  ;;  %295 = vst [vmem:[#allocation2 + $0x148] sm:$0x3] %v2874_v0 }
  0x2a   : > { %296 = vst [vmem:[#allocation2 + $0x150] sm:$0xff] %v2874_v0  ;;  %297 = vst [vmem:[#allocation2 + $0x158] sm:$0xff] %v2874_v0 }
  0x2b   : > { %298 = vst [vmem:[#allocation2 + $0x160] sm:$0x3] %v2874_v0  ;;  %299 = vst [vmem:[#allocation2 + $0x168] sm:$0xff] %v2874_v0 }
  0x2c   : > { %300 = vst [vmem:[#allocation2 + $0x170] sm:$0xff] %v2874_v0  ;;  %301 = vst [vmem:[#allocation2 + $0x178] sm:$0x3] %v2874_v0 }
  0x2d   : > { %302 = vst [vmem:[#allocation2 + $0x180] sm:$0xff] %v2874_v0  ;;  %303 = vst [vmem:[#allocation2 + $0x188] sm:$0xff] %v2874_v0 }
  0x2e   : > { %304 = vst [vmem:[#allocation2 + $0x190] sm:$0x3] %v2874_v0 }
  0x2f PF: > { %v2794_v1 = vld [vmem:[%s3282_s1 + $0x78] sm:$0xff]   ;;  %v2796_v3 = vld [vmem:[%s3282_s1 + $0x70] sm:$0xff]   ;;  %v2798_v5 = vld [vmem:[%s3282_s1 + $0x68] sm:$0xff]  }
  0x30   : > { %v2795_v2 = vld [vmem:[%s3282_s1 + $0x38] sm:$0xff]   ;;  %2553 = vmatprep.subr.bf16.mxu0 %v2794_v1  ;;  %v2797_v4 = vld [vmem:[%s3282_s1 + $0x30] sm:$0xff]   ;;  %v2799_v6 = vld [vmem:[%s3282_s1 + $0x28] sm:$0xff]  }
  0x31   : > { %2577 = vmatprep.subr.bf16.mxu1 %v2795_v2  ;;  %2554 = vmatpush3.bf16.msra.mxu0 %v2794_v1  ;;  %v2800_v7 = vld [vmem:[%s3282_s1 + $0x60] sm:$0xff]   ;;  %v2802_v9 = vld [vmem:[%s3282_s1 + $0x58] sm:$0xff]   ;;  %v2804_v11 = vld [vmem:[%s3282_s1 + $0x50] sm:$0xff]  }
  0x32   : > { %2578 = vmatpush3.bf16.msra.mxu1 %v2795_v2  ;;  %2555 = vmatprep.subr.bf16.mxu0 %v2796_v3  ;;  %v2801_v8 = vld [vmem:[%s3282_s1 + $0x20] sm:$0xff]   ;;  %v2803_v10 = vld [vmem:[%s3282_s1 + $0x18] sm:$0xff]   ;;  %v2427_v12 = vld [vmem:[%s2921_s28 + $0x8] sm:$0xff]  }
  0x33   : > { %2579 = vmatprep.subr.bf16.mxu1 %v2797_v4  ;;  %v2971_v13 = vld [vmem:[%s3283_s2] ss:$0 sm:$0xff]  ;;  %v2805_v14 = vld [vmem:[%s3282_s1 + $0x10] sm:$0xff]   ;;  %v2349_v15 = vunpack.c.l.bf16 %v2427_v12  ;;  %v2350_v16 = vunpack.c.h.bf16 %v2427_v12  ;;  %v2429_v18 = vld [vmem:[%s2921_s28 + $0x18] sm:$0xff]  }
  0x34   : > { %v2979_v17 = vld [vmem:[%s3284_s3] ss:$0 sm:$0xff]  ;;  %v2357_v19 = vunpack.c.l.bf16 %v2429_v18  ;;  %v2358_v20 = vunpack.c.h.bf16 %v2429_v18  ;;  %v2431_v21 = vld [vmem:[%s2921_s28 + $0x28] sm:$0xff]   ;;  %v2810_v46 = vld [vmem:[%s3282_s1 + $0xb8] sm:$0xff]  }
  0x35   : > { %2556 = vmatpush3.bf16.msra.mxu0 %v2796_v3  ;;  %v381_v22 = vmul.f32 %v2349_v15, %v2971_v13  ;;  %v382_v23 = vmul.f32 %v2350_v16, %v2971_v13  ;;  %v2365_v24 = vunpack.c.l.bf16 %v2431_v21  ;;  %v2366_v25 = vunpack.c.h.bf16 %v2431_v21  ;;  %v2806_v26 = vld [vmem:[%s3282_s1 + $0x48] sm:$0xff]   ;;  %v2808_v36 = vld [vmem:[%s3282_s1 + $0x40] sm:$0xff]   ;;  %v2811_v48 = vld [vmem:[%s3282_s1 + $0xf8] sm:$0xff]  }
  0x36   : > { %2580 = vmatpush3.bf16.msra.mxu1 %v2797_v4  ;;  %2557 = vmatprep.subr.bf16.mxu0 %v2798_v5  ;;  %v385_v27 = vmul.f32 %v2357_v19, %v2971_v13  ;;  %v386_v28 = vmul.f32 %v2358_v20, %v2971_v13  ;;  %v2807_v29 = vld [vmem:[%s3282_s1 + $0x8] sm:$0xff]   ;;  %v2809_v43 = vld [vmem:[%s3282_s1] sm:$0xff]   ;;  %v2433_v49 = vld [vmem:[%s2921_s28 + $0x38] sm:$0xff]  }
  0x37   : > { %2581 = vmatprep.subr.bf16.mxu1 %v2799_v6  ;;  %v420_v30 = vadd.f32 %v2979_v17, %v381_v22  ;;  %v421_v31 = vadd.f32 %v2979_v17, %v382_v23  ;;  %v389_v32 = vmul.f32 %v2365_v24, %v2971_v13  ;;  %v390_v33 = vmul.f32 %v2366_v25, %v2971_v13  ;;  %v551_v47 = vld [vmem:[#allocation2 + $0x1] ss:$2 sm:$0xff]  ;;  %v2437_v53 = vld [vmem:[%s2921_s28 + $0x58] sm:$0xff]   ;;  %v515_v55 = vld [vmem:[#allocation2] ss:$2 sm:$0xff] }
  0x38   : > { %v424_v34 = vadd.f32 %v2979_v17, %v385_v27  ;;  %v425_v35 = vadd.f32 %v2979_v17, %v386_v28  ;;  %v2373_v50 = vunpack.c.l.bf16 %v2433_v49  ;;  %v2374_v51 = vunpack.c.h.bf16 %v2433_v49  ;;  %v2435_v52 = vld [vmem:[%s2921_s28 + $0x48] sm:$0xff]   ;;  %v2813_v15 = vld [vmem:[%s3282_s1 + $0xf0] sm:$0xff]  }
  0x39   : > { %2558 = vmatpush3.bf16.msra.mxu0 %v2798_v5  ;;  %v452_v37 = vmax.f32 %v420_v30, 0.0  ;;  %v453_v38 = vmax.f32 %v421_v31, 0.0  ;;  %v428_v39 = vadd.f32 %v2979_v17, %v389_v32  ;;  %v429_v40 = vadd.f32 %v2979_v17, %v390_v33  ;;  %v2439_v54 = vld [vmem:[%s2921_s28 + $0x68] sm:$0xff]  }
  0x3a   : > { %2582 = vmatpush3.bf16.msra.mxu1 %v2799_v6  ;;  %2559 = vmatprep.subr.bf16.mxu0 %v2800_v7  ;;  %v456_v41 = vmax.f32 %v424_v34, 0.0  ;;  %v457_v42 = vmax.f32 %v425_v35, 0.0  ;;  %v2381_v56 = vunpack.c.l.bf16 %v2435_v52  ;;  %v2382_v57 = vunpack.c.h.bf16 %v2435_v52  ;;  %v2814_v33 = vld [vmem:[%s3282_s1 + $0xa8] sm:$0xff]  }
  0x3b   : > { %2583 = vmatprep.subr.bf16.mxu1 %v2801_v8  ;;  %485 = vst [vmem:[#allocation2 + $0x31] sm:$0xff] %v452_v37  ;;  %486 = vst [vmem:[#allocation2 + $0x39] sm:$0xff] %v453_v38  ;;  %v460_v44 = vmax.f32 %v428_v39, 0.0  ;;  %v461_v45 = vmax.f32 %v429_v40, 0.0  ;;  %v2389_v58 = vunpack.c.l.bf16 %v2437_v53  ;;  %v2390_v59 = vunpack.c.h.bf16 %v2437_v53  ;;  %v2815_v34 = vld [vmem:[%s3282_s1 + $0xe8] sm:$0xff]   ;;  %v2344_v38 = vld [vmem:[%s2921_s28] sm:$0xff]  }
  0x3c   : > { %489 = vst [vmem:[#allocation2 + $0x61] sm:$0xff] %v456_v41  ;;  %490 = vst [vmem:[#allocation2 + $0x69] sm:$0xff] %v457_v42  ;;  %v393_v60 = vmul.f32 %v2373_v50, %v2971_v13  ;;  %v394_v61 = vmul.f32 %v2374_v51, %v2971_v13  ;;  %v2397_v62 = vunpack.c.l.bf16 %v2439_v54  ;;  %v397_v1 = vmul.f32 %v2381_v56, %v2971_v13  ;;  %v2428_v39 = vld [vmem:[%s2921_s28 + $0x10] sm:$0xff]   ;;  %v2816_v40 = vld [vmem:[%s3282_s1 + $0xa0] sm:$0xff]  }
  0x3d   : > { %2560 = vmatpush3.bf16.msra.mxu0 %v2800_v7  ;;  %493 = vst [vmem:[#allocation2 + $0x91] sm:$0xff] %v460_v44  ;;  %494 = vst [vmem:[#allocation2 + $0x99] sm:$0xff] %v461_v45  ;;  %v398_v2 = vmul.f32 %v2382_v57, %v2971_v13  ;;  %v2398_v3 = vunpack.c.h.bf16 %v2439_v54  ;;  %v401_v4 = vmul.f32 %v2389_v58, %v2971_v13  ;;  %v2345_v41 = vunpack.c.l.bf16 %v2344_v38  ;;  %v2817_v45 = vld [vmem:[%s3282_s1 + $0xe0] sm:$0xff]   ;;  %v2432_v51 = vld [vmem:[%s2921_s28 + $0x30] sm:$0xff]  }
  0x3e   : > { %2584 = vmatpush3.bf16.msra.mxu1 %v2801_v8  ;;  %2561 = vmatprep.subr.bf16.mxu0 %v2802_v9  ;;  %v436_v16 = vadd.f32 %v2979_v17, %v397_v1  ;;  %v402_v19 = vmul.f32 %v2390_v59, %v2971_v13  ;;  %v405_v20 = vmul.f32 %v2397_v62, %v2971_v13  ;;  %v2346_v42 = vunpack.c.h.bf16 %v2344_v38  ;;  %v2438_v38 = vld [vmem:[%s2921_s28 + $0x60] sm:$0xff]  }
  0x3f   : > { %2585 = vmatprep.subr.bf16.mxu1 %v2803_v10  ;;  %v437_v18 = vadd.f32 %v2979_v17, %v398_v2  ;;  %v406_v27 = vmul.f32 %v2398_v3, %v2971_v13  ;;  %v440_v28 = vadd.f32 %v2979_v17, %v401_v4  ;;  %v2354_v44 = vunpack.c.h.bf16 %v2428_v39  ;;  %v814_v2 = vld [vmem:[#allocation2 + $0x2] ss:$2 sm:$0xff] }
  0x40   : > { %v468_v25 = vmax.f32 %v436_v16, 0.0  ;;  %v444_v30 = vadd.f32 %v2979_v17, %v405_v20  ;;  %v2369_v56 = vunpack.c.l.bf16 %v2432_v51  ;;  %v2370_v57 = vunpack.c.h.bf16 %v2432_v51 }
  0x41   : > { %2562 = vmatpush3.bf16.msra.mxu0 %v2802_v9  ;;  %v2812_v9 = vld [vmem:[%s3282_s1 + $0xb0] sm:$0xff]   ;;  %v445_v31 = vadd.f32 %v2979_v17, %v406_v27  ;;  %v472_v32 = vmax.f32 %v440_v28, 0.0  ;;  %v384_v54 = vmul.f32 %v2354_v44, %v2971_v13  ;;  %v2822_v44 = vld [vmem:[%s3282_s1 + $0x88] sm:$0xff]  }
  0x42   : > { %2586 = vmatpush3.bf16.msra.mxu1 %v2803_v10  ;;  %2563 = vmatprep.subr.bf16.mxu0 %v2804_v11  ;;  %v553_v63 = vld [vmem:[#allocation2 + $0x31] ss:$2 sm:$0xff]  ;;  %v517_v0 = vld [vmem:[#allocation2 + $0x30] ss:$2 sm:$0xff]  ;;  %v432_v10 = vadd.f32 %v2979_v17, %v393_v60  ;;  %501 = vst [vmem:[#allocation2 + $0xf1] sm:$0xff] %v468_v25  ;;  %v392_v16 = vmul.f32 %v2370_v57, %v2971_v13 }
  0x43   : > { %2587 = vmatprep.subr.bf16.mxu1 %v2805_v14  ;;  %v566_v5 = vpack.c.bf16 %v553_v63, %v551_v47  ;;  %v530_v6 = vpack.c.bf16 %v517_v0, %v515_v55  ;;  %v555_v7 = vld [vmem:[#allocation2 + $0x61] ss:$2 sm:$0xff]  ;;  %v519_v8 = vld [vmem:[#allocation2 + $0x60] ss:$2 sm:$0xff]  ;;  %v477_v37 = vmax.f32 %v445_v31, 0.0  ;;  %505 = vst [vmem:[#allocation2 + $0x121] sm:$0xff] %v472_v32  ;;  %v379_v47 = vmul.f32 %v2345_v41, %v2971_v13 }
  0x44   : > { %v557_v12 = vld [vmem:[#allocation2 + $0x91] ss:$2 sm:$0xff]  ;;  %v464_v23 = vmax.f32 %v432_v10, 0.0  ;;  %v816_v3 = vld [vmem:[#allocation2 + $0x32] ss:$2 sm:$0xff]  ;;  %v423_v4 = vadd.f32 %v2979_v17, %v384_v54 }
  0x45   : > { %2564 = vmatpush3.bf16.msra.mxu0 %v2804_v11  ;;  %v433_v11 = vadd.f32 %v2979_v17, %v394_v61  ;;  %2569 = vmatprep.mubr.bf16.mxu0 %v566_v5  ;;  %v567_v21 = vpack.c.bf16 %v557_v12, %v555_v7  ;;  %510 = vst [vmem:[#allocation2 + $0x159] sm:$0xff] %v477_v37  ;;  %v2818_v5 = vld [vmem:[%s3282_s1 + $0x98] sm:$0xff]  }
  0x46   : > { %2588 = vmatpush3.bf16.msra.mxu1 %v2805_v14  ;;  %2565 = vmatprep.subr.bf16.mxu0 %v2806_v26  ;;  %v521_v14 = vld [vmem:[#allocation2 + $0x90] ss:$2 sm:$0xff]  ;;  %497 = vst [vmem:[#allocation2 + $0xc1] sm:$0xff] %v464_v23  ;;  %v418_v60 = vadd.f32 %v2979_v17, %v379_v47 }
  0x47   : > { %2589 = vmatprep.subr.bf16.mxu1 %v2807_v29  ;;  %2593 = vmatprep.mubr.bf16.mxu1 %v530_v6  ;;  %v531_v22 = vpack.c.bf16 %v521_v14, %v519_v8  ;;  %v465_v24 = vmax.f32 %v433_v11, 0.0  ;;  %v2819_v6 = vld [vmem:[%s3282_s1 + $0xd8] sm:$0xff]   ;;  %v455_v14 = vmax.f32 %v423_v4, 0.0 }
  0x48   : > { %v450_v7 = vmax.f32 %v418_v60, 0.0 }
  0x49   : > { %2566 = vmatpush3.bf16.msra.mxu0 %v2806_v26  ;;  %v469_v26 = vmax.f32 %v437_v18, 0.0  ;;  %498 = vst [vmem:[#allocation2 + $0xc9] sm:$0xff] %v465_v24  ;;  %488 = vst [vmem:[#allocation2 + $0x51] sm:$0xff] %v455_v14 }
  0x4a   : > { %2590 = vmatpush3.bf16.msra.mxu1 %v2807_v29  ;;  %2567 = vmatprep.subr.bf16.mxu0 %v2808_v36  ;;  %v441_v29 = vadd.f32 %v2979_v17, %v402_v19  ;;  %483 = vst [vmem:[#allocation2 + $0x19] sm:$0xff] %v450_v7 }
  0x4b   : > { %2591 = vmatprep.subr.bf16.mxu1 %v2809_v43  ;;  %502 = vst [vmem:[#allocation2 + $0xf9] sm:$0xff] %v469_v26  ;;  %v2821_v26 = vld [vmem:[%s3282_s1 + $0xd0] sm:$0xff]  }
  0x4c   : > { %v473_v35 = vmax.f32 %v441_v29, 0.0  ;;  %v2434_v29 = vld [vmem:[%s2921_s28 + $0x40] sm:$0xff]  }
  0x4d   : > { %2568 = vmatpush3.bf16.msra.mxu0 %v2808_v36  ;;  %v476_v36 = vmax.f32 %v444_v30, 0.0  ;;  %v431_v30 = vadd.f32 %v2979_v17, %v392_v16  ;;  %v2377_v32 = vunpack.c.l.bf16 %v2434_v29 }
  0x4e   : > { %2592 = vmatpush3.bf16.msra.mxu1 %v2809_v43  ;;  %2601 = vmatprep.subr.bf16.mxu0 %v2810_v46  ;;  %506 = vst [vmem:[#allocation2 + $0x129] sm:$0xff] %v473_v35  ;;  %v2353_v43 = vunpack.c.l.bf16 %v2428_v39  ;;  %v2378_v35 = vunpack.c.h.bf16 %v2434_v29  ;;  %v2440_v39 = vld [vmem:[%s2921_s28 + $0x70] sm:$0xff]  }
  0x4f   : > { %2625 = vmatprep.subr.bf16.mxu1 %v2811_v48  ;;  %509 = vst [vmem:[#allocation2 + $0x151] sm:$0xff] %v476_v36  ;;  %v395_v41 = vmul.f32 %v2377_v32, %v2971_v13  ;;  %v2402_v51 = vunpack.c.h.bf16 %v2440_v39 }
  0x50   : > { %2570 = vmatmul.mubr.bf16.vlgmr.msra.gmra.mxu0 %v567_v21  ;;  %v383_v49 = vmul.f32 %v2353_v43, %v2971_v13  ;;  %v559_v52 = vld [vmem:[#allocation2 + $0xc1] ss:$2 sm:$0xff]  ;;  %v523_v53 = vld [vmem:[#allocation2 + $0xc0] ss:$2 sm:$0xff]  ;;  %v3077_v21 = vld [vmem:[%s3282_s1 + $0x90] sm:$0xff]   ;;  %v2394_v43 = vunpack.c.h.bf16 %v2438_v38 }
  0x51   : > { %2594 = vmatmul.mubr.bf16.vlgmr.msra.gmra.mxu1 %v531_v22  ;;  %2602 = vmatpush3.bf16.msra.mxu0 %v2810_v46  ;;  %v2430_v46 = vld [vmem:[%s2921_s28 + $0x20] sm:$0xff]   ;;  %v829_v22 = vpack.c.bf16 %v816_v3, %v814_v2 }
  0x52   : > { %2626 = vmatpush3.bf16.msra.mxu1 %v2811_v48  ;;  %2603 = vmatprep.subr.bf16.mxu0 %v2812_v9  ;;  %v380_v48 = vmul.f32 %v2346_v42, %v2971_v13  ;;  %v2361_v50 = vunpack.c.l.bf16 %v2430_v46  ;;  %v2362_v55 = vunpack.c.h.bf16 %v2430_v46  ;;  %v561_v58 = vld [vmem:[#allocation2 + $0xf1] ss:$2 sm:$0xff]  ;;  %v525_v59 = vld [vmem:[#allocation2 + $0xf0] ss:$2 sm:$0xff]  ;;  %v422_v62 = vadd.f32 %v2979_v17, %v383_v49  ;;  %v2823_v49 = vld [vmem:[%s3282_s1 + $0xc8] sm:$0xff]  }
  0x53   : > { %2627 = vmatprep.subr.bf16.mxu1 %v2813_v15  ;;  %v568_v0 = vpack.c.bf16 %v561_v58, %v559_v52  ;;  %v532_v1 = vpack.c.bf16 %v525_v59, %v523_v53  ;;  %v2393_v42 = vunpack.c.l.bf16 %v2438_v38  ;;  %v404_v53 = vmul.f32 %v2394_v43, %v2971_v13  ;;  %v2824_v59 = vld [vmem:[%s3282_s1 + $0x80] sm:$0xff]  }
  0x54   : > { %v419_v61 = vadd.f32 %v2979_v17, %v380_v48  ;;  %v387_v63 = vmul.f32 %v2361_v50, %v2971_v13  ;;  %v388_v10 = vmul.f32 %v2362_v55, %v2971_v13  ;;  %v2401_v48 = vunpack.c.l.bf16 %v2440_v39  ;;  %v2833_v43 = vld [vmem:[%s3282_s1 + $0x160] sm:$0xff]  }
  0x55   : > { %2604 = vmatpush3.bf16.msra.mxu0 %v2812_v9  ;;  %v454_v9 = vmax.f32 %v422_v62, 0.0  ;;  %2573 = vmatprep.mubr.bf16.mxu0 %v568_v0  ;;  %v563_v11 = vld [vmem:[#allocation2 + $0x121] ss:$2 sm:$0xff]  ;;  %v527_v12 = vld [vmem:[#allocation2 + $0x120] ss:$2 sm:$0xff]  ;;  %v434_v50 = vadd.f32 %v2979_v17, %v395_v41  ;;  %v403_v52 = vmul.f32 %v2393_v42, %v2971_v13  ;;  %v408_v62 = vmul.f32 %v2402_v51, %v2971_v13 }
  0x56   : > { %2628 = vmatpush3.bf16.msra.mxu1 %v2813_v15  ;;  %2605 = vmatprep.subr.bf16.mxu0 %v2814_v33  ;;  %v451_v8 = vmax.f32 %v419_v61, 0.0  ;;  %v391_v15 = vmul.f32 %v2369_v56, %v2971_v13  ;;  %v426_v18 = vadd.f32 %v2979_v17, %v387_v63  ;;  %v565_v19 = vld [vmem:[#allocation2 + $0x151] ss:$2 sm:$0xff]  ;;  %v529_v20 = vld [vmem:[#allocation2 + $0x150] ss:$2 sm:$0xff]  ;;  %v427_v23 = vadd.f32 %v2979_v17, %v388_v10  ;;  %v2832_v42 = vld [vmem:[%s3282_s1 + $0x120] sm:$0xff]  }
  0x57   : > { %2629 = vmatprep.subr.bf16.mxu1 %v2815_v34  ;;  %2597 = vmatprep.mubr.bf16.mxu1 %v532_v1  ;;  %487 = vst [vmem:[#allocation2 + $0x49] sm:$0xff] %v454_v9  ;;  %v569_v24 = vpack.c.bf16 %v565_v19, %v563_v11  ;;  %v533_v25 = vpack.c.bf16 %v529_v20, %v527_v12  ;;  %v466_v61 = vmax.f32 %v434_v50, 0.0  ;;  %v2825_v1 = vld [vmem:[%s3282_s1 + $0xc0] sm:$0xff]   ;;  %v2826_v12 = vld [vmem:[%s3282_s1 + $0x138] sm:$0xff]   ;;  %v2838_v50 = vld [vmem:[%s3282_s1 + $0x108] sm:$0xff]  }
  0x58   : > { %484 = vst [vmem:[#allocation2 + $0x21] sm:$0xff] %v451_v8  ;;  %v430_v27 = vadd.f32 %v2979_v17, %v391_v15  ;;  %v458_v28 = vmax.f32 %v426_v18, 0.0  ;;  %v459_v31 = vmax.f32 %v427_v23, 0.0  ;;  %v407_v58 = vmul.f32 %v2401_v48, %v2971_v13  ;;  %v818_v10 = vld [vmem:[#allocation2 + $0x62] ss:$2 sm:$0xff]  ;;  %v2827_v19 = vld [vmem:[%s3282_s1 + $0x178] sm:$0xff]  }
  0x59   : > { %2606 = vmatpush3.bf16.msra.mxu0 %v2814_v33  ;;  %v2436_v33 = vld [vmem:[%s2921_s28 + $0x50] sm:$0xff]   ;;  %2598 = vmatmul.mubr.bf16.gmra.mxu1 %v533_v25  ;;  %v442_v63 = vadd.f32 %v2979_v17, %v403_v52  ;;  %v443_v0 = vadd.f32 %v2979_v17, %v404_v53  ;;  %499 = vst [vmem:[#allocation2 + $0xd9] sm:$0xff] %v466_v61  ;;  %v2839_v51 = vld [vmem:[%s3282_s1 + $0x148] sm:$0xff]   ;;  %v2840_v52 = vld [vmem:[%s3282_s1 + $0x100] sm:$0xff]  }
  0x5a   : > { %2630 = vmatpush3.bf16.msra.mxu1 %v2815_v34  ;;  %2607 = vmatprep.subr.bf16.mxu0 %v2816_v40  ;;  %v462_v34 = vmax.f32 %v430_v27, 0.0  ;;  %491 = vst [vmem:[#allocation2 + $0x79] sm:$0xff] %v458_v28  ;;  %v2385_v36 = vunpack.c.l.bf16 %v2436_v33  ;;  %v2386_v37 = vunpack.c.h.bf16 %v2436_v33  ;;  %492 = vst [vmem:[#allocation2 + $0x81] sm:$0xff] %v459_v31  ;;  %v447_v7 = vadd.f32 %v2979_v17, %v408_v62  ;;  %v820_v11 = vld [vmem:[#allocation2 + $0x92] ss:$2 sm:$0xff]  ;;  %v2830_v31 = vld [vmem:[%s3282_s1 + $0x128] sm:$0xff]  }
  0x5b   : > { %2631 = vmatprep.subr.bf16.mxu1 %v2817_v45  ;;  %2574 = vmatmul.mubr.bf16.gmra.mxu0 %v569_v24  ;;  %v474_v8 = vmax.f32 %v442_v63, 0.0  ;;  %v475_v9 = vmax.f32 %v443_v0, 0.0  ;;  %v830_v20 = vpack.c.bf16 %v820_v11, %v818_v10  ;;  %v824_v23 = vld [vmem:[#allocation2 + $0xf2] ss:$2 sm:$0xff] }
  0x5c   : > { %2617 = vmatprep.mubr.bf16.mxu0 %v829_v22  ;;  %495 = vst [vmem:[#allocation2 + $0xa9] sm:$0xff] %v462_v34  ;;  %v399_v46 = vmul.f32 %v2385_v36, %v2971_v13  ;;  %v400_v47 = vmul.f32 %v2386_v37, %v2971_v13  ;;  %v479_v16 = vmax.f32 %v447_v7, 0.0  ;;  %v822_v22 = vld [vmem:[#allocation2 + $0xc2] ss:$2 sm:$0xff]  ;;  %v828_v32 = vld [vmem:[#allocation2 + $0x152] ss:$2 sm:$0xff] }
  0x5d   : > { %2608 = vmatpush3.bf16.msra.mxu0 %v2816_v40  ;;  %v463_v40 = vmax.f32 %v431_v30, 0.0  ;;  %507 = vst [vmem:[#allocation2 + $0x139] sm:$0xff] %v474_v8  ;;  %508 = vst [vmem:[#allocation2 + $0x141] sm:$0xff] %v475_v9  ;;  %v2828_v24 = vld [vmem:[%s3282_s1 + $0x130] sm:$0xff]   ;;  %v831_v28 = vpack.c.bf16 %v824_v23, %v822_v22  ;;  %v2841_v53 = vld [vmem:[%s3282_s1 + $0x140] sm:$0xff]  }
  0x5e   : > { %2632 = vmatpush3.bf16.msra.mxu1 %v2817_v45  ;;  %2609 = vmatprep.subr.bf16.mxu0 %v2818_v5  ;;  %v396_v45 = vmul.f32 %v2378_v35, %v2971_v13  ;;  %v438_v56 = vadd.f32 %v2979_v17, %v399_v46  ;;  %v439_v57 = vadd.f32 %v2979_v17, %v400_v47  ;;  %v973_v60 = vld [vmem:[#allocation2 + $0x48] ss:$2 sm:$0xff]  ;;  %v1131_v39 = vld [vmem:[#allocation2 + $0x49] ss:$2 sm:$0xff]  ;;  %v2834_v46 = vld [vmem:[%s3282_s1 + $0x118] sm:$0xff]  }
  0x5f   : > { %2633 = vmatprep.subr.bf16.mxu1 %v2819_v6  ;;  %496 = vst [vmem:[#allocation2 + $0xb1] sm:$0xff] %v463_v40  ;;  %v971_v54 = vld [vmem:[#allocation2 + $0x18] ss:$2 sm:$0xff]  ;;  %512 = vst [vmem:[#allocation2 + $0x171] sm:$0xff] %v479_v16  ;;  %v2829_v25 = vld [vmem:[%s3282_s1 + $0x170] sm:$0xff]  }
  0x60   : > { %v435_v55 = vadd.f32 %v2979_v17, %v396_v45  ;;  %v986_v2 = vpack.c.bf16 %v973_v60, %v971_v54  ;;  %v470_v4 = vmax.f32 %v438_v56, 0.0  ;;  %v826_v30 = vld [vmem:[#allocation2 + $0x122] ss:$2 sm:$0xff]  ;;  %v1129_v36 = vld [vmem:[#allocation2 + $0x19] ss:$2 sm:$0xff] }
  0x61   : > { %2610 = vmatpush3.bf16.msra.mxu0 %v2818_v5  ;;  %v471_v5 = vmax.f32 %v439_v57, 0.0  ;;  %v975_v14 = vld [vmem:[#allocation2 + $0x78] ss:$2 sm:$0xff]  ;;  %v2831_v35 = vld [vmem:[%s3282_s1 + $0x168] sm:$0xff]   ;;  %v832_v37 = vpack.c.bf16 %v828_v32, %v826_v30  ;;  %v2836_v48 = vld [vmem:[%s3282_s1 + $0x110] sm:$0xff]  }
  0x62   : > { %2634 = vmatpush3.bf16.msra.mxu1 %v2819_v6  ;;  %2611 = vmatprep.subr.bf16.mxu0 %v3077_v21  ;;  %v467_v3 = vmax.f32 %v435_v55, 0.0  ;;  %v446_v6 = vadd.f32 %v2979_v17, %v407_v58  ;;  %503 = vst [vmem:[#allocation2 + $0x109] sm:$0xff] %v470_v4  ;;  %v1287_v40 = vld [vmem:[#allocation2 + $0x1a] ss:$2 sm:$0xff]  ;;  %v1289_v41 = vld [vmem:[#allocation2 + $0x4a] ss:$2 sm:$0xff] }
  0x63   : > { %2635 = vmatprep.subr.bf16.mxu1 %v2821_v26  ;;  %2641 = vmatprep.mubr.bf16.mxu1 %v986_v2  ;;  %504 = vst [vmem:[#allocation2 + $0x111] sm:$0xff] %v471_v5  ;;  %v1302_v45 = vpack.c.bf16 %v1289_v41, %v1287_v40  ;;  %v2835_v47 = vld [vmem:[%s3282_s1 + $0x158] sm:$0xff]   ;;  %v2844_v7 = vld [vmem:[%s3282_s1 + $0x1b0] sm:$0xff]   ;;  %v1451_v40 = vld [vmem:[#allocation2 + $0xc0] ss:$2 sm:$0xff] }
  0x64   : > { %500 = vst [vmem:[#allocation2 + $0xe1] sm:$0xff] %v467_v3  ;;  %v478_v15 = vmax.f32 %v446_v6, 0.0  ;;  %v983_v33 = vld [vmem:[#allocation2 + $0x138] ss:$2 sm:$0xff]  ;;  %v1133_v54 = vld [vmem:[#allocation2 + $0x79] ss:$2 sm:$0xff] }
  0x65   : > { %2612 = vmatpush3.bf16.msra.mxu0 %v3077_v21  ;;  %v2842_v56 = vld [vmem:[%s3282_s1 + $0x1b8] sm:$0xff]   ;;  %v2845_v10 = vld [vmem:[%s3282_s1 + $0x1f0] sm:$0xff]  }
  0x66   : > { %2636 = vmatpush3.bf16.msra.mxu1 %v2821_v26  ;;  %2613 = vmatprep.subr.bf16.mxu0 %v2822_v44  ;;  %v977_v18 = vld [vmem:[#allocation2 + $0xa8] ss:$2 sm:$0xff]  ;;  %511 = vst [vmem:[#allocation2 + $0x169] sm:$0xff] %v478_v15  ;;  %v1135_v55 = vld [vmem:[#allocation2 + $0xa9] ss:$2 sm:$0xff]  ;;  %v2843_v57 = vld [vmem:[%s3282_s1 + $0x1f8] sm:$0xff]  }
  0x67   : > { %2637 = vmatprep.subr.bf16.mxu1 %v2823_v49  ;;  %v987_v21 = vpack.c.bf16 %v977_v18, %v975_v14  ;;  %v2441_v58 = vld [vmem:[%s2921_s28 + $0x78] sm:$0xff]   ;;  %v1145_v4 = vpack.c.bf16 %v1135_v55, %v1133_v54 }
  0x68   : > { %v1293_v60 = vld [vmem:[#allocation2 + $0xaa] ss:$2 sm:$0xff]  ;;  %v2405_v61 = vunpack.c.l.bf16 %v2441_v58  ;;  %v2406_v62 = vunpack.c.h.bf16 %v2441_v58  ;;  %v1141_v15 = vld [vmem:[#allocation2 + $0x139] ss:$2 sm:$0xff]  ;;  %v1299_v18 = vld [vmem:[#allocation2 + $0x13a] ss:$2 sm:$0xff] }
  0x69   : > { %2614 = vmatpush3.bf16.msra.mxu0 %v2822_v44  ;;  %v1144_v44 = vpack.c.bf16 %v1131_v39, %v1129_v36  ;;  %v2851_v32 = vld [vmem:[%s3282_s1 + $0x1d8] sm:$0xff]   ;;  %v2855_v36 = vld [vmem:[%s3282_s1 + $0x1c8] sm:$0xff]  }
  0x6a   : > { %2638 = vmatpush3.bf16.msra.mxu1 %v2823_v49  ;;  %2615 = vmatprep.subr.bf16.mxu0 %v2824_v59  ;;  %v981_v27 = vld [vmem:[#allocation2 + $0x108] ss:$2 sm:$0xff]  ;;  %v1139_v0 = vld [vmem:[#allocation2 + $0x109] ss:$2 sm:$0xff]  ;;  %v409_v2 = vmul.f32 %v2405_v61, %v2971_v13  ;;  %v410_v3 = vmul.f32 %v2406_v62, %v2971_v13 }
  0x6b   : > { %2639 = vmatprep.subr.bf16.mxu1 %v2825_v1  ;;  %v979_v26 = vld [vmem:[#allocation2 + $0xd8] ss:$2 sm:$0xff]  ;;  %v2837_v49 = vld [vmem:[%s3282_s1 + $0x150] sm:$0xff]   ;;  %v1137_v63 = vld [vmem:[#allocation2 + $0xd9] ss:$2 sm:$0xff] }
  0x6c   : > { %v988_v29 = vpack.c.bf16 %v981_v27, %v979_v26  ;;  %v1297_v6 = vld [vmem:[#allocation2 + $0x10a] ss:$2 sm:$0xff]  ;;  %v448_v8 = vadd.f32 %v2979_v17, %v409_v2  ;;  %v449_v9 = vadd.f32 %v2979_v17, %v410_v3  ;;  %v1146_v13 = vpack.c.bf16 %v1139_v0, %v1137_v63  ;;  %v1605_v26 = vld [vmem:[#allocation2 + $0x61] ss:$2 sm:$0xff]  ;;  %v1607_v41 = vld [vmem:[#allocation2 + $0x91] ss:$2 sm:$0xff] }
  0x6d   : > { %2616 = vmatpush3.bf16.msra.mxu0 %v2824_v59  ;;  %v985_v34 = vld [vmem:[#allocation2 + $0x168] ss:$2 sm:$0xff]  ;;  %v1143_v16 = vld [vmem:[#allocation2 + $0x169] ss:$2 sm:$0xff]  ;;  %v2848_v27 = vld [vmem:[%s3282_s1 + $0x1a0] sm:$0xff]  }
  0x6e   : > { %2640 = vmatpush3.bf16.msra.mxu1 %v2825_v1  ;;  %2649 = vmatprep.subr.bf16.mxu0 %v2826_v12  ;;  %v989_v38 = vpack.c.bf16 %v985_v34, %v983_v33  ;;  %v1291_v59 = vld [vmem:[#allocation2 + $0x7a] ss:$2 sm:$0xff]  ;;  %v481_v14 = vmax.f32 %v449_v9, 0.0  ;;  %v1147_v22 = vpack.c.bf16 %v1143_v16, %v1141_v15  ;;  %v2852_v33 = vld [vmem:[%s3282_s1 + $0x190] sm:$0xff]  }
  0x6f   : > { %2673 = vmatprep.subr.bf16.mxu1 %v2827_v19  ;;  %v1295_v1 = vld [vmem:[#allocation2 + $0xda] ss:$2 sm:$0xff]  ;;  %v1303_v5 = vpack.c.bf16 %v1293_v60, %v1291_v59  ;;  %v2853_v34 = vld [vmem:[%s3282_s1 + $0x1d0] sm:$0xff]  }
  0x70   : > { %2618 = vmatmul.mubr.bf16.vlgmr.msra.gmra.mxu0 %v830_v20  ;;  %v1304_v11 = vpack.c.bf16 %v1297_v6, %v1295_v1  ;;  %514 = vst [vmem:[#allocation2 + $0x189] sm:$0xff] %v481_v14  ;;  %v2846_v17 = vld [vmem:[%s3282_s1 + $0x1a8] sm:$0xff]   ;;  %v1449_v39 = vld [vmem:[#allocation2 + $0x90] ss:$2 sm:$0xff]  ;;  %v1615_v55 = vld [vmem:[#allocation2 + $0x151] ss:$2 sm:$0xff] }
  0x71   : > { %2642 = vmatmul.mubr.bf16.vlgmr.msra.gmra.mxu1 %v987_v21  ;;  %2650 = vmatpush3.bf16.msra.mxu0 %v2826_v12  ;;  %v480_v12 = vmax.f32 %v448_v8, 0.0  ;;  %v2847_v20 = vld [vmem:[%s3282_s1 + $0x1e8] sm:$0xff]   ;;  %v1445_v21 = vld [vmem:[#allocation2 + $0x30] ss:$2 sm:$0xff]  ;;  %v2861_v0 = vld [vmem:[%s3282_s1 + $0x220] sm:$0xff]  }
  0x72   : > { %2674 = vmatpush3.bf16.msra.mxu1 %v2827_v19  ;;  %2651 = vmatprep.subr.bf16.mxu0 %v2828_v24  ;;  %v1301_v19 = vld [vmem:[#allocation2 + $0x16a] ss:$2 sm:$0xff]  ;;  %v2865_v6 = vld [vmem:[%s3282_s1 + $0x200] sm:$0xff]  }
  0x73   : > { %2675 = vmatprep.subr.bf16.mxu1 %v2829_v25  ;;  %2621 = vmatprep.mubr.bf16.mxu0 %v831_v28  ;;  %513 = vst [vmem:[#allocation2 + $0x181] sm:$0xff] %v480_v12  ;;  %v1305_v23 = vpack.c.bf16 %v1301_v19, %v1299_v18  ;;  %v2849_v28 = vld [vmem:[%s3282_s1 + $0x1e0] sm:$0xff]   ;;  %v2862_v3 = vld [vmem:[%s3282_s1 + $0x218] sm:$0xff]  }
  0x74   : > { %2645 = vmatprep.mubr.bf16.mxu1 %v988_v29  ;;  %v1761_v58 = vld [vmem:[#allocation2 + $0x32] ss:$2 sm:$0xff]  ;;  %v1763_v61 = vld [vmem:[#allocation2 + $0x62] ss:$2 sm:$0xff] }
  0x75   : > { %2652 = vmatpush3.bf16.msra.mxu0 %v2828_v24  ;;  %v1447_v24 = vld [vmem:[#allocation2 + $0x60] ss:$2 sm:$0xff]  ;;  %v1776_v1 = vpack.c.bf16 %v1763_v61, %v1761_v58 }
  0x76   : > { %2676 = vmatpush3.bf16.msra.mxu1 %v2829_v25  ;;  %2653 = vmatprep.subr.bf16.mxu0 %v2830_v31  ;;  %v1603_v25 = vld [vmem:[#allocation2 + $0x31] ss:$2 sm:$0xff]  ;;  %v1460_v29 = vpack.c.bf16 %v1447_v24, %v1445_v21  ;;  %v1769_v62 = vld [vmem:[#allocation2 + $0xf2] ss:$2 sm:$0xff]  ;;  %v1771_v63 = vld [vmem:[#allocation2 + $0x122] ss:$2 sm:$0xff] }
  0x77   : > { %2677 = vmatprep.subr.bf16.mxu1 %v2831_v35  ;;  %v1618_v30 = vpack.c.bf16 %v1605_v26, %v1603_v25  ;;  %v1778_v2 = vpack.c.bf16 %v1771_v63, %v1769_v62  ;;  %v1767_v8 = vld [vmem:[#allocation2 + $0xc2] ss:$2 sm:$0xff]  ;;  %v1773_v9 = vld [vmem:[#allocation2 + $0x152] ss:$2 sm:$0xff] }
  0x78   : > { %2622 = vmatmul.mubr.bf16.gmra.mxu0 %v832_v37  ;;  %v2856_v37 = vld [vmem:[%s3282_s1 + $0x180] sm:$0xff]  }
  0x79   : > { %2646 = vmatmul.mubr.bf16.gmra.mxu1 %v989_v38  ;;  %2654 = vmatpush3.bf16.msra.mxu0 %v2830_v31  ;;  %v2850_v31 = vld [vmem:[%s3282_s1 + $0x198] sm:$0xff]   ;;  %v2857_v38 = vld [vmem:[%s3282_s1 + $0x1c0] sm:$0xff]  }
  0x7a   : > { %2678 = vmatpush3.bf16.msra.mxu1 %v2831_v35  ;;  %2655 = vmatprep.subr.bf16.mxu0 %v2832_v42  ;;  %v2854_v35 = vld [vmem:[%s3282_s1 + $0x188] sm:$0xff]  }
  0x7b   : > { %2679 = vmatprep.subr.bf16.mxu1 %v2833_v43  ;;  %2665 = vmatprep.mubr.bf16.mxu0 %v1144_v44  ;;  %v1453_v44 = vld [vmem:[#allocation2 + $0xf0] ss:$2 sm:$0xff]  ;;  %v1459_v54 = vld [vmem:[#allocation2 + $0x180] ss:$2 sm:$0xff] }
  0x7c   : > { %2689 = vmatprep.mubr.bf16.mxu1 %v1302_v45  ;;  %v1461_v45 = vpack.c.bf16 %v1451_v40, %v1449_v39 }
  0x7d   : > { %2656 = vmatpush3.bf16.msra.mxu0 %v2832_v42  ;;  %v1609_v42 = vld [vmem:[#allocation2 + $0xc1] ss:$2 sm:$0xff] }
  0x7e   : > { %2680 = vmatpush3.bf16.msra.mxu1 %v2833_v43  ;;  %2657 = vmatprep.subr.bf16.mxu0 %v2834_v46  ;;  %v2858_v43 = vld [vmem:[%s3282_s1 + $0x238] sm:$0xff]  }
  0x7f   : > { %2681 = vmatprep.subr.bf16.mxu1 %v2835_v47 }
  0x81   : > { %2658 = vmatpush3.bf16.msra.mxu0 %v2834_v46  ;;  %v1619_v46 = vpack.c.bf16 %v1609_v42, %v1607_v41 }
  0x82   : > { %2682 = vmatpush3.bf16.msra.mxu1 %v2835_v47  ;;  %2659 = vmatprep.subr.bf16.mxu0 %v2836_v48  ;;  %v1455_v47 = vld [vmem:[#allocation2 + $0x120] ss:$2 sm:$0xff] }
  0x83   : > { %2683 = vmatprep.subr.bf16.mxu1 %v2837_v49 }
  0x85   : > { %2660 = vmatpush3.bf16.msra.mxu0 %v2836_v48  ;;  %v1611_v48 = vld [vmem:[#allocation2 + $0xf1] ss:$2 sm:$0xff] }
  0x86   : > { %2684 = vmatpush3.bf16.msra.mxu1 %v2837_v49  ;;  %2661 = vmatprep.subr.bf16.mxu0 %v2838_v50  ;;  %v1613_v49 = vld [vmem:[#allocation2 + $0x121] ss:$2 sm:$0xff] }
  0x87   : > { %2685 = vmatprep.subr.bf16.mxu1 %v2839_v51 }
  0x89   : > { %2662 = vmatpush3.bf16.msra.mxu0 %v2838_v50  ;;  %v2859_v50 = vld [vmem:[%s3282_s1 + $0x230] sm:$0xff]  }
  0x8a   : > { %2686 = vmatpush3.bf16.msra.mxu1 %v2839_v51  ;;  %2663 = vmatprep.subr.bf16.mxu0 %v2840_v52  ;;  %v1462_v51 = vpack.c.bf16 %v1455_v47, %v1453_v44 }
  0x8b   : > { %2687 = vmatprep.subr.bf16.mxu1 %v2841_v53 }
  0x8d   : > { %2664 = vmatpush3.bf16.msra.mxu0 %v2840_v52  ;;  %v1620_v52 = vpack.c.bf16 %v1613_v49, %v1611_v48 }
  0x8e   : > { %2688 = vmatpush3.bf16.msra.mxu1 %v2841_v53  ;;  %2697 = vmatprep.subr.bf16.mxu0 %v2842_v56  ;;  %v1457_v53 = vld [vmem:[#allocation2 + $0x150] ss:$2 sm:$0xff] }
  0x8f   : > { %2721 = vmatprep.subr.bf16.mxu1 %v2843_v57  ;;  %v1463_v59 = vpack.c.bf16 %v1459_v54, %v1457_v53 }
  0x90   : > { %2666 = vmatmul.mubr.bf16.vlgmr.msra.gmra.mxu0 %v1145_v4  ;;  %v2863_v4 = vld [vmem:[%s3282_s1 + $0x210] sm:$0xff]  }
  0x91   : > { %2690 = vmatmul.mubr.bf16.vlgmr.msra.gmra.mxu1 %v1303_v5  ;;  %2698 = vmatpush3.bf16.msra.mxu0 %v2842_v56  ;;  %v1617_v56 = vld [vmem:[#allocation2 + $0x181] ss:$2 sm:$0xff] }
  0x92   : > { %2722 = vmatpush3.bf16.msra.mxu1 %v2843_v57  ;;  %2699 = vmatprep.subr.bf16.mxu0 %v2844_v7  ;;  %v2860_v57 = vld [vmem:[%s3282_s1 + $0x228] sm:$0xff]   ;;  %v1621_v60 = vpack.c.bf16 %v1617_v56, %v1615_v55 }
  0x93   : > { %2723 = vmatprep.subr.bf16.mxu1 %v2845_v10  ;;  %2669 = vmatprep.mubr.bf16.mxu0 %v1146_v13  ;;  %v2864_v5 = vld [vmem:[%s3282_s1 + $0x208] sm:$0xff]  }
  0x94   : > { %2693 = vmatprep.mubr.bf16.mxu1 %v1304_v11 }
  0x95   : > { %2700 = vmatpush3.bf16.msra.mxu0 %v2844_v7  ;;  %v1765_v7 = vld [vmem:[#allocation2 + $0x92] ss:$2 sm:$0xff] }
  0x96   : > { %2724 = vmatpush3.bf16.msra.mxu1 %v2845_v10  ;;  %2701 = vmatprep.subr.bf16.mxu0 %v2846_v17  ;;  %v1775_v10 = vld [vmem:[#allocation2 + $0x182] ss:$2 sm:$0xff]  ;;  %v1777_v13 = vpack.c.bf16 %v1767_v8, %v1765_v7 }
  0x97   : > { %2725 = vmatprep.subr.bf16.mxu1 %v2847_v20  ;;  %v1779_v11 = vpack.c.bf16 %v1775_v10, %v1773_v9 }
  0x98   : > { %2670 = vmatmul.mubr.bf16.gmra.mxu0 %v1147_v22 }
  0x99   : > { %2694 = vmatmul.mubr.bf16.gmra.mxu1 %v1305_v23  ;;  %2702 = vmatpush3.bf16.msra.mxu0 %v2846_v17 }
  0x9a   : > { %2726 = vmatpush3.bf16.msra.mxu1 %v2847_v20  ;;  %2703 = vmatprep.subr.bf16.mxu0 %v2848_v27 }
  0x9b   : > { %2727 = vmatprep.subr.bf16.mxu1 %v2849_v28  ;;  %2713 = vmatprep.mubr.bf16.mxu0 %v1460_v29 }
  0x9c   : > { %2737 = vmatprep.mubr.bf16.mxu1 %v1618_v30 }
  0x9d   : > { %2704 = vmatpush3.bf16.msra.mxu0 %v2848_v27 }
  0x9e   : > { %2728 = vmatpush3.bf16.msra.mxu1 %v2849_v28  ;;  %2705 = vmatprep.subr.bf16.mxu0 %v2850_v31 }
  0x9f   : > { %2729 = vmatprep.subr.bf16.mxu1 %v2851_v32 }
  0xa1   : > { %2706 = vmatpush3.bf16.msra.mxu0 %v2850_v31 }
  0xa2   : > { %2730 = vmatpush3.bf16.msra.mxu1 %v2851_v32  ;;  %2707 = vmatprep.subr.bf16.mxu0 %v2852_v33 }
  0xa3   : > { %2731 = vmatprep.subr.bf16.mxu1 %v2853_v34 }
  0xa5   : > { %2708 = vmatpush3.bf16.msra.mxu0 %v2852_v33 }
  0xa6   : > { %2732 = vmatpush3.bf16.msra.mxu1 %v2853_v34  ;;  %2709 = vmatprep.subr.bf16.mxu0 %v2854_v35 }
  0xa7   : > { %2733 = vmatprep.subr.bf16.mxu1 %v2855_v36 }
  0xa9   : > { %2710 = vmatpush3.bf16.msra.mxu0 %v2854_v35 }
  0xaa   : > { %2734 = vmatpush3.bf16.msra.mxu1 %v2855_v36  ;;  %2711 = vmatprep.subr.bf16.mxu0 %v2856_v37 }
  0xab   : > { %2735 = vmatprep.subr.bf16.mxu1 %v2857_v38 }
  0xad   : > { %2712 = vmatpush3.bf16.msra.mxu0 %v2856_v37 }
  0xae   : > { %2736 = vmatpush3.bf16.msra.mxu1 %v2857_v38  ;;  %2745 = vmatprep.subr.bf16.mxu0 %v2858_v43 }
  0xaf   : > { %2769 = vmatprep.subr.bf16.mxu1 %v2858_v43 }
  0xb0   : > { %2714 = vmatmul.mubr.bf16.vlgmr.msra.gmra.mxu0 %v1461_v45 }
  0xb1   : > { %2738 = vmatmul.mubr.bf16.vlgmr.msra.gmra.mxu1 %v1619_v46  ;;  %2746 = vmatpush3.bf16.msra.mxu0 %v2858_v43 }
  0xb2   : > { %2777 = vmatpush3.bf16.msra.mxu1 %v2858_v43  ;;  %2747 = vmatprep.subr.bf16.mxu0 %v2859_v50 }
  0xb3   : > { %2770 = vmatprep.subr.bf16.mxu1 %v2859_v50  ;;  %2717 = vmatprep.mubr.bf16.mxu0 %v1462_v51 }
  0xb4   : > { %2741 = vmatprep.mubr.bf16.mxu1 %v1620_v52 }
  0xb5   : > { %2748 = vmatpush3.bf16.msra.mxu0 %v2859_v50 }
  0xb6   : > { %2778 = vmatpush3.bf16.msra.mxu1 %v2859_v50  ;;  %2749 = vmatprep.subr.bf16.mxu0 %v2860_v57 }
  0xb7   : > { %2771 = vmatprep.subr.bf16.mxu1 %v2860_v57 }
  0xb8   : > { %2718 = vmatmul.mubr.bf16.gmra.mxu0 %v1463_v59 }
  0xb9   : > { %2742 = vmatmul.mubr.bf16.gmra.mxu1 %v1621_v60  ;;  %2750 = vmatpush3.bf16.msra.mxu0 %v2860_v57 }
  0xba   : > { %2779 = vmatpush3.bf16.msra.mxu1 %v2860_v57  ;;  %2751 = vmatprep.subr.bf16.mxu0 %v2861_v0 }
  0xbb   : > { %2772 = vmatprep.subr.bf16.mxu1 %v2861_v0  ;;  %2761 = vmatprep.mubr.bf16.mxu0 %v1776_v1 }
  0xbc   : > { %2765 = vmatprep.mubr.bf16.mxu1 %v1778_v2 }
  0xbd   : > { %2752 = vmatpush3.bf16.msra.mxu0 %v2861_v0 }
  0xbe   : > { %2780 = vmatpush3.bf16.msra.mxu1 %v2861_v0  ;;  %2753 = vmatprep.subr.bf16.mxu0 %v2862_v3 }
  0xbf   : > { %2773 = vmatprep.subr.bf16.mxu1 %v2862_v3 }
  0xc1   : > { %2754 = vmatpush3.bf16.msra.mxu0 %v2862_v3 }
  0xc2   : > { %2781 = vmatpush3.bf16.msra.mxu1 %v2862_v3  ;;  %2755 = vmatprep.subr.bf16.mxu0 %v2863_v4 }
  0xc3   : > { %2774 = vmatprep.subr.bf16.mxu1 %v2863_v4 }
  0xc5   : > { %2756 = vmatpush3.bf16.msra.mxu0 %v2863_v4 }
  0xc6   : > { %2782 = vmatpush3.bf16.msra.mxu1 %v2863_v4  ;;  %2757 = vmatprep.subr.bf16.mxu0 %v2864_v5 }
  0xc7   : > { %2775 = vmatprep.subr.bf16.mxu1 %v2864_v5 }
  0xc9   : > { %2758 = vmatpush3.bf16.msra.mxu0 %v2864_v5 }
  0xca   : > { %2783 = vmatpush3.bf16.msra.mxu1 %v2864_v5  ;;  %2759 = vmatprep.subr.bf16.mxu0 %v2865_v6 }
  0xcb   : > { %2776 = vmatprep.subr.bf16.mxu1 %v2865_v6 }
  0xcd   : > { %2760 = vmatpush3.bf16.msra.mxu0 %v2865_v6 }
  0xce   : > { %2784 = vmatpush3.bf16.msra.mxu1 %v2865_v6 }
  0xd0   : > { %2762 = vmatmul.mubr.bf16.vlgmr.msra.gmra.mxu0 %v1777_v13 }
  0xd1   : > { %2766 = vmatmul.mubr.bf16.vlgmr.msra.gmra.mxu1 %v1779_v11 }
 0x110   : > { %v2571_v12 = vpop.f32.mrf.mxu0 }
 0x111   : > { %v2595_v14 = vpop.f32.mrf.mxu1 }
 0x112   : > { %v669_v15 = vpop.f32.mrf.mxu0  ;;  %v791_v5 = vadd.f32 %v2595_v14, %v2571_v12 }
 0x113   : > { %v782_v16 = vpop.f32.mrf.mxu1 }
 0x114   : > { %v2572_v18 = vpop.f32.mrf.mxu0  ;;  %v783_v6 = vadd.f32 %v782_v16, %v669_v15 }
 0x115   : > { %v2596_v19 = vpop.f32.mrf.mxu1 }
 0x116   : > { %v672_v17 = vpop.f32.mrf.mxu0  ;;  %v794_v7 = vadd.f32 %v2596_v19, %v2572_v18 }
 0x117   : > { %v785_v20 = vpop.f32.mrf.mxu1 }
 0x119   : > { %v2599_v22 = vpop.f32.mrf.mxu1 }
 0x11b   : > { %v2575_v21 = vpop.f32.mrf.mxu0  ;;  %v798_v24 = vpop.f32.mrf.mxu1 }
 0x11c   : > { %v807_v8 = vadd.f32 %v2599_v22, %v2575_v21 }
 0x11d   : > { %v685_v23 = vpop.f32.mrf.mxu0  ;;  %v2600_v26 = vpop.f32.mrf.mxu1 }
 0x11f   : > { %v2576_v25 = vpop.f32.mrf.mxu0  ;;  %v801_v28 = vpop.f32.mrf.mxu1 }
 0x120   : > { %v810_v9 = vadd.f32 %v2600_v26, %v2576_v25 }
 0x121   : > { %v688_v27 = vpop.f32.mrf.mxu0 }
 0x122   : > { %v802_v12 = vadd.f32 %v801_v28, %v688_v27 }
 0x130   : > { %v2619_v29 = vpop.f32.mrf.mxu0 }
 0x131   : > { %v2643_v30 = vpop.f32.mrf.mxu1  ;;  %v965_v10 = vadd.f32 %v2619_v29, %v791_v5 }
 0x132   : > { %v932_v31 = vpop.f32.mrf.mxu0 }
 0x133   : > { %v1089_v32 = vpop.f32.mrf.mxu1  ;;  %v1122_v14 = vadd.f32 %v2643_v30, %v965_v10 }
 0x134   : > { %v2620_v33 = vpop.f32.mrf.mxu0 }
 0x135   : > { %v2644_v34 = vpop.f32.mrf.mxu1 }
 0x136   : > { %v935_v35 = vpop.f32.mrf.mxu0 }
 0x137   : > { %v3244_v36 = vpop.f32.mrf.mxu1 }
 0x138   : > { %3288 = vst [vmem:[#allocation3_spill] sm:$0xff] %v3244_v36  ;;  %v2623_v37 = vpop.f32.mrf.mxu0 }
 0x139   : > { %v2647_v38 = vpop.f32.mrf.mxu1  ;;  %v969_v36 = vadd.f32 %v2623_v37, %v807_v8 }
 0x13a   : > { %v948_v39 = vpop.f32.mrf.mxu0 }
 0x13b   : > { %v1105_v40 = vpop.f32.mrf.mxu1  ;;  %v1126_v26 = vadd.f32 %v2647_v38, %v969_v36 }
 0x13c   : > { %v2624_v41 = vpop.f32.mrf.mxu0 }
 0x13d   : > { %v2648_v42 = vpop.f32.mrf.mxu1 }
 0x13e   : > { %v951_v43 = vpop.f32.mrf.mxu0 }
 0x13f   : > { %v1108_v44 = vpop.f32.mrf.mxu1  ;;  %v968_v18 = vadd.f32 %v951_v43, %v802_v12  ;;  %v3294_v37 = vld [vmem:[#allocation3_spill] sm:$0xff] }
 0x150   : > { %v2667_v45 = vpop.f32.mrf.mxu0 }
 0x151   : > { %v2691_v46 = vpop.f32.mrf.mxu1  ;;  %v1280_v29 = vadd.f32 %v2667_v45, %v1122_v14 }
 0x152   : > { %v1247_v47 = vpop.f32.mrf.mxu0 }
 0x153   : > { %v1405_v48 = vpop.f32.mrf.mxu1  ;;  %v1438_v27 = vadd.f32 %v2691_v46, %v1280_v29 }
 0x154   : > { %v2668_v49 = vpop.f32.mrf.mxu0 }
 0x155   : > { %v2692_v50 = vpop.f32.mrf.mxu1 }
 0x156   : > { %v1250_v51 = vpop.f32.mrf.mxu0 }
 0x157   : > { %v3246_v52 = vpop.f32.mrf.mxu1 }
 0x158   : > { %3289 = vst [vmem:[#allocation4_spill] sm:$0xff] %v3246_v52  ;;  %v2671_v53 = vpop.f32.mrf.mxu0  ;;  %v966_v52 = vadd.f32 %v2620_v33, %v794_v7 }
 0x159   : > { %v2695_v54 = vpop.f32.mrf.mxu1  ;;  %v1284_v7 = vadd.f32 %v2671_v53, %v1126_v26 }
 0x15a   : > { %v1263_v55 = vpop.f32.mrf.mxu0  ;;  %v1123_v25 = vadd.f32 %v2644_v34, %v966_v52 }
 0x15b   : > { %v3248_v56 = vpop.f32.mrf.mxu1  ;;  %v1442_v34 = vadd.f32 %v2695_v54, %v1284_v7 }
 0x15c   : > { %3290 = vst [vmem:[#allocation5_spill] sm:$0xff] %v3248_v56  ;;  %v2672_v57 = vpop.f32.mrf.mxu0  ;;  %v963_v56 = vadd.f32 %v932_v31, %v783_v6  ;;  %v1281_v31 = vadd.f32 %v2668_v49, %v1123_v25 }
 0x15d   : > { %v2696_v58 = vpop.f32.mrf.mxu1 }
 0x15e   : > { %v1266_v59 = vpop.f32.mrf.mxu0  ;;  %v1120_v22 = vadd.f32 %v1089_v32, %v963_v56  ;;  %v1439_v32 = vadd.f32 %v2692_v50, %v1281_v31 }
 0x15f   : > { %v1424_v60 = vpop.f32.mrf.mxu1  ;;  %v3295_v53 = vld [vmem:[#allocation4_spill] sm:$0xff] }
 0x160   : > { %v1278_v6 = vadd.f32 %v1247_v47, %v1120_v22 }
 0x170   : > { %v2715_v61 = vpop.f32.mrf.mxu0 }
 0x171   : > { %v2739_v62 = vpop.f32.mrf.mxu1  ;;  %v1596_v38 = vadd.f32 %v2715_v61, %v1438_v27 }
 0x172   : > { %v1563_v63 = vpop.f32.mrf.mxu0 }
 0x173   : > { %v3250_v0 = vpop.f32.mrf.mxu1 }
 0x174   : > { %3291 = vst [vmem:[#allocation6_spill] sm:$0xff] %v3250_v0  ;;  %v2716_v1 = vpop.f32.mrf.mxu0  ;;  %v970_v0 = vadd.f32 %v2624_v41, %v810_v9 }
 0x175   : > { %v3252_v2 = vpop.f32.mrf.mxu1  ;;  %v1597_v47 = vadd.f32 %v2716_v1, %v1439_v32 }
 0x176   : > { %3292 = vst [vmem:[#allocation7_spill] sm:$0xff] %v3252_v2  ;;  %v1566_v3 = vpop.f32.mrf.mxu0  ;;  %v786_v2 = vadd.f32 %v785_v20, %v672_v17  ;;  %v1127_v5 = vadd.f32 %v2648_v42, %v970_v0  ;;  %v1125_v20 = vadd.f32 %v1108_v44, %v968_v18  ;;  %v3296_v44 = vld [vmem:[#allocation5_spill] sm:$0xff] }
 0x177   : > { %v3254_v4 = vpop.f32.mrf.mxu1 }
 0x178   : > { %3293 = vst [vmem:[#allocation8_spill] sm:$0xff] %v3254_v4  ;;  %v2719_v13 = vpop.f32.mrf.mxu0  ;;  %v799_v4 = vadd.f32 %v798_v24, %v685_v23  ;;  %v964_v15 = vadd.f32 %v935_v35, %v786_v2  ;;  %v1285_v33 = vadd.f32 %v2672_v57, %v1127_v5  ;;  %v1283_v35 = vadd.f32 %v1266_v59, %v1125_v20 }
 0x179   : > { %v2743_v11 = vpop.f32.mrf.mxu1  ;;  %v1600_v49 = vadd.f32 %v2719_v13, %v1442_v34 }
 0x17a   : > { %v967_v16 = vadd.f32 %v948_v39, %v799_v4  ;;  %v1579_v19 = vpop.f32.mrf.mxu0  ;;  %v1121_v41 = vadd.f32 %v3294_v37, %v964_v15  ;;  %v1436_v39 = vadd.f32 %v1405_v48, %v1278_v6  ;;  %v1443_v36 = vadd.f32 %v2696_v58, %v1285_v33 }
 0x17b   : > { %v1737_v21 = vpop.f32.mrf.mxu1  ;;  %v1441_v57 = vadd.f32 %v1424_v60, %v1283_v35  ;;  %v3297_v61 = vld [vmem:[#allocation6_spill] sm:$0xff]  ;;  %v1758_v1 = vadd.f32 %v2743_v11, %v1600_v49 }
 0x17c   : > { %v1124_v17 = vadd.f32 %v1105_v40, %v967_v16  ;;  %v2720_v23 = vpop.f32.mrf.mxu0  ;;  %v1279_v28 = vadd.f32 %v1250_v51, %v1121_v41  ;;  %v1594_v45 = vadd.f32 %v1563_v63, %v1436_v39 }
 0x17d   : > { %v2744_v24 = vpop.f32.mrf.mxu1  ;;  %v1601_v52 = vadd.f32 %v2720_v23, %v1443_v36  ;;  %v3298_v2 = vld [vmem:[#allocation7_spill] sm:$0xff] }
 0x17e   : > { %v1282_v30 = vadd.f32 %v1263_v55, %v1124_v17  ;;  %v1582_v42 = vpop.f32.mrf.mxu0  ;;  %v1437_v40 = vadd.f32 %v3295_v53, %v1279_v28  ;;  %v1754_v55 = vadd.f32 %v2739_v62, %v1596_v38  ;;  %v1752_v0 = vadd.f32 %v3297_v61, %v1594_v45 }
 0x17f   : > { %v1740_v43 = vpop.f32.mrf.mxu1  ;;  %v1599_v50 = vadd.f32 %v1582_v42, %v1441_v57  ;;  %v1755_v63 = vadd.f32 %v3298_v2, %v1597_v47  ;;  %v1759_v4 = vadd.f32 %v2744_v24, %v1601_v52 }
 0x180   : > { %v1440_v56 = vadd.f32 %v3296_v44, %v1282_v30  ;;  %v1595_v59 = vadd.f32 %v1566_v3, %v1437_v40  ;;  %v3299_v3 = vld [vmem:[#allocation8_spill] sm:$0xff] }
 0x181   : > { %v1757_v16 = vadd.f32 %v1740_v43, %v1599_v50 }
 0x182   : > { %v1598_v48 = vadd.f32 %v1579_v19, %v1440_v56  ;;  %v1753_v14 = vadd.f32 %v3299_v3, %v1595_v59 }
 0x184   : > { %v1756_v15 = vadd.f32 %v1737_v21, %v1598_v48  ;;  %v1974_v48 = vld [vmem:[%s3287_s6] sm:$0x1] }
 0x190   : > { %v2763_v46 = vpop.f32.mrf.mxu0 }
 0x191   : > { %v2767_v51 = vpop.f32.mrf.mxu1  ;;  %v1912_v8 = vadd.f32 %v2763_v46, %v1754_v55 }
 0x192   : > { %v1879_v54 = vpop.f32.mrf.mxu0  ;;  %v1916_v13 = vadd.f32 %v2767_v51, %v1758_v1  ;;  %v1958_v51 = vld [vmem:[%s3286_s5] sm:$0x1] }
 0x193   : > { %v1895_v58 = vpop.f32.mrf.mxu1  ;;  %v1910_v60 = vadd.f32 %v1879_v54, %v1752_v0  ;;  %v1977_v37 = vmul.f32 %v1912_v8, %v1912_v8 }
 0x194   : > { %v2764_v9 = vpop.f32.mrf.mxu0  ;;  %v1914_v25 = vadd.f32 %v1895_v58, %v1756_v15  ;;  %v1981_v32 = vmul.f32 %v1916_v13, %v1916_v13 }
 0x195   : > { %v2768_v10 = vpop.f32.mrf.mxu1  ;;  %v1913_v12 = vadd.f32 %v2764_v9, %v1755_v63  ;;  %v1975_v29 = vmul.f32 %v1910_v60, %v1910_v60 }
 0x196   : > { %v1917_v62 = vadd.f32 %v2768_v10, %v1759_v4  ;;  %v1882_v18 = vpop.f32.mrf.mxu0  ;;  %v1979_v24 = vmul.f32 %v1914_v25, %v1914_v25 }
 0x197   : > { %v1898_v19 = vpop.f32.mrf.mxu1  ;;  %v2415_v22 = vpack.c.bf16 %v1913_v12, %v1912_v8  ;;  %v1911_v26 = vadd.f32 %v1882_v18, %v1753_v14  ;;  %v1978_v17 = vmul.f32 %v1913_v12, %v1913_v12 }
 0x198   : > { %v2425_v11 = vpack.c.bf16 %v1917_v62, %v1916_v13  ;;  %v1915_v5 = vadd.f32 %v1898_v19, %v1757_v16  ;;  %v1982_v38 = vmul.f32 %v1917_v62, %v1917_v62 }
 0x199   : > { %2442 = vst [vmem:[%s2926_s7 + $0x8] sm:$0xff] %v2415_v22   ;;  %v2410_v6 = vpack.c.bf16 %v1911_v26, %v1910_v60  ;;  %v1959_v31 = vadd.f32 %v1911_v26, %v1910_v60  ;;  %v1976_v7 = vmul.f32 %v1911_v26, %v1911_v26 }
 0x19a   : > { %2444 = vst [vmem:[%s2926_s7 + $0x18] sm:$0xff] %v2425_v11   ;;  %v2420_v33 = vpack.c.bf16 %v1915_v5, %v1914_v25  ;;  %v1980_v35 = vmul.f32 %v1915_v5, %v1915_v5 }
 0x19b   : > { %2411 = vst [vmem:[%s2926_s7] sm:$0xff] %v2410_v6   ;;  %v1960_v21 = vadd.f32 %v1959_v31, %v1912_v8  ;;  %v1983_v41 = vadd.f32 %v1976_v7, %v1975_v29 }
 0x19c   : > { %2443 = vst [vmem:[%s2926_s7 + $0x10] sm:$0xff] %v2420_v33  }
 0x19d   : > { %v1984_v20 = vadd.f32 %v1983_v41, %v1977_v37  ;;  %v1961_v23 = vadd.f32 %v1960_v21, %v1913_v12 }
 0x19f   : > { %v1962_v27 = vadd.f32 %v1961_v23, %v1914_v25  ;;  %v1985_v28 = vadd.f32 %v1984_v20, %v1978_v17 }
 0x1a1   : > { %v1963_v30 = vadd.f32 %v1962_v27, %v1915_v5  ;;  %v1986_v39 = vadd.f32 %v1985_v28, %v1979_v24 }
 0x1a3   : > { %v1964_v34 = vadd.f32 %v1963_v30, %v1916_v13  ;;  %v1987_v36 = vadd.f32 %v1986_v39, %v1980_v35 }
 0x1a5   : > { %v1965_v42 = vadd.f32 %v1964_v34, %v1917_v62  ;;  %v1988_v43 = vadd.f32 %v1987_v36, %v1981_v32 }
 0x1a7   : > { %v1966_v45 = vrot.slane %v1965_v42, 4  ;;  %v1989_v47 = vadd.f32 %v1988_v43, %v1982_v38 }
 0x1a9   : > { %v1967_v49 = vadd.f32 %v1966_v45, %v1965_v42  ;;  %v1990_v52 = vrot.slane %v1989_v47, 4 }
 0x1ab   : > { %v1968_v53 = vrot.slane %v1967_v49, 2  ;;  %v1991_v40 = vadd.f32 %v1990_v52, %v1989_v47 }
 0x1ad   : > { %v1969_v44 = vadd.f32 %v1968_v53, %v1967_v49  ;;  %v1992_v56 = vrot.slane %v1991_v40, 2 }
 0x1af   : > { %v1970_v57 = vrot.slane %v1969_v44, 1  ;;  %v1993_v46 = vadd.f32 %v1992_v56, %v1991_v40 }
 0x1b1   : > { %v1971_v55 = vadd.f32 %v1970_v57, %v1969_v44  ;;  %v1994_v59 = vrot.slane %v1993_v46, 1 }
 0x1b3   : > { %v1972_v50 = vadd.f32 %v1971_v55, %v1958_v51  ;;  %v1995_v54 = vadd.f32 %v1994_v59, %v1993_v46 }
 0x1b5   : > { %1973 = vst [vmem:[%s3286_s5] sm:$0x1] %v1972_v50  ;;  %v1996_v58 = vadd.f32 %v1995_v54, %v1974_v48 }
 0x1b7   : > { %1997 = vst [vmem:[%s3287_s6] sm:$0x1] %v1996_v58 }
 0x1b8 PF: > { %s17_s21 = sadd.s32 1, %s2872_s21  }
 0x1b9   : > { %p14_p5 = scmp.ge.s32.totalorder %s17_s21, 4  }
 0x1bb   :  { %16 = sbr.rel (!%p14_p5) target bundleno = 1 (0x1), region = 165 }

// kernel: custom_bottleneck_forward.7
= control target key start
LH: loop header
LB: loop body
LE: loop exit
PB: predicated region body
PF: predicated region fallthrough
CT: control target
= control target key end

     0   :  { %s524_s0 = inlined_call_operand.vmem [shape: bf16[128,128], index: 0, kind: input, shape index: {}]   ;;  %s525_s1 = inlined_call_operand.vmem [shape: bf16[128,128], index: 1, kind: input, shape index: {}]   ;;  %s526_s2 = inlined_call_operand.vmem [shape: f32[1,128], index: 2, kind: input, shape index: {}]   ;;  %s527_s3 = inlined_call_operand.vmem [shape: f32[1,128], index: 3, kind: input, shape index: {}]   ;;  %s528_s4 = inlined_call_operand.vmem [shape: f32[1,128], index: 4, kind: input, shape index: {}]   ;;  %s529_s5 = inlined_call_operand.vmem [shape: f32[1,128], index: 5, kind: input, shape index: {}]   ;;  %s530_s6 = inlined_call_operand.hbm [shape: f32[128,128], index: 6, kind: output, shape index: {}]  }
   0x1   :  { %v249_v0 = vld [vmem:[%s524_s0] sm:$0xff]   ;;  %v312_v9 = vld [vmem:[%s524_s0 + $0x8] sm:$0xff]   ;;  %v313_v20 = vld [vmem:[%s524_s0 + $0x10] sm:$0xff]  }
   0x2   :  { %v395_v1 = vld [vmem:[%s526_s2] ss:$0 sm:$0xff]  ;;  %v250_v2 = vunpack.c.l.bf16 %v249_v0  ;;  %v251_v5 = vunpack.c.h.bf16 %v249_v0  ;;  %v319_v10 = vld [vmem:[%s525_s1 + $0x8] sm:$0xff]   ;;  %v254_v14 = vunpack.c.l.bf16 %v312_v9  ;;  %v255_v18 = vunpack.c.h.bf16 %v312_v9  ;;  %v320_v21 = vld [vmem:[%s525_s1 + $0x10] sm:$0xff]  }
   0x3   :  { %v281_v3 = vld [vmem:[%s525_s1] sm:$0xff]   ;;  %v286_v15 = vunpack.c.l.bf16 %v319_v10  ;;  %v287_v19 = vunpack.c.h.bf16 %v319_v10 }
   0x4   :  { %v403_v4 = vld [vmem:[%s528_s4] ss:$0 sm:$0xff]  ;;  %v282_v7 = vunpack.c.l.bf16 %v281_v3  ;;  %v283_v8 = vunpack.c.h.bf16 %v281_v3  ;;  %v63_v11 = vmul.f32 %v250_v2, %v395_v1  ;;  %v64_v13 = vmul.f32 %v251_v5, %v395_v1 }
   0x5   :  { %v408_v6 = vld [vmem:[%s527_s3] ss:$0 sm:$0xff]  ;;  %v65_v24 = vmul.f32 %v254_v14, %v395_v1  ;;  %v143_v25 = vmul.f32 %v286_v15, %v403_v4  ;;  %v66_v28 = vmul.f32 %v255_v18, %v395_v1  ;;  %v144_v29 = vmul.f32 %v287_v19, %v403_v4 }
   0x6   :  { %v420_v12 = vld [vmem:[%s529_s5] ss:$0 sm:$0xff]  ;;  %v141_v16 = vmul.f32 %v282_v7, %v403_v4  ;;  %v142_v17 = vmul.f32 %v283_v8, %v403_v4  ;;  %v86_v22 = vadd.f32 %v408_v6, %v63_v11  ;;  %v87_v23 = vadd.f32 %v408_v6, %v64_v13 }
   0x8   :  { %v164_v26 = vadd.f32 %v420_v12, %v141_v16  ;;  %v165_v27 = vadd.f32 %v420_v12, %v142_v17 }
   0x9   :  { %11 = vsyncpa [#allocation3], 0  ;;  %v88_v30 = vadd.f32 %v408_v6, %v65_v24  ;;  %v166_v31 = vadd.f32 %v420_v12, %v143_v25  ;;  %v258_v32 = vunpack.c.l.bf16 %v313_v20  ;;  %v290_v33 = vunpack.c.l.bf16 %v320_v21  ;;  %v314_v42 = vld [vmem:[%s524_s0 + $0x18] sm:$0xff]   ;;  %v315_v52 = vld [vmem:[%s524_s0 + $0x20] sm:$0xff]  }
   0xa   :  { %v180_v34 = vadd.f32 %v164_v26, %v86_v22  ;;  %v181_v35 = vadd.f32 %v165_v27, %v87_v23  ;;  %v89_v36 = vadd.f32 %v408_v6, %v66_v28  ;;  %v167_v37 = vadd.f32 %v420_v12, %v144_v29  ;;  %v321_v43 = vld [vmem:[%s525_s1 + $0x18] sm:$0xff]   ;;  %v322_v57 = vld [vmem:[%s525_s1 + $0x20] sm:$0xff]   ;;  %v316_v14 = vld [vmem:[%s524_s0 + $0x28] sm:$0xff]  }
   0xb   :  { %v182_v38 = vadd.f32 %v166_v31, %v88_v30  ;;  %v67_v39 = vmul.f32 %v258_v32, %v395_v1  ;;  %v145_v40 = vmul.f32 %v290_v33, %v403_v4  ;;  %v259_v41 = vunpack.c.h.bf16 %v313_v20  ;;  %v323_v19 = vld [vmem:[%s525_s1 + $0x28] sm:$0xff]   ;;  %v317_v32 = vld [vmem:[%s524_s0 + $0x30] sm:$0xff]  }
   0xc   :  { %v196_v44 = vmax.f32 %v180_v34, 0.0  ;;  %v197_v45 = vmax.f32 %v181_v35, 0.0  ;;  %v183_v46 = vadd.f32 %v167_v37, %v89_v36  ;;  %v291_v47 = vunpack.c.h.bf16 %v320_v21  ;;  %v324_v33 = vld [vmem:[%s525_s1 + $0x30] sm:$0xff]  }
   0xd   :  { %v198_v48 = vmax.f32 %v182_v38, 0.0  ;;  %v90_v49 = vadd.f32 %v408_v6, %v67_v39  ;;  %v168_v50 = vadd.f32 %v420_v12, %v145_v40  ;;  %v68_v51 = vmul.f32 %v259_v41, %v395_v1 }
   0xe   :  { %212 = vst [vmem:[#allocation2] sm:$0xff] %v196_v44  ;;  %213 = vst [vmem:[#allocation2 + $0x8] sm:$0xff] %v197_v45  ;;  %v199_v53 = vmax.f32 %v183_v46, 0.0  ;;  %v146_v54 = vmul.f32 %v291_v47, %v403_v4  ;;  %v262_v55 = vunpack.c.l.bf16 %v314_v42  ;;  %v294_v56 = vunpack.c.l.bf16 %v321_v43  ;;  %v318_v46 = vld [vmem:[%s524_s0 + $0x38] sm:$0xff]   ;;  %s351_s0 = smov [#allocation2]  }
   0xf   :  { %214 = vst [vmem:[#allocation2 + $0x10] sm:$0xff] %v198_v48  ;;  %v184_v58 = vadd.f32 %v168_v50, %v90_v49  ;;  %v91_v59 = vadd.f32 %v408_v6, %v68_v51  ;;  %v263_v60 = vunpack.c.h.bf16 %v314_v42  ;;  %v295_v61 = vunpack.c.h.bf16 %v321_v43 }
  0x10   :  { %215 = vst [vmem:[#allocation2 + $0x18] sm:$0xff] %v199_v53  ;;  %v169_v62 = vadd.f32 %v420_v12, %v146_v54  ;;  %v69_v63 = vmul.f32 %v262_v55, %v395_v1  ;;  %v147_v0 = vmul.f32 %v294_v56, %v403_v4  ;;  %v266_v2 = vunpack.c.l.bf16 %v315_v52  ;;  %v325_v55 = vld [vmem:[%s525_s1 + $0x38] sm:$0xff]   ;;  %s233_s1 = sshll.u32 %s351_s0, 4  ;;  %s234_s1 = int_to_ptr.vmem [resolvable:$true] %s233_s1 }
  0x11   :  { %v200_v3 = vmax.f32 %v184_v58, 0.0  ;;  %v70_v5 = vmul.f32 %v263_v60, %v395_v1  ;;  %v148_v7 = vmul.f32 %v295_v61, %v403_v4  ;;  %v298_v8 = vunpack.c.l.bf16 %v322_v57  ;;  %s329_s8 = scalar_lea.vmem %s234_s1, 2048  ;;  %p334_p1 = scmp.lt.s32.totalorder %s234_s1, %s234_s1 }
  0x12   :  { %v185_v9 = vadd.f32 %v169_v62, %v91_v59  ;;  %v92_v10 = vadd.f32 %v408_v6, %v69_v63  ;;  %v170_v11 = vadd.f32 %v420_v12, %v147_v0  ;;  %v71_v13 = vmul.f32 %v266_v2, %v395_v1  ;;  %p330_p0 = scmp.ne.s32.totalorder %s234_s1, %s329_s8  ;;  %p335_p2 = scmp.lt.s32.totalorder %s329_s8, %s329_s8 }
  0x13   :  { %216 = vst [vmem:[#allocation2 + $0x20] sm:$0xff] %v200_v3  ;;  %v93_v15 = vadd.f32 %v408_v6, %v70_v5  ;;  %v171_v16 = vadd.f32 %v420_v12, %v148_v7  ;;  %v149_v17 = vmul.f32 %v298_v8, %v403_v4  ;;  %v267_v18 = vunpack.c.h.bf16 %v315_v52 }
  0x14   :  { %v201_v20 = vmax.f32 %v185_v9, 0.0  ;;  %v186_v21 = vadd.f32 %v170_v11, %v92_v10  ;;  %v94_v22 = vadd.f32 %v408_v6, %v71_v13  ;;  %v299_v23 = vunpack.c.h.bf16 %v322_v57  ;;  %p336_p3 = por %p335_p2, %p334_p1 }
  0x15   :  { %v187_v24 = vadd.f32 %v171_v16, %v93_v15  ;;  %v172_v25 = vadd.f32 %v420_v12, %v149_v17  ;;  %v72_v26 = vmul.f32 %v267_v18, %v395_v1  ;;  %v270_v27 = vunpack.c.l.bf16 %v316_v14 }
  0x16   :  { %217 = vst [vmem:[#allocation2 + $0x28] sm:$0xff] %v201_v20  ;;  %v202_v28 = vmax.f32 %v186_v21, 0.0  ;;  %v150_v29 = vmul.f32 %v299_v23, %v403_v4  ;;  %v302_v30 = vunpack.c.l.bf16 %v323_v19  ;;  %v271_v31 = vunpack.c.h.bf16 %v316_v14  ;;  %p337_p4 = pnand %p336_p3, %p330_p0 }
  0x17   :  { %v203_v34 = vmax.f32 %v187_v24, 0.0  ;;  %v188_v35 = vadd.f32 %v172_v25, %v94_v22  ;;  %v95_v36 = vadd.f32 %v408_v6, %v72_v26  ;;  %v73_v37 = vmul.f32 %v270_v27, %v395_v1 }
  0x18   :  { %218 = vst [vmem:[#allocation2 + $0x30] sm:$0xff] %v202_v28  ;;  %v173_v38 = vadd.f32 %v420_v12, %v150_v29  ;;  %v151_v39 = vmul.f32 %v302_v30, %v403_v4  ;;  %v74_v40 = vmul.f32 %v271_v31, %v395_v1  ;;  %v303_v41 = vunpack.c.h.bf16 %v323_v19 }
  0x19   :  { %219 = vst [vmem:[#allocation2 + $0x38] sm:$0xff] %v203_v34  ;;  %v204_v42 = vmax.f32 %v188_v35, 0.0  ;;  %v96_v43 = vadd.f32 %v408_v6, %v73_v37  ;;  %v274_v44 = vunpack.c.l.bf16 %v317_v32  ;;  %v306_v45 = vunpack.c.l.bf16 %v324_v33 }
  0x1a   :  { %v189_v47 = vadd.f32 %v173_v38, %v95_v36  ;;  %v174_v48 = vadd.f32 %v420_v12, %v151_v39  ;;  %v97_v49 = vadd.f32 %v408_v6, %v74_v40  ;;  %v152_v50 = vmul.f32 %v303_v41, %v403_v4 }
  0x1b   :  { %220 = vst [vmem:[#allocation2 + $0x40] sm:$0xff] %v204_v42  ;;  %v75_v51 = vmul.f32 %v274_v44, %v395_v1  ;;  %v153_v52 = vmul.f32 %v306_v45, %v403_v4  ;;  %v275_v53 = vunpack.c.h.bf16 %v317_v32  ;;  %v307_v54 = vunpack.c.h.bf16 %v324_v33 }
  0x1c   :  { %v205_v56 = vmax.f32 %v189_v47, 0.0  ;;  %v190_v57 = vadd.f32 %v174_v48, %v96_v43  ;;  %v175_v58 = vadd.f32 %v420_v12, %v152_v50  ;;  %v278_v59 = vunpack.c.l.bf16 %v318_v46 }
  0x1d   :  { %v98_v60 = vadd.f32 %v408_v6, %v75_v51  ;;  %v176_v61 = vadd.f32 %v420_v12, %v153_v52  ;;  %v76_v62 = vmul.f32 %v275_v53, %v395_v1  ;;  %v154_v63 = vmul.f32 %v307_v54, %v403_v4 }
  0x1e   :  { %221 = vst [vmem:[#allocation2 + $0x48] sm:$0xff] %v205_v56  ;;  %v206_v0 = vmax.f32 %v190_v57, 0.0  ;;  %v191_v2 = vadd.f32 %v175_v58, %v97_v49  ;;  %v77_v3 = vmul.f32 %v278_v59, %v395_v1  ;;  %v310_v5 = vunpack.c.l.bf16 %v325_v55 }
  0x1f   :  { %v192_v7 = vadd.f32 %v176_v61, %v98_v60  ;;  %v99_v8 = vadd.f32 %v408_v6, %v76_v62  ;;  %v177_v9 = vadd.f32 %v420_v12, %v154_v63  ;;  %v279_v10 = vunpack.c.h.bf16 %v318_v46 }
  0x20   :  { %222 = vst [vmem:[#allocation2 + $0x50] sm:$0xff] %v206_v0  ;;  %v207_v11 = vmax.f32 %v191_v2, 0.0  ;;  %v100_v13 = vadd.f32 %v408_v6, %v77_v3  ;;  %v155_v14 = vmul.f32 %v310_v5, %v403_v4  ;;  %v311_v15 = vunpack.c.h.bf16 %v325_v55 }
  0x21   :  { %v208_v16 = vmax.f32 %v192_v7, 0.0  ;;  %v193_v17 = vadd.f32 %v177_v9, %v99_v8  ;;  %v78_v18 = vmul.f32 %v279_v10, %v395_v1 }
  0x22   :  { %223 = vst [vmem:[#allocation2 + $0x58] sm:$0xff] %v207_v11  ;;  %v178_v19 = vadd.f32 %v420_v12, %v155_v14  ;;  %v156_v20 = vmul.f32 %v311_v15, %v403_v4 }
  0x23   :  { %224 = vst [vmem:[#allocation2 + $0x60] sm:$0xff] %v208_v16  ;;  %v209_v21 = vmax.f32 %v193_v17, 0.0  ;;  %v101_v22 = vadd.f32 %v408_v6, %v78_v18 }
  0x24   :  { %v194_v23 = vadd.f32 %v178_v19, %v100_v13  ;;  %v179_v24 = vadd.f32 %v420_v12, %v156_v20 }
  0x25   :  { %225 = vst [vmem:[#allocation2 + $0x68] sm:$0xff] %v209_v21 }
  0x26   :  { %v210_v25 = vmax.f32 %v194_v23, 0.0  ;;  %v195_v26 = vadd.f32 %v179_v24, %v101_v22 }
  0x28   :  { %226 = vst [vmem:[#allocation2 + $0x70] sm:$0xff] %v210_v25  ;;  %v211_v1 = vmax.f32 %v195_v26, 0.0 }
  0x2a   :  { %227 = vst [vmem:[#allocation2 + $0x78] sm:$0xff] %v211_v1 }
  0x2b   :  { %340 = shalt.err (!%p337_p4)
}
  0x2c   :  { %s352_s9 = smov 128   ;;  %s353_s4 = smov 8  }
  0x2d   :  { %239 = dma.vmem_to_hbm [thread:$0]  %s234_s1, 2048, %s530_s6, [#allocation3], %s352_s9, %s352_s9, %s353_s4  }
  0x2e   :  { %349 = dma.done.wait [#allocation3], 2048  }
  0x2f   :  { %350 = vsyncadd [#allocation3], 4294965248 }
  0x30   :  { %243 = vsyncpa [#allocation3], 1 }

// kernel: custom_bottleneck_forward.6
= control target key start
LH: loop header
LB: loop body
LE: loop exit
PB: predicated region body
PF: predicated region fallthrough
CT: control target
= control target key end

     0   :  { %s1465_s2 = inlined_call_operand.vmem [shape: bf16[128,128], index: 2, kind: input, shape index: {}]   ;;  %s1466_s3 = inlined_call_operand.vmem [shape: bf16[128,128], index: 3, kind: input, shape index: {}]   ;;  %s1467_s0 = inlined_call_operand.vmem [shape: bf16[128,128], index: 0, kind: input, shape index: {}]   ;;  %s1468_s4 = inlined_call_operand.vmem [shape: f32[1,128], index: 4, kind: input, shape index: {}]   ;;  %s1469_s5 = inlined_call_operand.vmem [shape: f32[1,128], index: 5, kind: input, shape index: {}]   ;;  %s1470_s1 = inlined_call_operand.vmem [shape: bf16[128,128], index: 1, kind: input, shape index: {}]   ;;  %s1471_s8 = inlined_call_operand.vmem [shape: f32[1,128], index: 8, kind: output, shape index: {2}]   ;;  %s1472_s9 = inlined_call_operand.vmem [shape: f32[1,128], index: 9, kind: output, shape index: {3}]   ;;  %s1473_s10 = inlined_call_operand.vmem [shape: f32[1,128], index: 10, kind: output, shape index: {4}]   ;;  %s1474_s11 = inlined_call_operand.vmem [shape: f32[1,128], index: 11, kind: output, shape index: {5}]   ;;  %s1475_s6 = inlined_call_operand.vmem [shape: bf16[128,128], index: 6, kind: output, shape index: {0}]   ;;  %s1476_s7 = inlined_call_operand.vmem [shape: bf16[128,128], index: 7, kind: output, shape index: {1}]  }
   0x1   :  { %v1158_v0 = vld [vmem:[%s1465_s2 + $0x38] sm:$0xff]   ;;  %v1160_v2 = vld [vmem:[%s1465_s2 + $0x30] sm:$0xff]   ;;  %v1162_v4 = vld [vmem:[%s1465_s2 + $0x28] sm:$0xff]  }
   0x2   :  { %v1159_v1 = vld [vmem:[%s1466_s3 + $0x38] sm:$0xff]   ;;  %1093 = vmatprep.subr.bf16.mxu0 %v1158_v0  ;;  %v1161_v3 = vld [vmem:[%s1466_s3 + $0x30] sm:$0xff]   ;;  %v1163_v5 = vld [vmem:[%s1466_s3 + $0x28] sm:$0xff]  }
   0x3   :  { %1125 = vmatprep.subr.bf16.mxu1 %v1159_v1  ;;  %1094 = vmatpush3.bf16.msra.mxu0 %v1158_v0  ;;  %v1164_v6 = vld [vmem:[%s1465_s2 + $0x20] sm:$0xff]   ;;  %v1166_v8 = vld [vmem:[%s1465_s2 + $0x18] sm:$0xff]   ;;  %v1168_v10 = vld [vmem:[%s1465_s2 + $0x10] sm:$0xff]  }
   0x4   :  { %1126 = vmatpush3.bf16.msra.mxu1 %v1159_v1  ;;  %1095 = vmatprep.subr.bf16.mxu0 %v1160_v2  ;;  %v1165_v7 = vld [vmem:[%s1466_s3 + $0x20] sm:$0xff]   ;;  %v1167_v9 = vld [vmem:[%s1466_s3 + $0x18] sm:$0xff]   ;;  %v1169_v11 = vld [vmem:[%s1466_s3 + $0x10] sm:$0xff]  }
   0x5   :  { %1127 = vmatprep.subr.bf16.mxu1 %v1161_v3  ;;  %v929_v12 = vld [vmem:[%s1467_s0] sm:$0xff]   ;;  %v1040_v18 = vld [vmem:[%s1467_s0 + $0x8] sm:$0xff]   ;;  %v1041_v23 = vld [vmem:[%s1467_s0 + $0x10] sm:$0xff]  }
   0x6   :  { %v1285_v13 = vld [vmem:[%s1468_s4] ss:$0 sm:$0xff]  ;;  %v930_v15 = vunpack.c.l.bf16 %v929_v12  ;;  %v931_v16 = vunpack.c.h.bf16 %v929_v12  ;;  %v934_v21 = vunpack.c.l.bf16 %v1040_v18  ;;  %v935_v22 = vunpack.c.h.bf16 %v1040_v18  ;;  %v1170_v24 = vld [vmem:[%s1465_s2 + $0x8] sm:$0xff]   ;;  %v1042_v27 = vld [vmem:[%s1467_s0 + $0x18] sm:$0xff]  }
   0x7   :  { %1096 = vmatpush3.bf16.msra.mxu0 %v1160_v2  ;;  %v1290_v14 = vld [vmem:[%s1469_s5] ss:$0 sm:$0xff]  ;;  %v938_v25 = vunpack.c.l.bf16 %v1041_v23  ;;  %v939_v26 = vunpack.c.h.bf16 %v1041_v23  ;;  %v1171_v28 = vld [vmem:[%s1466_s3 + $0x8] sm:$0xff]   ;;  %v942_v35 = vunpack.c.l.bf16 %v1042_v27  ;;  %v943_v36 = vunpack.c.h.bf16 %v1042_v27  ;;  %v1045_v58 = vld [vmem:[%s1467_s0 + $0x30] sm:$0xff]  }
   0x8   :  { %1128 = vmatpush3.bf16.msra.mxu1 %v1161_v3  ;;  %1097 = vmatprep.subr.bf16.mxu0 %v1162_v4  ;;  %v1174_v17 = vld [vmem:[%s1470_s1] sm:$0xff]   ;;  %v77_v19 = vmul.f32 %v930_v15, %v1285_v13  ;;  %v78_v20 = vmul.f32 %v931_v16, %v1285_v13  ;;  %v79_v31 = vmul.f32 %v934_v21, %v1285_v13  ;;  %v1044_v56 = vld [vmem:[%s1467_s0 + $0x28] sm:$0xff]   ;;  %v1177_v23 = vld [vmem:[%s1470_s1 + $0x18] sm:$0xff]  }
   0x9   :  { %1129 = vmatprep.subr.bf16.mxu1 %v1163_v5  ;;  %1141 = vmatprep.mubr.bf16.mxu1 %v1174_v17  ;;  %v80_v32 = vmul.f32 %v935_v22, %v1285_v13  ;;  %v81_v33 = vmul.f32 %v938_v25, %v1285_v13  ;;  %v82_v34 = vmul.f32 %v939_v26, %v1285_v13  ;;  %v1043_v37 = vld [vmem:[%s1467_s0 + $0x20] sm:$0xff]   ;;  %v950_v63 = vunpack.c.l.bf16 %v1044_v56  ;;  %v1175_v1 = vld [vmem:[%s1470_s1 + $0x8] sm:$0xff]  }
   0xa   :  { %v100_v29 = vadd.f32 %v1290_v14, %v77_v19  ;;  %v101_v30 = vadd.f32 %v1290_v14, %v78_v20  ;;  %v102_v40 = vadd.f32 %v1290_v14, %v79_v31  ;;  %v1172_v42 = vld [vmem:[%s1465_s2] sm:$0xff]   ;;  %v946_v46 = vunpack.c.l.bf16 %v1043_v37 }
   0xb   :  { %1098 = vmatpush3.bf16.msra.mxu0 %v1162_v4  ;;  %v103_v41 = vadd.f32 %v1290_v14, %v80_v32  ;;  %v1173_v43 = vld [vmem:[%s1466_s3] sm:$0xff]   ;;  %v104_v44 = vadd.f32 %v1290_v14, %v81_v33  ;;  %v105_v45 = vadd.f32 %v1290_v14, %v82_v34  ;;  %v83_v50 = vmul.f32 %v942_v35, %v1285_v13 }
   0xc   :  { %1130 = vmatpush3.bf16.msra.mxu1 %v1163_v5  ;;  %1099 = vmatprep.subr.bf16.mxu0 %v1164_v6  ;;  %v116_v38 = vmax.f32 %v100_v29, 0.0  ;;  %v117_v39 = vmax.f32 %v101_v30, 0.0  ;;  %v118_v48 = vmax.f32 %v102_v40, 0.0  ;;  %v84_v53 = vmul.f32 %v943_v36, %v1285_v13  ;;  %v1178_v27 = vld [vmem:[%s1470_s1 + $0x20] sm:$0xff]  }
   0xd   :  { %1131 = vmatprep.subr.bf16.mxu1 %v1165_v7  ;;  %v119_v49 = vmax.f32 %v103_v41, 0.0  ;;  %v120_v51 = vmax.f32 %v104_v44, 0.0  ;;  %v121_v52 = vmax.f32 %v105_v45, 0.0  ;;  %v947_v54 = vunpack.c.h.bf16 %v1043_v37  ;;  %v1179_v37 = vld [vmem:[%s1470_s1 + $0x28] sm:$0xff]  }
   0xe   :  { %v132_v47 = vpack.c.bf16 %v117_v39, %v116_v38  ;;  %v85_v55 = vmul.f32 %v946_v46, %v1285_v13  ;;  %v106_v60 = vadd.f32 %v1290_v14, %v83_v50  ;;  %v107_v62 = vadd.f32 %v1290_v14, %v84_v53  ;;  %v1180_v39 = vld [vmem:[%s1470_s1 + $0x30] sm:$0xff]  }
   0xf   :  { %1100 = vmatpush3.bf16.msra.mxu0 %v1164_v6  ;;  %v86_v57 = vmul.f32 %v947_v54, %v1285_v13  ;;  %v133_v59 = vpack.c.bf16 %v119_v49, %v118_v48  ;;  %v134_v61 = vpack.c.bf16 %v121_v52, %v120_v51  ;;  %v951_v0 = vunpack.c.h.bf16 %v1044_v56  ;;  %v1176_v6 = vld [vmem:[%s1470_s1 + $0x10] sm:$0xff]  }
  0x10   :  { %1132 = vmatpush3.bf16.msra.mxu1 %v1165_v7  ;;  %1101 = vmatprep.subr.bf16.mxu0 %v1166_v8  ;;  %v108_v2 = vadd.f32 %v1290_v14, %v85_v55  ;;  %v954_v4 = vunpack.c.l.bf16 %v1045_v58  ;;  %v955_v5 = vunpack.c.h.bf16 %v1045_v58  ;;  %v122_v7 = vmax.f32 %v106_v60, 0.0 }
  0x11   :  { %1133 = vmatprep.subr.bf16.mxu1 %v1167_v9  ;;  %1109 = vmatprep.mubr.bf16.mxu0 %v132_v47  ;;  %v109_v3 = vadd.f32 %v1290_v14, %v86_v57 }
  0x12   :  { %v124_v12 = vmax.f32 %v108_v2, 0.0  ;;  %v89_v16 = vmul.f32 %v954_v4, %v1285_v13  ;;  %v90_v17 = vmul.f32 %v955_v5, %v1285_v13 }
  0x13   :  { %1102 = vmatpush3.bf16.msra.mxu0 %v1166_v8  ;;  %v123_v8 = vmax.f32 %v107_v62, 0.0  ;;  %v125_v15 = vmax.f32 %v109_v3, 0.0 }
  0x14   :  { %1134 = vmatpush3.bf16.msra.mxu1 %v1167_v9  ;;  %1103 = vmatprep.subr.bf16.mxu0 %v1168_v10  ;;  %v87_v9 = vmul.f32 %v950_v63, %v1285_v13  ;;  %v112_v25 = vadd.f32 %v1290_v14, %v89_v16  ;;  %v113_v26 = vadd.f32 %v1290_v14, %v90_v17 }
  0x15   :  { %1135 = vmatprep.subr.bf16.mxu1 %v1169_v11  ;;  %v135_v19 = vpack.c.bf16 %v123_v8, %v122_v7 }
  0x16   :  { %v110_v20 = vadd.f32 %v1290_v14, %v87_v9  ;;  %v128_v32 = vmax.f32 %v112_v25, 0.0  ;;  %v129_v33 = vmax.f32 %v113_v26, 0.0 }
  0x17   :  { %1104 = vmatpush3.bf16.msra.mxu0 %v1168_v10  ;;  %v88_v10 = vmul.f32 %v951_v0, %v1285_v13 }
  0x18   :  { %1136 = vmatpush3.bf16.msra.mxu1 %v1169_v11  ;;  %1105 = vmatprep.subr.bf16.mxu0 %v1170_v24  ;;  %v1046_v11 = vld [vmem:[%s1467_s0 + $0x38] sm:$0xff]   ;;  %v138_v38 = vpack.c.bf16 %v129_v33, %v128_v32 }
  0x19   :  { %1137 = vmatprep.subr.bf16.mxu1 %v1171_v28  ;;  %v958_v18 = vunpack.c.l.bf16 %v1046_v11  ;;  %v111_v21 = vadd.f32 %v1290_v14, %v88_v10  ;;  %v959_v22 = vunpack.c.h.bf16 %v1046_v11 }
  0x1b   :  { %1106 = vmatpush3.bf16.msra.mxu0 %v1170_v24  ;;  %v136_v24 = vpack.c.bf16 %v125_v15, %v124_v12  ;;  %v127_v29 = vmax.f32 %v111_v21, 0.0  ;;  %v91_v30 = vmul.f32 %v958_v18, %v1285_v13  ;;  %v92_v31 = vmul.f32 %v959_v22, %v1285_v13 }
  0x1c   :  { %1138 = vmatpush3.bf16.msra.mxu1 %v1171_v28  ;;  %1107 = vmatprep.subr.bf16.mxu0 %v1172_v42  ;;  %v126_v28 = vmax.f32 %v110_v20, 0.0 }
  0x1d   :  { %1139 = vmatprep.subr.bf16.mxu1 %v1173_v43  ;;  %v114_v35 = vadd.f32 %v1290_v14, %v91_v30  ;;  %v115_v36 = vadd.f32 %v1290_v14, %v92_v31  ;;  %v1181_v14 = vld [vmem:[%s1470_s1 + $0x38] sm:$0xff]  }
  0x1e   :  { %v137_v34 = vpack.c.bf16 %v127_v29, %v126_v28 }
  0x1f   :  { %1108 = vmatpush3.bf16.msra.mxu0 %v1172_v42  ;;  %v130_v13 = vmax.f32 %v114_v35, 0.0  ;;  %v131_v40 = vmax.f32 %v115_v36, 0.0  ;;  %v1182_v42 = vmov 0.0  }
  0x20   :  { %1140 = vmatpush3.bf16.msra.mxu1 %v1173_v43  ;;  %34 = vst [vmem:[%s1471_s8] sm:$0x1] %v1182_v42  ;;  %35 = vst [vmem:[%s1472_s9] sm:$0x1] %v1182_v42 }
  0x21   :  { %v139_v41 = vpack.c.bf16 %v131_v40, %v130_v13  ;;  %36 = vst [vmem:[%s1473_s10] sm:$0x1] %v1182_v42  ;;  %37 = vst [vmem:[%s1474_s11] sm:$0x1] %v1182_v42 }
  0x22   :  { %1110 = vmatmul.mubr.bf16.vlgmr.msra.gmra.mxu0 %v133_v59 }
  0x23   :  { %1142 = vmatmul.mubr.bf16.vlgmr.msra.gmra.mxu1 %v1175_v1  ;;  %1113 = vmatprep.mubr.bf16.mxu0 %v134_v61 }
  0x24   :  { %1145 = vmatprep.mubr.bf16.mxu1 %v1176_v6 }
  0x2a   :  { %1114 = vmatmul.mubr.bf16.gmra.mxu0 %v135_v19 }
  0x2b   :  { %1146 = vmatmul.mubr.bf16.gmra.mxu1 %v1177_v23  ;;  %1117 = vmatprep.mubr.bf16.mxu0 %v136_v24 }
  0x2c   :  { %1149 = vmatprep.mubr.bf16.mxu1 %v1178_v27 }
  0x32   :  { %1118 = vmatmul.mubr.bf16.gmra.mxu0 %v137_v34 }
  0x33   :  { %1150 = vmatmul.mubr.bf16.gmra.mxu1 %v1179_v37  ;;  %1121 = vmatprep.mubr.bf16.mxu0 %v138_v38 }
  0x34   :  { %1153 = vmatprep.mubr.bf16.mxu1 %v1180_v39 }
  0x3a   :  { %1122 = vmatmul.mubr.bf16.gmra.mxu0 %v139_v41 }
  0x3b   :  { %1154 = vmatmul.mubr.bf16.gmra.mxu1 %v1181_v14 }
  0xe2   :  { %v1111_v43 = vpop.f32.mrf.mxu0 }
  0xe3   :  { %v1143_v44 = vpop.f32.mrf.mxu1  ;;  %v713_v62 = vmul.f32 %v1111_v43, %v1111_v43 }
  0xe4   :  { %v238_v45 = vpop.f32.mrf.mxu0  ;;  %v777_v2 = vmul.f32 %v1143_v44, %v1143_v44 }
  0xe5   :  { %v463_v46 = vpop.f32.mrf.mxu1  ;;  %v711_v52 = vmul.f32 %v238_v45, %v238_v45 }
  0xe6   :  { %v1112_v47 = vpop.f32.mrf.mxu0  ;;  %v775_v57 = vmul.f32 %v463_v46, %v463_v46 }
  0xe7   :  { %v968_v48 = vpack.c.bf16 %v1112_v47, %v1111_v43  ;;  %v1144_v49 = vpop.f32.mrf.mxu1  ;;  %v714_v6 = vmul.f32 %v1112_v47, %v1112_v47 }
  0xe8   :  { %v1008_v50 = vpack.c.bf16 %v1144_v49, %v1143_v44  ;;  %v241_v51 = vpop.f32.mrf.mxu0  ;;  %v778_v10 = vmul.f32 %v1144_v49, %v1144_v49 }
  0xe9   :  { %1047 = vst [vmem:[%s1475_s6 + $0x8] sm:$0xff] %v968_v48   ;;  %v963_v53 = vpack.c.bf16 %v241_v51, %v238_v45  ;;  %v687_v54 = vadd.f32 %v241_v51, %v238_v45  ;;  %v712_v55 = vmul.f32 %v241_v51, %v241_v51  ;;  %v466_v56 = vpop.f32.mrf.mxu1 }
  0xea   :  { %1054 = vst [vmem:[%s1476_s7 + $0x8] sm:$0xff] %v1008_v50   ;;  %v1003_v58 = vpack.c.bf16 %v466_v56, %v463_v46  ;;  %v751_v59 = vadd.f32 %v466_v56, %v463_v46  ;;  %v776_v60 = vmul.f32 %v466_v56, %v466_v56  ;;  %v1115_v61 = vpop.f32.mrf.mxu0 }
  0xeb   :  { %964 = vst [vmem:[%s1475_s6] sm:$0xff] %v963_v53   ;;  %v688_v63 = vadd.f32 %v1111_v43, %v687_v54  ;;  %v727_v0 = vadd.f32 %v712_v55, %v711_v52  ;;  %v1147_v1 = vpop.f32.mrf.mxu1  ;;  %v717_v36 = vmul.f32 %v1115_v61, %v1115_v61 }
  0xec   :  { %1004 = vst [vmem:[%s1476_s7] sm:$0xff] %v1003_v58   ;;  %v752_v3 = vadd.f32 %v1143_v44, %v751_v59  ;;  %v791_v4 = vadd.f32 %v776_v60, %v775_v57  ;;  %v254_v5 = vpop.f32.mrf.mxu0  ;;  %v781_v13 = vmul.f32 %v1147_v1, %v1147_v1 }
  0xed   :  { %v728_v7 = vadd.f32 %v727_v0, %v713_v62  ;;  %v689_v8 = vadd.f32 %v1112_v47, %v688_v63  ;;  %v479_v9 = vpop.f32.mrf.mxu1  ;;  %v715_v17 = vmul.f32 %v254_v5, %v254_v5 }
  0xee   :  { %v792_v11 = vadd.f32 %v791_v4, %v777_v2  ;;  %v753_v12 = vadd.f32 %v1144_v49, %v752_v3  ;;  %v1116_v15 = vpop.f32.mrf.mxu0  ;;  %v779_v22 = vmul.f32 %v479_v9, %v479_v9 }
  0xef   :  { %v690_v16 = vadd.f32 %v689_v8, %v254_v5  ;;  %v729_v18 = vadd.f32 %v728_v7, %v714_v6  ;;  %v978_v19 = vpack.c.bf16 %v1116_v15, %v1115_v61  ;;  %v1148_v20 = vpop.f32.mrf.mxu1  ;;  %v718_v42 = vmul.f32 %v1116_v15, %v1116_v15 }
  0xf0   :  { %v754_v21 = vadd.f32 %v753_v12, %v479_v9  ;;  %v793_v23 = vadd.f32 %v792_v11, %v778_v10  ;;  %v1018_v24 = vpack.c.bf16 %v1148_v20, %v1147_v1  ;;  %v257_v25 = vpop.f32.mrf.mxu0  ;;  %v782_v46 = vmul.f32 %v1148_v20, %v1148_v20 }
  0xf1   :  { %v730_v26 = vadd.f32 %v729_v18, %v715_v17  ;;  %1049 = vst [vmem:[%s1475_s6 + $0x18] sm:$0xff] %v978_v19   ;;  %v973_v27 = vpack.c.bf16 %v257_v25, %v254_v5  ;;  %v691_v28 = vadd.f32 %v690_v16, %v257_v25  ;;  %v716_v29 = vmul.f32 %v257_v25, %v257_v25  ;;  %v482_v30 = vpop.f32.mrf.mxu1 }
  0xf2   :  { %v794_v31 = vadd.f32 %v793_v23, %v779_v22  ;;  %1056 = vst [vmem:[%s1476_s7 + $0x18] sm:$0xff] %v1018_v24   ;;  %v1013_v32 = vpack.c.bf16 %v482_v30, %v479_v9  ;;  %v755_v33 = vadd.f32 %v754_v21, %v482_v30  ;;  %v780_v34 = vmul.f32 %v482_v30, %v482_v30  ;;  %v1119_v35 = vpop.f32.mrf.mxu0 }
  0xf3   :  { %1048 = vst [vmem:[%s1475_s6 + $0x10] sm:$0xff] %v973_v27   ;;  %v692_v37 = vadd.f32 %v1115_v61, %v691_v28  ;;  %v731_v38 = vadd.f32 %v730_v26, %v716_v29  ;;  %v1151_v39 = vpop.f32.mrf.mxu1  ;;  %v721_v6 = vmul.f32 %v1119_v35, %v1119_v35 }
  0xf4   :  { %1055 = vst [vmem:[%s1476_s7 + $0x10] sm:$0xff] %v1013_v32   ;;  %v756_v40 = vadd.f32 %v1147_v1, %v755_v33  ;;  %v795_v41 = vadd.f32 %v794_v31, %v780_v34  ;;  %v270_v14 = vpop.f32.mrf.mxu0  ;;  %v785_v10 = vmul.f32 %v1151_v39, %v1151_v39 }
  0xf5   :  { %v732_v43 = vadd.f32 %v731_v38, %v717_v36  ;;  %v693_v44 = vadd.f32 %v1116_v15, %v692_v37  ;;  %v495_v45 = vpop.f32.mrf.mxu1  ;;  %v719_v51 = vmul.f32 %v270_v14, %v270_v14 }
  0xf6   :  { %v796_v47 = vadd.f32 %v795_v41, %v781_v13  ;;  %v757_v48 = vadd.f32 %v1148_v20, %v756_v40  ;;  %v1120_v49 = vpop.f32.mrf.mxu0  ;;  %v783_v56 = vmul.f32 %v495_v45, %v495_v45 }
  0xf7   :  { %v694_v50 = vadd.f32 %v693_v44, %v270_v14  ;;  %v733_v52 = vadd.f32 %v732_v43, %v718_v42  ;;  %v988_v53 = vpack.c.bf16 %v1120_v49, %v1119_v35  ;;  %v1152_v54 = vpop.f32.mrf.mxu1  ;;  %v722_v16 = vmul.f32 %v1120_v49, %v1120_v49 }
  0xf8   :  { %v758_v55 = vadd.f32 %v757_v48, %v495_v45  ;;  %v797_v57 = vadd.f32 %v796_v47, %v782_v46  ;;  %v1028_v58 = vpack.c.bf16 %v1152_v54, %v1151_v39  ;;  %v273_v59 = vpop.f32.mrf.mxu0  ;;  %v786_v20 = vmul.f32 %v1152_v54, %v1152_v54 }
  0xf9   :  { %v734_v60 = vadd.f32 %v733_v52, %v719_v51  ;;  %1051 = vst [vmem:[%s1475_s6 + $0x28] sm:$0xff] %v988_v53   ;;  %v983_v61 = vpack.c.bf16 %v273_v59, %v270_v14  ;;  %v695_v62 = vadd.f32 %v694_v50, %v273_v59  ;;  %v720_v63 = vmul.f32 %v273_v59, %v273_v59  ;;  %v498_v0 = vpop.f32.mrf.mxu1 }
  0xfa   :  { %v798_v1 = vadd.f32 %v797_v57, %v783_v56  ;;  %1058 = vst [vmem:[%s1476_s7 + $0x28] sm:$0xff] %v1028_v58   ;;  %v1023_v2 = vpack.c.bf16 %v498_v0, %v495_v45  ;;  %v759_v3 = vadd.f32 %v758_v55, %v498_v0  ;;  %v784_v4 = vmul.f32 %v498_v0, %v498_v0  ;;  %v1123_v5 = vpop.f32.mrf.mxu0 }
  0xfb   :  { %1050 = vst [vmem:[%s1475_s6 + $0x20] sm:$0xff] %v983_v61   ;;  %v696_v7 = vadd.f32 %v1119_v35, %v695_v62  ;;  %v735_v8 = vadd.f32 %v734_v60, %v720_v63  ;;  %v1155_v9 = vpop.f32.mrf.mxu1  ;;  %v725_v14 = vmul.f32 %v1123_v5, %v1123_v5 }
  0xfc   :  { %1057 = vst [vmem:[%s1476_s7 + $0x20] sm:$0xff] %v1023_v2   ;;  %v760_v11 = vadd.f32 %v1151_v39, %v759_v3  ;;  %v799_v12 = vadd.f32 %v798_v1, %v784_v4  ;;  %v286_v15 = vpop.f32.mrf.mxu0  ;;  %v789_v44 = vmul.f32 %v1155_v9, %v1155_v9 }
  0xfd   :  { %v736_v17 = vadd.f32 %v735_v8, %v721_v6  ;;  %v697_v18 = vadd.f32 %v1120_v49, %v696_v7  ;;  %v511_v19 = vpop.f32.mrf.mxu1  ;;  %v723_v25 = vmul.f32 %v286_v15, %v286_v15  ;;  %v686_v7 = vld [vmem:[%s1471_s8] sm:$0x1] }
  0xfe   :  { %v800_v21 = vadd.f32 %v799_v12, %v785_v10  ;;  %v761_v22 = vadd.f32 %v1152_v54, %v760_v11  ;;  %v1124_v23 = vpop.f32.mrf.mxu0  ;;  %v787_v30 = vmul.f32 %v511_v19, %v511_v19  ;;  %v750_v12 = vld [vmem:[%s1473_s10] sm:$0x1] }
  0xff   :  { %v698_v24 = vadd.f32 %v697_v18, %v286_v15  ;;  %v737_v26 = vadd.f32 %v736_v17, %v722_v16  ;;  %v998_v27 = vpack.c.bf16 %v1124_v23, %v1123_v5  ;;  %v1156_v28 = vpop.f32.mrf.mxu1  ;;  %v726_v47 = vmul.f32 %v1124_v23, %v1124_v23 }
 0x100   :  { %v762_v29 = vadd.f32 %v761_v22, %v511_v19  ;;  %v801_v31 = vadd.f32 %v800_v21, %v786_v20  ;;  %v1038_v32 = vpack.c.bf16 %v1156_v28, %v1155_v9  ;;  %v289_v33 = vpop.f32.mrf.mxu0  ;;  %v790_v50 = vmul.f32 %v1156_v28, %v1156_v28  ;;  %v774_v20 = vld [vmem:[%s1474_s11] sm:$0x1] }
 0x101   :  { %v738_v34 = vadd.f32 %v737_v26, %v723_v25  ;;  %1053 = vst [vmem:[%s1475_s6 + $0x38] sm:$0xff] %v998_v27   ;;  %v993_v35 = vpack.c.bf16 %v289_v33, %v286_v15  ;;  %v699_v36 = vadd.f32 %v698_v24, %v289_v33  ;;  %v724_v37 = vmul.f32 %v289_v33, %v289_v33  ;;  %v514_v38 = vpop.f32.mrf.mxu1  ;;  %v710_v15 = vld [vmem:[%s1472_s9] sm:$0x1] }
 0x102   :  { %v802_v39 = vadd.f32 %v801_v31, %v787_v30  ;;  %1060 = vst [vmem:[%s1476_s7 + $0x38] sm:$0xff] %v1038_v32   ;;  %v1033_v13 = vpack.c.bf16 %v514_v38, %v511_v19  ;;  %v763_v40 = vadd.f32 %v762_v29, %v514_v38  ;;  %v788_v41 = vmul.f32 %v514_v38, %v514_v38 }
 0x103   :  { %1052 = vst [vmem:[%s1475_s6 + $0x30] sm:$0xff] %v993_v35   ;;  %v700_v42 = vadd.f32 %v1123_v5, %v699_v36  ;;  %v739_v43 = vadd.f32 %v738_v34, %v724_v37 }
 0x104   :  { %1059 = vst [vmem:[%s1476_s7 + $0x30] sm:$0xff] %v1033_v13   ;;  %v764_v45 = vadd.f32 %v1155_v9, %v763_v40  ;;  %v803_v46 = vadd.f32 %v802_v39, %v788_v41 }
 0x105   :  { %v701_v48 = vadd.f32 %v1124_v23, %v700_v42  ;;  %v740_v49 = vadd.f32 %v739_v43, %v725_v14 }
 0x106   :  { %v765_v51 = vadd.f32 %v1156_v28, %v764_v45  ;;  %v804_v52 = vadd.f32 %v803_v46, %v789_v44 }
 0x107   :  { %v702_v53 = vrot.slane %v701_v48, 4  ;;  %v741_v54 = vadd.f32 %v740_v49, %v726_v47 }
 0x108   :  { %v766_v55 = vrot.slane %v765_v51, 4  ;;  %v805_v56 = vadd.f32 %v804_v52, %v790_v50 }
 0x109   :  { %v703_v57 = vadd.f32 %v702_v53, %v701_v48  ;;  %v742_v58 = vrot.slane %v741_v54, 4 }
 0x10a   :  { %v767_v59 = vadd.f32 %v766_v55, %v765_v51  ;;  %v806_v60 = vrot.slane %v805_v56, 4 }
 0x10b   :  { %v704_v61 = vrot.slane %v703_v57, 2  ;;  %v743_v62 = vadd.f32 %v742_v58, %v741_v54 }
 0x10c   :  { %v768_v63 = vrot.slane %v767_v59, 2  ;;  %v807_v0 = vadd.f32 %v806_v60, %v805_v56 }
 0x10d   :  { %v705_v1 = vadd.f32 %v704_v61, %v703_v57  ;;  %v744_v2 = vrot.slane %v743_v62, 2 }
 0x10e   :  { %v769_v3 = vadd.f32 %v768_v63, %v767_v59  ;;  %v808_v4 = vrot.slane %v807_v0, 2 }
 0x10f   :  { %v706_v5 = vrot.slane %v705_v1, 1  ;;  %v745_v6 = vadd.f32 %v744_v2, %v743_v62 }
 0x110   :  { %v770_v8 = vrot.slane %v769_v3, 1  ;;  %v809_v9 = vadd.f32 %v808_v4, %v807_v0 }
 0x111   :  { %v707_v10 = vadd.f32 %v706_v5, %v705_v1  ;;  %v746_v11 = vrot.slane %v745_v6, 1 }
 0x112   :  { %v771_v16 = vadd.f32 %v770_v8, %v769_v3  ;;  %v810_v17 = vrot.slane %v809_v9, 1 }
 0x113   :  { %v708_v18 = vadd.f32 %v707_v10, %v686_v7  ;;  %v747_v19 = vadd.f32 %v746_v11, %v745_v6 }
 0x114   :  { %v772_v21 = vadd.f32 %v771_v16, %v750_v12  ;;  %v811_v22 = vadd.f32 %v810_v17, %v809_v9 }
 0x115   :  { %709 = vst [vmem:[%s1471_s8] sm:$0x1] %v708_v18  ;;  %v748_v23 = vadd.f32 %v747_v19, %v710_v15 }
 0x116   :  { %773 = vst [vmem:[%s1473_s10] sm:$0x1] %v772_v21  ;;  %v812_v24 = vadd.f32 %v811_v22, %v774_v20 }
 0x117   :  { %749 = vst [vmem:[%s1472_s9] sm:$0x1] %v748_v23 }
 0x118   :  { %813 = vst [vmem:[%s1474_s11] sm:$0x1] %v812_v24 }

</bundles_post_ra>
